<compile_context>
chip_gen: v7x
topology: tpu7x:2x2x1
jax: 0.10.0
libtpu: 0.0.40
codegen_flags: <defaults>
</compile_context>

<pallas_src>
import jax
import jax.numpy as jnp
from jax.experimental import pallas as pl
from jax.experimental.pallas import tpu as pltpu

_BN_EPS = 1e-5
_HIDDEN = (1024, 512, 256, 128)


def _round_up(x, m):
    return ((x + m - 1) // m) * m


# ----------------------------------------------------------------------------- kernel
def _mlp_kernel(x_ref, w1_ref, t1_ref,
                w2_ref, t2_ref,
                w3_ref, t3_ref,
                w4_ref, t4_ref,
                w5_ref, b5_ref,
                o_ref, acc_ref):
    """Grid = (row_tiles, k_blocks).

    x_ref  : (tm, bk)  bf16 row tile / K slice (streamed over k).
    w1_ref : (bk, 1024) bf16 K slice of the (BN-scale-folded) layer-1 weight.
    w2..w5 : bf16 grid-invariant weights in (in, out) layout (BN scale folded).
    t1..t4 : (1, out) f32 folded BN shift ((bias - mean)*scale + beta).
    b5     : (1, n_pad) f32 zero-padded final bias.
    o_ref  : (tm, n_pad) f32 logits tile (written on the last K block only).
    acc_ref: (tm, 1024) f32 layer-1 accumulator scratch.
    """
    k = pl.program_id(1)

    @pl.when(k == 0)
    def _():
        acc_ref[...] = jnp.zeros_like(acc_ref)

    # Layer 1 partial matmul: bf16 x bf16 -> f32 on the MXU, streamed over K.
    acc_ref[...] += jnp.dot(x_ref[...], w1_ref[...],
                            preferred_element_type=jnp.float32)

    @pl.when(k == pl.num_programs(1) - 1)
    def _():
        # Layer-1 epilogue: shift + ReLU in f32, bf16 into the next MXU pass.
        h = jnp.maximum(acc_ref[...] + t1_ref[...], 0.0).astype(jnp.bfloat16)

        def fused_layer(h_bf16, w_ref, t_ref):
            z = jnp.dot(h_bf16, w_ref[...], preferred_element_type=jnp.float32)
            return jnp.maximum(z + t_ref[...], 0.0).astype(jnp.bfloat16)

        h = fused_layer(h, w2_ref, t2_ref)
        h = fused_layer(h, w3_ref, t3_ref)
        h = fused_layer(h, w4_ref, t4_ref)

        logits = jnp.dot(h, w5_ref[...], preferred_element_type=jnp.float32)
        o_ref[...] = logits + b5_ref[...]


# ----------------------------------------------------------------------------- wrapper
def pde_classifier_forward(x, params, num_classes, *, tm=256, bk_target=512):
    """x: (B, input_dim) f32. Eval-mode forward (running-stat BN, dropout = identity)."""
    B, D = x.shape
    d_pad, h1 = params["w1"].shape
    n_pad = params["w5"].shape[1]

    # Row tile: at most `tm` rows; pad batch to a multiple of the tile.
    tm_eff = min(tm, _round_up(B, 16))
    B_pad = _round_up(B, tm_eff)

    # K block for streaming w1 over the (padded) input dim; multiple of 128 lanes.
    bk = min(_round_up(bk_target, 128), d_pad)
    while d_pad % bk:
        bk -= 128

    # bf16 activations: half the input DMA, identical values entering the MXU.
    xb = x.astype(jnp.bfloat16)
    if B_pad != B or d_pad != D:
        xb = jnp.pad(xb, ((0, B_pad - B), (0, d_pad - D)))

    grid = (B_pad // tm_eff, d_pad // bk)

    def invariant(a):  # grid-invariant block: DMA'd once, kept resident
        return pl.BlockSpec(a.shape, lambda i, k: (0, 0))

    in_specs = [
        pl.BlockSpec((tm_eff, bk), lambda i, k: (i, k)),   # x, streamed over K
        pl.BlockSpec((bk, h1), lambda i, k: (k, 0)),       # w1, streamed over K
        invariant(params["t1"]),
        invariant(params["w2"]), invariant(params["t2"]),
        invariant(params["w3"]), invariant(params["t3"]),
        invariant(params["w4"]), invariant(params["t4"]),
        invariant(params["w5"]), invariant(params["b5"]),
    ]
    out_spec = pl.BlockSpec((tm_eff, n_pad), lambda i, k: (i, 0))

    h2, h3, h4 = _HIDDEN[1], _HIDDEN[2], _HIDDEN[3]
    flops = 2 * B_pad * (d_pad * h1 + h1 * h2 + h2 * h3 + h3 * h4 + h4 * n_pad)
    weight_keys = ("w1", "t1", "w2", "t2", "w3", "t3", "w4", "t4", "w5", "b5")
    weight_bytes = sum(int(params[k].size) * params[k].dtype.itemsize
                       for k in weight_keys)
    bytes_accessed = weight_bytes + int(xb.size) * 2 + B_pad * n_pad * 4
    cost = pl.CostEstimate(flops=flops, transcendentals=0,
                           bytes_accessed=bytes_accessed)

    out = pl.pallas_call(
        _mlp_kernel,
        out_shape=jax.ShapeDtypeStruct((B_pad, n_pad), jnp.float32),
        grid=grid,
        in_specs=in_specs,
        out_specs=out_spec,
        scratch_shapes=[pltpu.VMEM((tm_eff, h1), jnp.float32)],
        compiler_params=pltpu.CompilerParams(
            dimension_semantics=("parallel", "arbitrary"),
            vmem_limit_bytes=24 * 1024 * 1024),
        cost_estimate=cost,
    )(xb, params["w1"], params["t1"],
      params["w2"], params["t2"],
      params["w3"], params["t3"],
      params["w4"], params["t4"],
      params["w5"], params["b5"])

    return out[:B, :num_classes]


# ----------------------------------------------------------------------------- params
def init_raw_params(key, input_dim, num_classes=10):
    """Raw f32 params mirroring the PyTorch module (weights already in (in, out))."""
    dims = (input_dim,) + _HIDDEN + (num_classes,)
    n_layers = len(dims) - 1
    keys = jax.random.split(key, 5 * n_layers)
    raw = {}
    for i in range(n_layers):
        fan_in, fan_out = dims[i], dims[i + 1]
        kw, kg, kb, km, kv = keys[5 * i: 5 * i + 5]
        std = (2.0 / fan_in) ** 0.5                         # kaiming_normal_
        raw[f"w{i+1}"] = std * jax.random.normal(kw, (fan_in, fan_out), jnp.float32)
        raw[f"b{i+1}"] = jnp.zeros((fan_out,), jnp.float32)  # constant_(bias, 0)
        if i < n_layers - 1:                                 # BN after the first 4 linears
            raw[f"gamma{i+1}"] = 1.0 + 0.1 * jax.random.normal(kg, (fan_out,), jnp.float32)
            raw[f"beta{i+1}"] = 0.1 * jax.random.normal(kb, (fan_out,), jnp.float32)
            raw[f"mean{i+1}"] = 0.05 * jax.random.normal(km, (fan_out,), jnp.float32)
            raw[f"var{i+1}"] = 0.5 + jax.random.uniform(kv, (fan_out,), jnp.float32)
    return raw


def prepare_params(raw, num_classes=10, eps=_BN_EPS):
    """One-time (outside hot path): fold BN scale into the weights and shift,
    cast weights to bf16, pad w1's input dim and the final output dim to 128."""
    params = {}
    d = raw["w1"].shape[0]
    d_pad = _round_up(d, 128)
    for i in range(1, 5):
        scale = raw[f"gamma{i}"] / jnp.sqrt(raw[f"var{i}"] + eps)
        shift = (raw[f"b{i}"] - raw[f"mean{i}"]) * scale + raw[f"beta{i}"]
        w = raw[f"w{i}"] * scale[None, :]                    # fold BN scale into W
        if i == 1 and d_pad != d:
            w = jnp.pad(w, ((0, d_pad - d), (0, 0)))         # zero rows: no effect on x@W
        params[f"w{i}"] = w.astype(jnp.bfloat16)
        params[f"t{i}"] = shift.reshape(1, -1).astype(jnp.float32)
    n_pad = _round_up(num_classes, 128)
    w5 = jnp.pad(raw["w5"], ((0, 0), (0, n_pad - num_classes)))
    b5 = jnp.pad(raw["b5"], (0, n_pad - num_classes))
    params["w5"] = w5.astype(jnp.bfloat16)
    params["b5"] = b5.reshape(1, -1).astype(jnp.float32)
    return params


# ----------------------------------------------------------------------------- reference
def _reference(x, raw, eps=_BN_EPS):
    """Pure-JAX f32 reference of the PyTorch eval-mode forward."""
    h = x
    for i in range(1, 5):
        z = h @ raw[f"w{i}"] + raw[f"b{i}"]
        z = (z - raw[f"mean{i}"]) / jnp.sqrt(raw[f"var{i}"] + eps)
        z = z * raw[f"gamma{i}"] + raw[f"beta{i}"]
        h = jax.nn.relu(z)                                   # Dropout: eval no-op
    return h @ raw["w5"] + raw["b5"]


if __name__ == "__main__":
    # Small demo shapes; hidden dims (1024/512/256/128) are fixed by the module.
    B, D, NC = 64, 1024, 10
    key = jax.random.PRNGKey(0)
    kx, kp = jax.random.split(key)

    x = jax.random.normal(kx, (B, D), jnp.float32)
    raw = init_raw_params(kp, D, NC)
    params = prepare_params(raw, NC)

    out = jax.block_until_ready(pde_classifier_forward(x, params, NC))
    ref = jax.block_until_ready(_reference(x, raw))

    assert out.shape == (B, NC)
    max_err = float(jnp.max(jnp.abs(out - ref)))
    # bf16 weights/activations (with BN scale folded) vs f32 reference -> loose tolerance.
    assert jnp.allclose(out, ref, atol=1e-1, rtol=1e-1), f"max_err={max_err}"

    print("KERNEL_OK")
</pallas_src>

<mosaic_0001>
module attributes {stable_mosaic.version = 11 : i64} {
  func.func @_mlp_kernel(%arg0: i32, %arg1: i32, %arg2: memref<64x512xbf16, #tpu.memory_space<vmem>>, %arg3: memref<512x1024xbf16, #tpu.memory_space<vmem>>, %arg4: memref<1x1024xf32, #tpu.memory_space<vmem>>, %arg5: memref<1024x512xbf16, #tpu.memory_space<vmem>>, %arg6: memref<1x512xf32, #tpu.memory_space<vmem>>, %arg7: memref<512x256xbf16, #tpu.memory_space<vmem>>, %arg8: memref<1x256xf32, #tpu.memory_space<vmem>>, %arg9: memref<256x128xbf16, #tpu.memory_space<vmem>>, %arg10: memref<1x128xf32, #tpu.memory_space<vmem>>, %arg11: memref<128x128xbf16, #tpu.memory_space<vmem>>, %arg12: memref<1x128xf32, #tpu.memory_space<vmem>>, %arg13: memref<64x128xf32, #tpu.memory_space<vmem>>, %arg14: memref<64x1024xf32, #tpu.memory_space<vmem>>) attributes {dimension_semantics = [#tpu.dimension_semantics<parallel>, #tpu.dimension_semantics<arbitrary>], iteration_bounds = array<i64: 1, 2>, scalar_prefetch = 0 : i64, scratch_operands = 1 : i64, tpu.core_type = #tpu.core_type<tc>, window_params = [{transform_indices = @transform_0, window_bounds = array<i64: 64, 512>}, {transform_indices = @transform_1, window_bounds = array<i64: 512, 1024>}, {pipeline_mode = #tpu.pipeline_mode<synchronous>, transform_indices = @transform_2, window_bounds = array<i64: 1, 1024>}, {pipeline_mode = #tpu.pipeline_mode<synchronous>, transform_indices = @transform_3, window_bounds = array<i64: 1024, 512>}, {pipeline_mode = #tpu.pipeline_mode<synchronous>, transform_indices = @transform_4, window_bounds = array<i64: 1, 512>}, {pipeline_mode = #tpu.pipeline_mode<synchronous>, transform_indices = @transform_5, window_bounds = array<i64: 512, 256>}, {pipeline_mode = #tpu.pipeline_mode<synchronous>, transform_indices = @transform_6, window_bounds = array<i64: 1, 256>}, {pipeline_mode = #tpu.pipeline_mode<synchronous>, transform_indices = @transform_7, window_bounds = array<i64: 256, 128>}, {pipeline_mode = #tpu.pipeline_mode<synchronous>, transform_indices = @transform_8, window_bounds = array<i64: 1, 128>}, {pipeline_mode = #tpu.pipeline_mode<synchronous>, transform_indices = @transform_9, window_bounds = array<i64: 128, 128>}, {pipeline_mode = #tpu.pipeline_mode<synchronous>, transform_indices = @transform_10, window_bounds = array<i64: 1, 128>}, {transform_indices = @transform_11, window_bounds = array<i64: 64, 128>}]} {
    %c0_i32 = arith.constant 0 : i32
    %0 = arith.cmpi eq, %arg1, %c0_i32 : i32
    %1 = arith.extui %0 : i1 to i32
    %c0_i32_0 = arith.constant 0 : i32
    %2 = arith.cmpi ne, %1, %c0_i32_0 : i32
    scf.if %2 {
      %cst_9 = arith.constant 0.000000e+00 : f32
      %12 = vector.broadcast %cst_9 : f32 to vector<64x1024xf32>
      %c0_10 = arith.constant 0 : index
      %c0_11 = arith.constant 0 : index
      %13 = vector.load %arg14[%c0_10, %c0_11] : memref<64x1024xf32, #tpu.memory_space<vmem>>, vector<64x1024xf32>
      tpu.vector_store %arg14[%c0_10, %c0_11], %12 {strides = array<i32>} : memref<64x1024xf32, #tpu.memory_space<vmem>>, vector<64x1024xf32>,
    } else {
    }
    %c0 = arith.constant 0 : index
    %c0_1 = arith.constant 0 : index
    %3 = vector.load %arg14[%c0, %c0_1] : memref<64x1024xf32, #tpu.memory_space<vmem>>, vector<64x1024xf32>
    %c0_2 = arith.constant 0 : index
    %c0_3 = arith.constant 0 : index
    %4 = vector.load %arg2[%c0_2, %c0_3] : memref<64x512xbf16, #tpu.memory_space<vmem>>, vector<64x512xbf16>
    %c0_4 = arith.constant 0 : index
    %c0_5 = arith.constant 0 : index
    %5 = vector.load %arg3[%c0_4, %c0_5] : memref<512x1024xbf16, #tpu.memory_space<vmem>>, vector<512x1024xbf16>
    %cst = arith.constant dense<0.000000e+00> : vector<64x1024xf32>
    %6 = tpu.matmul %4, %5, %cst {dimension_numbers = #tpu.dot_dimension_numbers<[1], [0], [0], [1], [0, 0, 1, 1], [], []>} : vector<64x512xbf16>, vector<512x1024xbf16>, vector<64x1024xf32> -> vector<64x1024xf32>
    %7 = arith.addf %3, %6 : vector<64x1024xf32>
    %c0_6 = arith.constant 0 : index
    %c0_7 = arith.constant 0 : index
    %8 = vector.load %arg14[%c0_6, %c0_7] : memref<64x1024xf32, #tpu.memory_space<vmem>>, vector<64x1024xf32>
    tpu.vector_store %arg14[%c0_6, %c0_7], %7 {strides = array<i32>} : memref<64x1024xf32, #tpu.memory_space<vmem>>, vector<64x1024xf32>,
    %c1_i32 = arith.constant 1 : i32
    %9 = arith.cmpi eq, %arg1, %c1_i32 : i32
    %10 = arith.extui %9 : i1 to i32
    %c0_i32_8 = arith.constant 0 : i32
    %11 = arith.cmpi ne, %10, %c0_i32_8 : i32
    scf.if %11 {
      %c0_9 = arith.constant 0 : index
      %c0_10 = arith.constant 0 : index
      %12 = vector.load %arg14[%c0_9, %c0_10] : memref<64x1024xf32, #tpu.memory_space<vmem>>, vector<64x1024xf32>
      %c0_11 = arith.constant 0 : index
      %c0_12 = arith.constant 0 : index
      %13 = vector.load %arg4[%c0_11, %c0_12] : memref<1x1024xf32, #tpu.memory_space<vmem>>, vector<1x1024xf32>
      %14 = vector.broadcast %13 : vector<1x1024xf32> to vector<64x1024xf32>
      %15 = arith.addf %12, %14 : vector<64x1024xf32>
      %cst_13 = arith.constant 0.000000e+00 : f32
      %16 = vector.broadcast %cst_13 : f32 to vector<64x1024xf32>
      %17 = arith.maximumf %15, %16 : vector<64x1024xf32>
      %18 = arith.truncf %17 : vector<64x1024xf32> to vector<64x1024xbf16>
      %c0_14 = arith.constant 0 : index
      %c0_15 = arith.constant 0 : index
      %19 = vector.load %arg5[%c0_14, %c0_15] : memref<1024x512xbf16, #tpu.memory_space<vmem>>, vector<1024x512xbf16>
      %cst_16 = arith.constant dense<0.000000e+00> : vector<64x512xf32>
      %20 = tpu.matmul %18, %19, %cst_16 {dimension_numbers = #tpu.dot_dimension_numbers<[1], [0], [0], [1], [0, 0, 1, 1], [], []>} : vector<64x1024xbf16>, vector<1024x512xbf16>, vector<64x512xf32> -> vector<64x512xf32>
      %c0_17 = arith.constant 0 : index
      %c0_18 = arith.constant 0 : index
      %21 = vector.load %arg6[%c0_17, %c0_18] : memref<1x512xf32, #tpu.memory_space<vmem>>, vector<1x512xf32>
      %22 = vector.broadcast %21 : vector<1x512xf32> to vector<64x512xf32>
      %23 = arith.addf %20, %22 : vector<64x512xf32>
      %cst_19 = arith.constant 0.000000e+00 : f32
      %24 = vector.broadcast %cst_19 : f32 to vector<64x512xf32>
      %25 = arith.maximumf %23, %24 : vector<64x512xf32>
      %26 = arith.truncf %25 : vector<64x512xf32> to vector<64x512xbf16>
      %c0_20 = arith.constant 0 : index
      %c0_21 = arith.constant 0 : index
      %27 = vector.load %arg7[%c0_20, %c0_21] : memref<512x256xbf16, #tpu.memory_space<vmem>>, vector<512x256xbf16>
      %cst_22 = arith.constant dense<0.000000e+00> : vector<64x256xf32>
      %28 = tpu.matmul %26, %27, %cst_22 {dimension_numbers = #tpu.dot_dimension_numbers<[1], [0], [0], [1], [0, 0, 1, 1], [], []>} : vector<64x512xbf16>, vector<512x256xbf16>, vector<64x256xf32> -> vector<64x256xf32>
      %c0_23 = arith.constant 0 : index
      %c0_24 = arith.constant 0 : index
      %29 = vector.load %arg8[%c0_23, %c0_24] : memref<1x256xf32, #tpu.memory_space<vmem>>, vector<1x256xf32>
      %30 = vector.broadcast %29 : vector<1x256xf32> to vector<64x256xf32>
      %31 = arith.addf %28, %30 : vector<64x256xf32>
      %cst_25 = arith.constant 0.000000e+00 : f32
      %32 = vector.broadcast %cst_25 : f32 to vector<64x256xf32>
      %33 = arith.maximumf %31, %32 : vector<64x256xf32>
      %34 = arith.truncf %33 : vector<64x256xf32> to vector<64x256xbf16>
      %c0_26 = arith.constant 0 : index
      %c0_27 = arith.constant 0 : index
      %35 = vector.load %arg9[%c0_26, %c0_27] : memref<256x128xbf16, #tpu.memory_space<vmem>>, vector<256x128xbf16>
      %cst_28 = arith.constant dense<0.000000e+00> : vector<64x128xf32>
      %36 = tpu.matmul %34, %35, %cst_28 {dimension_numbers = #tpu.dot_dimension_numbers<[1], [0], [0], [1], [0, 0, 1, 1], [], []>} : vector<64x256xbf16>, vector<256x128xbf16>, vector<64x128xf32> -> vector<64x128xf32>
      %c0_29 = arith.constant 0 : index
      %c0_30 = arith.constant 0 : index
      %37 = vector.load %arg10[%c0_29, %c0_30] : memref<1x128xf32, #tpu.memory_space<vmem>>, vector<1x128xf32>
      %38 = vector.broadcast %37 : vector<1x128xf32> to vector<64x128xf32>
      %39 = arith.addf %36, %38 : vector<64x128xf32>
      %cst_31 = arith.constant 0.000000e+00 : f32
      %40 = vector.broadcast %cst_31 : f32 to vector<64x128xf32>
      %41 = arith.maximumf %39, %40 : vector<64x128xf32>
      %42 = arith.truncf %41 : vector<64x128xf32> to vector<64x128xbf16>
      %c0_32 = arith.constant 0 : index
      %c0_33 = arith.constant 0 : index
      %43 = vector.load %arg11[%c0_32, %c0_33] : memref<128x128xbf16, #tpu.memory_space<vmem>>, vector<128x128xbf16>
      %cst_34 = arith.constant dense<0.000000e+00> : vector<64x128xf32>
      %44 = tpu.matmul %42, %43, %cst_34 {dimension_numbers = #tpu.dot_dimension_numbers<[1], [0], [0], [1], [0, 0, 1, 1], [], []>} : vector<64x128xbf16>, vector<128x128xbf16>, vector<64x128xf32> -> vector<64x128xf32>
      %c0_35 = arith.constant 0 : index
      %c0_36 = arith.constant 0 : index
      %45 = vector.load %arg12[%c0_35, %c0_36] : memref<1x128xf32, #tpu.memory_space<vmem>>, vector<1x128xf32>
      %46 = vector.broadcast %45 : vector<1x128xf32> to vector<64x128xf32>
      %47 = arith.addf %44, %46 : vector<64x128xf32>
      %c0_37 = arith.constant 0 : index
      %c0_38 = arith.constant 0 : index
      %48 = vector.load %arg13[%c0_37, %c0_38] : memref<64x128xf32, #tpu.memory_space<vmem>>, vector<64x128xf32>
      tpu.vector_store %arg13[%c0_37, %c0_38], %47 {strides = array<i32>} : memref<64x128xf32, #tpu.memory_space<vmem>>, vector<64x128xf32>,
    } else {
    }
    return
  }
  func.func @transform_0(%arg0: i32, %arg1: i32) -> (i32, i32) {
    %c0_i32 = arith.constant 0 : i32
    return %arg0, %arg1 : i32, i32
  }
  func.func @transform_1(%arg0: i32, %arg1: i32) -> (i32, i32) {
    %c0_i32 = arith.constant 0 : i32
    %c0_i32_0 = arith.constant 0 : i32
    return %arg1, %c0_i32 : i32, i32
  }
  func.func @transform_2(%arg0: i32, %arg1: i32) -> (i32, i32) {
    %c0_i32 = arith.constant 0 : i32
    %c0_i32_0 = arith.constant 0 : i32
    %c0_i32_1 = arith.constant 0 : i32
    return %c0_i32, %c0_i32_0 : i32, i32
  }
  func.func @transform_3(%arg0: i32, %arg1: i32) -> (i32, i32) {
    %c0_i32 = arith.constant 0 : i32
    %c0_i32_0 = arith.constant 0 : i32
    %c0_i32_1 = arith.constant 0 : i32
    return %c0_i32, %c0_i32_0 : i32, i32
  }
  func.func @transform_4(%arg0: i32, %arg1: i32) -> (i32, i32) {
    %c0_i32 = arith.constant 0 : i32
    %c0_i32_0 = arith.constant 0 : i32
    %c0_i32_1 = arith.constant 0 : i32
    return %c0_i32, %c0_i32_0 : i32, i32
  }
  func.func @transform_5(%arg0: i32, %arg1: i32) -> (i32, i32) {
    %c0_i32 = arith.constant 0 : i32
    %c0_i32_0 = arith.constant 0 : i32
    %c0_i32_1 = arith.constant 0 : i32
    return %c0_i32, %c0_i32_0 : i32, i32
  }
  func.func @transform_6(%arg0: i32, %arg1: i32) -> (i32, i32) {
    %c0_i32 = arith.constant 0 : i32
    %c0_i32_0 = arith.constant 0 : i32
    %c0_i32_1 = arith.constant 0 : i32
    return %c0_i32, %c0_i32_0 : i32, i32
  }
  func.func @transform_7(%arg0: i32, %arg1: i32) -> (i32, i32) {
    %c0_i32 = arith.constant 0 : i32
    %c0_i32_0 = arith.constant 0 : i32
    %c0_i32_1 = arith.constant 0 : i32
    return %c0_i32, %c0_i32_0 : i32, i32
  }
  func.func @transform_8(%arg0: i32, %arg1: i32) -> (i32, i32) {
    %c0_i32 = arith.constant 0 : i32
    %c0_i32_0 = arith.constant 0 : i32
    %c0_i32_1 = arith.constant 0 : i32
    return %c0_i32, %c0_i32_0 : i32, i32
  }
  func.func @transform_9(%arg0: i32, %arg1: i32) -> (i32, i32) {
    %c0_i32 = arith.constant 0 : i32
    %c0_i32_0 = arith.constant 0 : i32
    %c0_i32_1 = arith.constant 0 : i32
    return %c0_i32, %c0_i32_0 : i32, i32
  }
  func.func @transform_10(%arg0: i32, %arg1: i32) -> (i32, i32) {
    %c0_i32 = arith.constant 0 : i32
    %c0_i32_0 = arith.constant 0 : i32
    %c0_i32_1 = arith.constant 0 : i32
    return %c0_i32, %c0_i32_0 : i32, i32
  }
  func.func @transform_11(%arg0: i32, %arg1: i32) -> (i32, i32) {
    %c0_i32 = arith.constant 0 : i32
    %c0_i32_0 = arith.constant 0 : i32
    return %arg0, %c0_i32 : i32, i32
  }
}

</mosaic_0001>

<bundles_post_ra>
// kernel: tpu_custom_call.1
= control target key start
LH: loop header
LB: loop body
LE: loop exit
PB: predicated region body
PF: predicated region fallthrough
CT: control target
= control target key end

     0   :  { %s9988_s0 = inlined_call_operand.hbm [shape: bf16[64,1024], index: 0, kind: input, shape index: {}]   ;;  %s9989_s1 = inlined_call_operand.hbm [shape: bf16[1024,1024], index: 1, kind: input, shape index: {}]   ;;  %s9990_s2 = inlined_call_operand.hbm [shape: f32[1,1024], index: 2, kind: input, shape index: {}]   ;;  %s9991_s3 = inlined_call_operand.hbm [shape: bf16[1024,512], index: 3, kind: input, shape index: {}]   ;;  %s9992_s4 = inlined_call_operand.hbm [shape: f32[1,512], index: 4, kind: input, shape index: {}]   ;;  %s9993_s5 = inlined_call_operand.hbm [shape: bf16[512,256], index: 5, kind: input, shape index: {}]   ;;  %s9994_s6 = inlined_call_operand.hbm [shape: f32[1,256], index: 6, kind: input, shape index: {}]   ;;  %s9995_s7 = inlined_call_operand.hbm [shape: bf16[256,128], index: 7, kind: input, shape index: {}]   ;;  %s9996_s8 = inlined_call_operand.hbm [shape: f32[1,128], index: 8, kind: input, shape index: {}]   ;;  %s9997_s9 = inlined_call_operand.hbm [shape: bf16[128,128], index: 9, kind: input, shape index: {}]   ;;  %s9998_s10 = inlined_call_operand.hbm [shape: f32[1,128], index: 10, kind: input, shape index: {}]   ;;  %s9999_s11 = inlined_call_operand.hbm [shape: f32[64,128], index: 11, kind: output, shape index: {}]  }
   0x1   :  { %10006 = sst [smem:[#allocation32_spill]] %s9988_s0 }
   0x2   :  { %10007 = sst [smem:[#allocation33_spill]] %s9990_s2 }
   0x3   :  { %10008 = sst [smem:[#allocation34_spill]] %s9991_s3 }
   0x4   :  { %10009 = sst [smem:[#allocation35_spill]] %s9992_s4 }
   0x5   :  { %10010 = sst [smem:[#allocation36_spill]] %s9993_s5 }
   0x6   :  { %10011 = sst [smem:[#allocation37_spill]] %s9994_s6 }
   0x7   :  { %10012 = sst [smem:[#allocation38_spill]] %s9999_s11 }
   0x8   :  { %16 = vsyncpa [#allocation4], 0 }
   0x9   :  { %18 = vsyncpa [#allocation4 + $0x1], 0 }
   0xa   :  { %19 = vsyncpa [#allocation7], 0 }
   0xb   :  { %21 = vsyncpa [#allocation7 + $0x1], 0 }
   0xc   :  { %22 = vsyncpa [#allocation10], 0 }
   0xd   :  { %23 = vsyncpa [#allocation13], 0 }
   0xe   :  { %24 = vsyncpa [#allocation16], 0 }
   0xf   :  { %25 = vsyncpa [#allocation19], 0 }
  0x10   :  { %26 = vsyncpa [#allocation5], 0  ;;  %s8779_s17 = smov 0   ;;  %s8781_s18 = smov 0  }
  0x11   :  { %s8783_s19 = smov 0   ;;  %s8785_s20 = smov 0  }
  0x12   :  { %s8787_s21 = smov 0   ;;  %s8789_s22 = smov 0  }
  0x13 LB: > { %10013 = sst [smem:[#allocation30_spill]] %s8686_s20  ;;  %s8810_s23 = sadd.s32 4294967295, %s8694_s22   ;;  %s8694_s22 = sphi %s8789_s22, %s32_s22   ;;  %s8690_s21 = sphi %s8787_s21, %s10050_s21   ;;  %s8686_s20 = sphi %s8785_s20, %s10049_s20   ;;  %s8682_s19 = sphi %s8783_s19, %s10048_s19   ;;  %s8678_s18 = sphi %s8781_s18, %s10047_s18   ;;  %s8674_s17 = sphi %s8779_s17, %s10046_s17  }
  0x14   : > { %p6624_p0 = scmp.ge.s32.totalorder %s8694_s22, 1  ;;  %p10001_p1 = scmp.eq.s32.totalorder %s8810_s23, 0 }
  0x15   : > { %p318_p2 = scmp.lt.s32.totalorder %s8694_s22, 3  ;;  %s8696_s25 = smov [#allocation8]  }
  0x16   : > { %s331_s26 = sshll.u32 %s8696_s25, 4  ;;  %s8697_s27 = smov [#allocation9]   ;;  %s332_s26 = int_to_ptr.vmem [resolvable:$true] %s331_s26 }
  0x17   : > { %p8815_p3 = pnand %p6624_p0, %p318_p2  ;;  %s341_s28 = sshll.u32 %s8697_s27, 4  ;;  %s8827_s28 = int_to_ptr.vmem [resolvable:$true] %s341_s28 }
  0x18   : > { %s8698_s30 = smov [#allocation12]   ;;  %s10017_s2 = sld [smem:[#allocation33_spill]] }
  0x19   : > { %s10014_s24 = scalar_select %p8815_p3, 1, 0 }
  0x1a   : > { %p7625_p4 = pneg %p8815_p3  ;;  %s8829_s12 = sshll.u32 %s8698_s30, 4  ;;  %s366_s12 = int_to_ptr.vmem [resolvable:$true] %s8829_s12 }
  0x1b   : > { %10015 = sst [smem:[#allocation31_spill]] %s10014_s24 }
  0x1c   : > { %p8823_p5 = pnand %p7625_p4, %p10001_p1 }
  0x1e   : > { %s8278_s15 = scalar_lea.hbm %s10017_s2, 128  ;;  %p8839_p7 = pneg %p8823_p5 }
  0x1f   : > { %p8279_p6 = scmp.ne.s32.totalorder %s10017_s2, %s8278_s15  ;;  %p8285_p10 = scmp.lt.u32.totalorder %s8278_s15, %s10017_s2 }
  0x21   : > { %p8281_p8 = pnand %p8839_p7, %p8279_p6 }
  0x23   : > { %p8282_p9 = pneg %p8281_p8 }
  0x25   : > { %p8287_p11 = pnand %p8285_p10, %p8282_p9 }
  0x27   : > { %8290 = shalt.err (!%p8287_p11)
}
  0x28   : > { %s8291_s13 = scalar_lea.vmem %s332_s26, 128  ;;  %p8299_p2 = scmp.lt.s32.totalorder %s332_s26, %s332_s26 }
  0x29   : > { %p8292_p12 = scmp.ne.s32.totalorder %s332_s26, %s8291_s13  ;;  %p8300_p4 = scmp.lt.s32.totalorder %s8291_s13, %s8291_s13 }
  0x2b   : > { %p8294_p13 = pnand %p8292_p12, %p8839_p7  ;;  %p8301_p1 = por %p8300_p4, %p8299_p2 }
  0x2d   : > { %p8295_p0 = pneg %p8294_p13 }
  0x2f   : > { %p8302_p3 = pnand %p8301_p1, %p8295_p0 }
  0x31   : > { %8305 = shalt.err (!%p8302_p3)
}
  0x32   : > { %7628 = dma.hbm_to_vmem [thread:$0]  (!%p8823_p5), %s10017_s2, 128, %s332_s26, [#allocation7]  }
  0x33   : > { %s10019_s3 = sld [smem:[#allocation34_spill]] }
  0x39   : > { %s8306_s25 = scalar_lea.hbm %s10019_s3, 32768 }
  0x3a   : > { %p8307_p6 = scmp.ne.s32.totalorder %s10019_s3, %s8306_s25  ;;  %p8313_p1 = scmp.lt.u32.totalorder %s8306_s25, %s10019_s3 }
  0x3c   : > { %p8309_p8 = pnand %p8307_p6, %p8839_p7 }
  0x3e   : > { %p8310_p9 = pneg %p8309_p8 }
  0x40   : > { %p8315_p3 = pnand %p8313_p1, %p8310_p9 }
  0x42   : > { %8318 = shalt.err (!%p8315_p3)
}
  0x43   : > { %s8319_s26 = scalar_lea.vmem %s8827_s28, 32768  ;;  %p8327_p13 = scmp.lt.s32.totalorder %s8827_s28, %s8827_s28 }
  0x44   : > { %p8320_p10 = scmp.ne.s32.totalorder %s8827_s28, %s8319_s26  ;;  %p8328_p0 = scmp.lt.s32.totalorder %s8319_s26, %s8319_s26 }
  0x46   : > { %p8322_p11 = pnand %p8320_p10, %p8839_p7  ;;  %p8329_p2 = por %p8328_p0, %p8327_p13 }
  0x48   : > { %p8323_p12 = pneg %p8322_p11 }
  0x4a   : > { %p8330_p4 = pnand %p8329_p2, %p8323_p12 }
  0x4c   : > { %8333 = shalt.err (!%p8330_p4)
}
  0x4d   : > { %s10004_s20 = smov 256   ;;  %s10005_s24 = smov 16  }
  0x4e   : > { %7631 = dma.hbm_to_vmem [thread:$0]  (!%p8823_p5), %s10019_s3, 32768, %s8827_s28, [#allocation10], %s10004_s20, %s10004_s20, %s10005_s24  }
  0x4f   : > { %s10020_s5 = sld [smem:[#allocation36_spill]] }
  0x55   : > { %s8334_s25 = scalar_lea.hbm %s10020_s5, 8192 }
  0x56   : > { %p8335_p6 = scmp.ne.s32.totalorder %s10020_s5, %s8334_s25  ;;  %p8341_p1 = scmp.lt.u32.totalorder %s8334_s25, %s10020_s5 }
  0x58   : > { %p8337_p8 = pnand %p8335_p6, %p8839_p7 }
  0x5a   : > { %p8338_p9 = pneg %p8337_p8 }
  0x5c   : > { %p8343_p3 = pnand %p8341_p1, %p8338_p9 }
  0x5e   : > { %8346 = shalt.err (!%p8343_p3)
}
  0x5f   : > { %s8347_s14 = scalar_lea.vmem %s366_s12, 8192  ;;  %p8355_p13 = scmp.lt.s32.totalorder %s366_s12, %s366_s12 }
  0x60   : > { %p8348_p10 = scmp.ne.s32.totalorder %s366_s12, %s8347_s14  ;;  %p8356_p0 = scmp.lt.s32.totalorder %s8347_s14, %s8347_s14 }
  0x62   : > { %p8350_p11 = pnand %p8348_p10, %p8839_p7  ;;  %p8357_p2 = por %p8356_p0, %p8355_p13 }
  0x64   : > { %p8351_p12 = pneg %p8350_p11 }
  0x66   : > { %p8358_p4 = pnand %p8357_p2, %p8351_p12 }
  0x68   : > { %8361 = shalt.err (!%p8358_p4)
}
  0x69   : > { %s8701_s28 = smov 128   ;;  %s8702_s16 = smov 8  }
  0x6a   : > { %7637 = dma.hbm_to_vmem [thread:$0]  (!%p8823_p5), %s10020_s5, 8192, %s366_s12, [#allocation13], %s8701_s28, %s8701_s28, %s8702_s16  }
  0x6b   : > { %s8703_s15 = smov [#allocation15]   ;;  %s8362_s26 = scalar_lea.hbm %s9995_s7, 2048 }
  0x6c   : > { %s389_s25 = sshll.u32 %s8703_s15, 4  ;;  %p8363_p6 = scmp.ne.s32.totalorder %s9995_s7, %s8362_s26  ;;  %s390_s25 = int_to_ptr.vmem [resolvable:$true] %s389_s25 }
  0x6d   : > { %p8369_p1 = scmp.lt.u32.totalorder %s8362_s26, %s9995_s7 }
  0x6e   : > { %p8365_p8 = pnand %p8363_p6, %p8839_p7 }
  0x70   : > { %p8366_p9 = pneg %p8365_p8 }
  0x72   : > { %p8371_p3 = pnand %p8369_p1, %p8366_p9 }
  0x74   : > { %8374 = shalt.err (!%p8371_p3)
}
  0x75   : > { %s8375_s12 = scalar_lea.vmem %s390_s25, 2048  ;;  %p8383_p13 = scmp.lt.s32.totalorder %s390_s25, %s390_s25 }
  0x76   : > { %p8376_p10 = scmp.ne.s32.totalorder %s390_s25, %s8375_s12  ;;  %p8384_p0 = scmp.lt.s32.totalorder %s8375_s12, %s8375_s12 }
  0x78   : > { %p8378_p11 = pnand %p8376_p10, %p8839_p7  ;;  %p8385_p2 = por %p8384_p0, %p8383_p13 }
  0x7a   : > { %p8379_p12 = pneg %p8378_p11 }
  0x7c   : > { %p8386_p4 = pnand %p8385_p2, %p8379_p12 }
  0x7e   : > { %8389 = shalt.err (!%p8386_p4)
}
  0x7f   : > { %s8704_s20 = smov 64   ;;  %s8705_s28 = smov 4  }
  0x80   : > { %7643 = dma.hbm_to_vmem [thread:$0]  (!%p8823_p5), %s9995_s7, 2048, %s390_s25, [#allocation16], %s8704_s20, %s8704_s20, %s8705_s28  }
  0x81   : > { %s8706_s16 = smov [#allocation18]   ;;  %s8707_s11 = smov [#allocation11]  }
  0x82   : > { %s413_s2 = sshll.u32 %s8706_s16, 4  ;;  %s355_s15 = sshll.u32 %s8707_s11, 4  ;;  %s414_s2 = int_to_ptr.vmem [resolvable:$true] %s413_s2  ;;  %s8918_s15 = int_to_ptr.vmem [resolvable:$true] %s355_s15 }
  0x83   : > { %s8390_s26 = scalar_lea.hbm %s9997_s9, 1024 }
  0x84   : > { %p8391_p6 = scmp.ne.s32.totalorder %s9997_s9, %s8390_s26  ;;  %p8397_p1 = scmp.lt.u32.totalorder %s8390_s26, %s9997_s9 }
  0x86   : > { %p8393_p8 = pnand %p8391_p6, %p8839_p7 }
  0x88   : > { %p8394_p9 = pneg %p8393_p8 }
  0x8a   : > { %p8399_p3 = pnand %p8397_p1, %p8394_p9 }
  0x8c   : > { %8402 = shalt.err (!%p8399_p3)
}
  0x8d   : > { %s8403_s24 = scalar_lea.vmem %s414_s2, 1024  ;;  %p8411_p13 = scmp.lt.s32.totalorder %s414_s2, %s414_s2 }
  0x8e   : > { %p8404_p10 = scmp.ne.s32.totalorder %s414_s2, %s8403_s24  ;;  %p8412_p0 = scmp.lt.s32.totalorder %s8403_s24, %s8403_s24 }
  0x90   : > { %p8406_p11 = pnand %p8404_p10, %p8839_p7  ;;  %p8413_p2 = por %p8412_p0, %p8411_p13 }
  0x92   : > { %p8407_p12 = pneg %p8406_p11 }
  0x94   : > { %p8414_p4 = pnand %p8413_p2, %p8407_p12 }
  0x96   : > { %8417 = shalt.err (!%p8414_p4)
}
  0x97   : > { %7649 = dma.hbm_to_vmem [thread:$0]  (!%p8823_p5), %s9997_s9, 1024, %s414_s2, [#allocation19], %s8704_s20, %s8704_s20, %s8705_s28  }
  0x98   : > { %s10021_s4 = sld [smem:[#allocation35_spill]] }
  0x9e   : > { %s8418_s26 = scalar_lea.hbm %s10021_s4, 64 }
  0x9f   : > { %p8419_p6 = scmp.ne.s32.totalorder %s10021_s4, %s8418_s26  ;;  %p8425_p1 = scmp.lt.u32.totalorder %s8418_s26, %s10021_s4 }
  0xa1   : > { %p8421_p8 = pnand %p8419_p6, %p8839_p7 }
  0xa3   : > { %p8422_p9 = pneg %p8421_p8 }
  0xa5   : > { %p8427_p3 = pnand %p8425_p1, %p8422_p9 }
  0xa7   : > { %8430 = shalt.err (!%p8427_p3)
}
  0xa8   : > { %s8431_s20 = scalar_lea.vmem %s8918_s15, 64  ;;  %p8439_p13 = scmp.lt.s32.totalorder %s8918_s15, %s8918_s15 }
  0xa9   : > { %p8432_p10 = scmp.ne.s32.totalorder %s8918_s15, %s8431_s20  ;;  %p8440_p0 = scmp.lt.s32.totalorder %s8431_s20, %s8431_s20 }
  0xab   : > { %p8434_p11 = pnand %p8432_p10, %p8839_p7  ;;  %p8441_p2 = por %p8440_p0, %p8439_p13 }
  0xad   : > { %p8435_p12 = pneg %p8434_p11 }
  0xaf   : > { %p8442_p4 = pnand %p8441_p2, %p8435_p12 }
  0xb1   : > { %8445 = shalt.err (!%p8442_p4)
}
  0xb2   : > { %7634 = dma.hbm_to_vmem [thread:$0]  (!%p8823_p5), %s10021_s4, 64, %s8918_s15, [#allocation10]  }
  0xb3   : > { %s8708_s24 = smov [#allocation14]   ;;  %s8709_s11 = smov [#allocation17]  }
  0xb4   : > { %s379_s16 = sshll.u32 %s8708_s24, 4  ;;  %s403_s30 = sshll.u32 %s8709_s11, 4  ;;  %s380_s16 = int_to_ptr.vmem [resolvable:$true] %s379_s16  ;;  %s8961_s30 = int_to_ptr.vmem [resolvable:$true] %s403_s30 }
  0xb5   : > { %s10022_s6 = sld [smem:[#allocation37_spill]] }
  0xbb   : > { %s8446_s14 = scalar_lea.hbm %s10022_s6, 32 }
  0xbc   : > { %p8447_p6 = scmp.ne.s32.totalorder %s10022_s6, %s8446_s14  ;;  %p8453_p1 = scmp.lt.u32.totalorder %s8446_s14, %s10022_s6 }
  0xbe   : > { %p8449_p8 = pnand %p8447_p6, %p8839_p7 }
  0xc0   : > { %p8450_p9 = pneg %p8449_p8 }
  0xc2   : > { %p8455_p3 = pnand %p8453_p1, %p8450_p9 }
  0xc4   : > { %8458 = shalt.err (!%p8455_p3)
}
  0xc5   : > { %s8459_s20 = scalar_lea.vmem %s380_s16, 32  ;;  %p8467_p13 = scmp.lt.s32.totalorder %s380_s16, %s380_s16 }
  0xc6   : > { %p8460_p10 = scmp.ne.s32.totalorder %s380_s16, %s8459_s20  ;;  %p8468_p0 = scmp.lt.s32.totalorder %s8459_s20, %s8459_s20 }
  0xc8   : > { %p8462_p11 = pnand %p8460_p10, %p8839_p7  ;;  %p8469_p2 = por %p8468_p0, %p8467_p13 }
  0xca   : > { %p8463_p12 = pneg %p8462_p11 }
  0xcc   : > { %p8470_p4 = pnand %p8469_p2, %p8463_p12 }
  0xce   : > { %8473 = shalt.err (!%p8470_p4)
}
  0xcf   : > { %7640 = dma.hbm_to_vmem [thread:$0]  (!%p8823_p5), %s10022_s6, 32, %s380_s16, [#allocation13]  }
  0xd0   : > { %s8474_s13 = scalar_lea.hbm %s9996_s8, 16 }
  0xd1   : > { %p8475_p6 = scmp.ne.s32.totalorder %s9996_s8, %s8474_s13  ;;  %p8481_p1 = scmp.lt.u32.totalorder %s8474_s13, %s9996_s8 }
  0xd3   : > { %p8477_p8 = pnand %p8475_p6, %p8839_p7 }
  0xd5   : > { %p8478_p9 = pneg %p8477_p8 }
  0xd7   : > { %p8483_p3 = pnand %p8481_p1, %p8478_p9 }
  0xd9   : > { %8486 = shalt.err (!%p8483_p3)
}
  0xda   : > { %s8487_s16 = scalar_lea.vmem %s8961_s30, 16  ;;  %s8494_s25 = scalar_lea.vmem %s8961_s30, 32 }
  0xdb   : > { %p8488_p10 = scmp.ne.s32.totalorder %s8961_s30, %s8487_s16  ;;  %p8495_p13 = scmp.lt.s32.totalorder %s8961_s30, %s8961_s30 }
  0xdc   : > { %p8496_p0 = scmp.lt.s32.totalorder %s8494_s25, %s8487_s16 }
  0xdd   : > { %p8490_p11 = pnand %p8488_p10, %p8839_p7 }
  0xde   : > { %p8497_p2 = por %p8496_p0, %p8495_p13 }
  0xdf   : > { %p8491_p12 = pneg %p8490_p11 }
  0xe1   : > { %p8498_p4 = pnand %p8497_p2, %p8491_p12 }
  0xe3   : > { %8501 = shalt.err (!%p8498_p4)
}
  0xe4   : > { %7646 = dma.hbm_to_vmem [thread:$0]  (!%p8823_p5), %s9996_s8, 16, %s8961_s30, [#allocation16]  }
  0xe5   : > { %s8710_s28 = smov [#allocation20]   ;;  %s8502_s13 = scalar_lea.hbm %s9998_s10, 16 }
  0xe6   : > { %s427_s2 = sshll.u32 %s8710_s28, 4  ;;  %p8503_p6 = scmp.ne.s32.totalorder %s9998_s10, %s8502_s13  ;;  %s428_s2 = int_to_ptr.vmem [resolvable:$true] %s427_s2 }
  0xe7   : > { %p8509_p1 = scmp.lt.u32.totalorder %s8502_s13, %s9998_s10 }
  0xe8   : > { %p8505_p8 = pnand %p8503_p6, %p8839_p7 }
  0xea   : > { %p8506_p9 = pneg %p8505_p8 }
  0xec   : > { %p8511_p3 = pnand %p8509_p1, %p8506_p9 }
  0xee   : > { %8514 = shalt.err (!%p8511_p3)
}
  0xef   : > { %s8515_s30 = scalar_lea.vmem %s428_s2, 16  ;;  %s8522_s16 = scalar_lea.vmem %s428_s2, 32 }
  0xf0   : > { %p8516_p10 = scmp.ne.s32.totalorder %s428_s2, %s8515_s30  ;;  %p8523_p13 = scmp.lt.s32.totalorder %s428_s2, %s428_s2 }
  0xf1   : > { %p8524_p0 = scmp.lt.s32.totalorder %s8522_s16, %s8515_s30 }
  0xf2   : > { %p8518_p11 = pnand %p8516_p10, %p8839_p7 }
  0xf3   : > { %p8525_p2 = por %p8524_p0, %p8523_p13 }
  0xf4   : > { %p8519_p12 = pneg %p8518_p11 }
  0xf6   : > { %p8526_p4 = pnand %p8525_p2, %p8519_p12 }
  0xf8   : > { %8529 = shalt.err (!%p8526_p4)
}
  0xf9   : > { %7652 = dma.hbm_to_vmem [thread:$0]  (!%p8823_p5), %s9998_s10, 16, %s428_s2, [#allocation19]  }
  0xfa   : > { %s41_s27 = sadd.s32 1, %s8690_s21  ;;  %s53_s29 = sadd.s32 1, %s8682_s19 }
  0xfb   : > { %p42_p7 = scmp.ge.s32.totalorder %s41_s27, 2  ;;  %p60_p6 = scmp.ne.s32.totalorder %s8682_s19, %s8678_s18 }
  0xfc   : > { %p61_p8 = scmp.eq.s32.totalorder %s8694_s22, 0  ;;  %p66_p1 = scmp.ne.s32.totalorder %s8678_s18, %s8674_s17 }
  0xfd   : > { %s10052_s27 = smov (%p42_p7, %s41_s27), 0  ;;  %p7669_p3 = scmp.lt.s32.totalorder %s8694_s22, 2 }
  0xfe   : > { %p9030_p9 = por %p61_p8, %p60_p6  ;;  %s49_s28 = ssub.s32 %s8690_s21, %s10052_s27 }
  0xff   : > { %p51_p10 = scmp.eq.s32.totalorder %s49_s28, 0  ;;  %p10024_p11 = scmp.eq.s32.totalorder %s8810_s23, 0 }
 0x100   : > { %s9046_s24 = sand.u32 1, %s8682_s19   ;;  %s7278_s11 = sshll.u32 %s8690_s21, 8 }
 0x101   : > { %p9041_p5 = por %p10024_p11, %p66_p1  ;;  %s6635_s26 = sshll.u32 %s9046_s24, 7 }
 0x102   : > { %s9050_s13 = scalar_select %p51_p10, %s8682_s19, %s53_s29  }
 0x103   : > { %s10026_s0 = sld [smem:[#allocation32_spill]]  ;;  %s442_s3 = scalar_lea.vmem [#allocation3], %s6635_s26 }
 0x104   : > { %s452_s30 = sshll.u32 %s442_s3, 4  ;;  %p9060_p12 = pnand %p7669_p3, %p9030_p9  ;;  %s9064_s30 = int_to_ptr.vmem [resolvable:$true] %s452_s30 }
 0x105   : > { %s439_s15 = scalar_lea.sflag [#allocation4], %s9046_s24 }
 0x106   : > { %p8532_p0 = pneg %p9060_p12 }
 0x109   : > { %s9056_s17 = scalar_lea.hbm %s10026_s0, %s7278_s11  ;;  %s8535_s11 = scalar_lea.hbm %s10026_s0, 4096 }
 0x10a   : > { %s8530_s29 = scalar_lea.hbm %s9056_s17, 2048  ;;  %p8536_p7 = scmp.lt.u32.totalorder %s9056_s17, %s10026_s0 }
 0x10b   : > { %p8531_p13 = scmp.ne.s32.totalorder %s9056_s17, %s8530_s29  ;;  %p8537_p6 = scmp.lt.u32.totalorder %s8535_s11, %s8530_s29 }
 0x10c   : > { %p8539_p9 = scmp.lt.u32.totalorder %s8530_s29, %s9056_s17 }
 0x10d   : > { %p8533_p2 = pnand %p8532_p0, %p8531_p13  ;;  %p8538_p8 = por %p8537_p6, %p8536_p7 }
 0x10f   : > { %p8534_p4 = pneg %p8533_p2  ;;  %p8540_p1 = por %p8539_p9, %p8538_p8 }
 0x111   : > { %p8541_p3 = pnand %p8540_p1, %p8534_p4 }
 0x113   : > { %8544 = shalt.err (!%p8541_p3)
}
 0x114   : > { %s8545_s12 = scalar_lea.vmem %s9064_s30, 2048  ;;  %s8711_s3 = smov [#allocation3]  }
 0x115   : > { %p8546_p10 = scmp.ne.s32.totalorder %s9064_s30, %s8545_s12  ;;  %s8550_s28 = sshll.u32 %s8711_s3, 4  ;;  %s8551_s28 = int_to_ptr.vmem [resolvable:$false] %s8550_s28 }
 0x116   : > { %s8552_s20 = scalar_lea.vmem %s8551_s28, 4096  ;;  %p8553_p2 = scmp.lt.s32.totalorder %s9064_s30, %s8551_s28 }
 0x117   : > { %p8548_p11 = pnand %p8546_p10, %p8532_p0  ;;  %p8554_p7 = scmp.lt.s32.totalorder %s8552_s20, %s8545_s12 }
 0x119   : > { %p8549_p13 = pneg %p8548_p11  ;;  %p8555_p6 = por %p8554_p7, %p8553_p2 }
 0x11b   : > { %p8556_p8 = pnand %p8555_p6, %p8549_p13 }
 0x11d   : > { %8559 = shalt.err (!%p8556_p8)
}
 0x11e   : > { %s8712_s29 = smov 512   ;;  %s10028_s11 = smov 16  }
 0x11f   : > { %s10029_s26 = smov 256   ;;  %s6638_s14 = sshll.u32 %s9046_s24, 11 }
 0x120   : > { %7656 = dma.hbm_to_vmem [thread:$0]  (!%p9060_p12), %s9056_s17, 2048, %s9064_s30, %s439_s15, %s8712_s29, %s10029_s26, %s10028_s11  }
 0x121   : > { %s7280_s12 = sshll.u32 %s8690_s21, 15  ;;  %s466_s25 = scalar_lea.vmem [#allocation6], %s6638_s14 }
 0x122   : > { %s9103_s20 = scalar_lea.hbm %s9989_s1, %s7280_s12  ;;  %s474_s0 = sshll.u32 %s466_s25, 4  ;;  %s9105_s0 = int_to_ptr.vmem [resolvable:$true] %s474_s0 }
 0x123   : > { %s10030_s4 = sand.u32 1, %s8694_s22   ;;  %s8560_s6 = scalar_lea.hbm %s9103_s20, 32768 }
 0x124   : > { %s9109_s5 = scalar_lea.sflag [#allocation7], %s10030_s4  ;;  %p8561_p4 = scmp.ne.s32.totalorder %s9103_s20, %s8560_s6 }
 0x125   : > { %s8565_s30 = scalar_lea.hbm %s9989_s1, 65536  ;;  %p8566_p3 = scmp.lt.u32.totalorder %s9103_s20, %s9989_s1 }
 0x126   : > { %p8563_p9 = pnand %p8561_p4, %p8532_p0  ;;  %p8567_p10 = scmp.lt.u32.totalorder %s8565_s30, %s8560_s6 }
 0x127   : > { %p8569_p13 = scmp.lt.u32.totalorder %s8560_s6, %s9103_s20 }
 0x128   : > { %p8564_p1 = pneg %p8563_p9  ;;  %p8568_p11 = por %p8567_p10, %p8566_p3 }
 0x12a   : > { %p8570_p2 = por %p8569_p13, %p8568_p11 }
 0x12c   : > { %p8571_p7 = pnand %p8570_p2, %p8564_p1 }
 0x12e   : > { %8574 = shalt.err (!%p8571_p7)
}
 0x12f   : > { %s8575_s4 = scalar_lea.vmem %s9105_s0, 32768  ;;  %s8713_s25 = smov [#allocation6]  }
 0x130   : > { %p8576_p6 = scmp.ne.s32.totalorder %s9105_s0, %s8575_s4  ;;  %s8580_s26 = sshll.u32 %s8713_s25, 4  ;;  %s8581_s26 = int_to_ptr.vmem [resolvable:$false] %s8580_s26 }
 0x131   : > { %s8582_s14 = scalar_lea.vmem %s8581_s26, 65536  ;;  %p8583_p9 = scmp.lt.s32.totalorder %s9105_s0, %s8581_s26 }
 0x132   : > { %p8578_p8 = pnand %p8576_p6, %p8532_p0  ;;  %p8584_p3 = scmp.lt.s32.totalorder %s8582_s14, %s8575_s4 }
 0x134   : > { %p8579_p4 = pneg %p8578_p8  ;;  %p8585_p10 = por %p8584_p3, %p8583_p9 }
 0x136   : > { %p8586_p11 = pnand %p8585_p10, %p8579_p4 }
 0x138   : > { %8589 = shalt.err (!%p8586_p11)
}
 0x139   : > { %s8714_s6 = smov 32   ;;  %s10031_s12 = sld [smem:[#allocation31_spill]] }
 0x13a   : > { %7659 = dma.hbm_to_vmem [thread:$0]  (!%p9060_p12), %s9103_s20, 32768, %s9105_s0, %s9109_s5, %s8712_s29, %s8712_s29, %s8714_s6  }
 0x13f   : > { %p10032_p0 = scmp.ne.s32.totalorder %s10031_s12, 0 }
 0x140   : > { %s488_s3 = sand.u32 (!%p10032_p0), 1, %s8678_s18  }
 0x141   : > { %486 = sbr.rel (%p10032_p0) target bundleno = 2132 (0x854), region = 64  ;;  %s6643_s28 = sshll.u32 (!%p10032_p0), %s488_s3, 7 }
 0x142   : > { %s489_s24 = scalar_lea.sflag (!%p10032_p0), [#allocation4], %s488_s3  ;;  %s9140_s17 = scalar_lea.vmem (!%p10032_p0), [#allocation3], %s6643_s28 }
 0x148   : > { %8641 = dma.done.wait (%p9041_p5), %s489_s24, 2048  }
 0x149   : > { %8643 = vsyncadd (%p9041_p5), %s489_s24, 4294965248  ;;  %s497_s16 = sand.u32 1, %s8810_s23   ;;  %s6644_s30 = sshll.u32 %s488_s3, 11 }
 0x14a   : > { %s498_s0 = scalar_lea.sflag [#allocation7], %s497_s16  ;;  %s9147_s5 = scalar_lea.vmem [#allocation6], %s6644_s30 }
 0x14b   : > { %8645 = dma.done.wait (%p9041_p5), %s498_s0, 32768  }
 0x14c   : > { %8647 = vsyncadd (%p9041_p5), %s498_s0, 4294934528  ;;  %p10033_p12 = scmp.eq.s32.totalorder %s8810_s23, 0 }
 0x14e   : > { %8649 = dma.done.wait (%p10033_p12), [#allocation7], 128   ;;  %p10034_p1 = pmov %p10033_p12 }
 0x150   : > { %8651 = vsyncadd (%p10034_p1), [#allocation7], 4294967168  ;;  %p10035_p13 = pmov %p10034_p1 }
 0x151   : > { %p10036_p2 = pmov %p10034_p1 }
 0x152   : > { %8653 = dma.done.wait (%p10035_p13), [#allocation10], 32832  }
 0x153   : > { %8655 = vsyncadd (%p10036_p2), [#allocation10], 4294934464  ;;  %p10037_p7 = pmov %p10034_p1 }
 0x154   : > { %p10038_p6 = pmov %p10034_p1 }
 0x155   : > { %8657 = dma.done.wait (%p10037_p7), [#allocation13], 8224  }
 0x156   : > { %8659 = vsyncadd (%p10038_p6), [#allocation13], 4294959072  ;;  %p10039_p5 = pmov %p10034_p1 }
 0x157   : > { %p10040_p8 = pmov %p10034_p1 }
 0x158   : > { %8661 = dma.done.wait (%p10039_p5), [#allocation16], 2064  }
 0x159   : > { %8663 = vsyncadd (%p10040_p8), [#allocation16], 4294965232  ;;  %p10041_p4 = pmov %p10034_p1 }
 0x15a   : > { %p10042_p9 = pmov %p10034_p1 }
 0x15b   : > { %8665 = dma.done.wait (%p10041_p4), [#allocation19], 1040  }
 0x15c   : > { %8667 = vsyncadd (%p10042_p9), [#allocation19], 4294966256  ;;  %s10043_s2 = sld [smem:[#allocation30_spill]] }
 0x162   : > { %p6654_p3 = scmp.ne.s32.totalorder %s10043_s2, 0 }
 0x163   : > { %v8715_v0 = vmov (!%p6654_p3), 0.0  }
 0x164   : > { %584 = sbr.rel (%p6654_p3) target bundleno = 388 (0x184), region = 112  ;;  %585 = vst [vmem:[#allocation2] sm:$0xff] (!%p6654_p3), %v8715_v0  ;;  %586 = vst [vmem:[#allocation2 + $0x8] sm:$0xff] (!%p6654_p3), %v8715_v0 }
 0x165   : > { %587 = vst [vmem:[#allocation2 + $0x10] sm:$0xff] (!%p6654_p3), %v8715_v0  ;;  %588 = vst [vmem:[#allocation2 + $0x18] sm:$0xff] (!%p6654_p3), %v8715_v0 }
 0x166   : > { %589 = vst [vmem:[#allocation2 + $0x20] sm:$0xff] (!%p6654_p3), %v8715_v0  ;;  %590 = vst [vmem:[#allocation2 + $0x28] sm:$0xff] (!%p6654_p3), %v8715_v0 }
 0x167   : > { %591 = vst [vmem:[#allocation2 + $0x30] sm:$0xff] (!%p6654_p3), %v8715_v0  ;;  %592 = vst [vmem:[#allocation2 + $0x38] sm:$0xff] (!%p6654_p3), %v8715_v0 }
 0x168   : > { %593 = vst [vmem:[#allocation2 + $0x40] sm:$0xff] (!%p6654_p3), %v8715_v0  ;;  %594 = vst [vmem:[#allocation2 + $0x48] sm:$0xff] (!%p6654_p3), %v8715_v0 }
 0x169   : > { %595 = vst [vmem:[#allocation2 + $0x50] sm:$0xff] (!%p6654_p3), %v8715_v0  ;;  %596 = vst [vmem:[#allocation2 + $0x58] sm:$0xff] (!%p6654_p3), %v8715_v0 }
 0x16a   : > { %597 = vst [vmem:[#allocation2 + $0x60] sm:$0xff] (!%p6654_p3), %v8715_v0  ;;  %598 = vst [vmem:[#allocation2 + $0x68] sm:$0xff] (!%p6654_p3), %v8715_v0 }
 0x16b   : > { %599 = vst [vmem:[#allocation2 + $0x70] sm:$0xff] %v8715_v0  ;;  %600 = vst [vmem:[#allocation2 + $0x78] sm:$0xff] %v8715_v0 }
 0x16c   : > { %601 = vst [vmem:[#allocation2 + $0x80] sm:$0xff] %v8715_v0  ;;  %602 = vst [vmem:[#allocation2 + $0x88] sm:$0xff] %v8715_v0 }
 0x16d   : > { %603 = vst [vmem:[#allocation2 + $0x90] sm:$0xff] %v8715_v0  ;;  %604 = vst [vmem:[#allocation2 + $0x98] sm:$0xff] %v8715_v0 }
 0x16e   : > { %605 = vst [vmem:[#allocation2 + $0xa0] sm:$0xff] %v8715_v0  ;;  %606 = vst [vmem:[#allocation2 + $0xa8] sm:$0xff] %v8715_v0 }
 0x16f   : > { %607 = vst [vmem:[#allocation2 + $0xb0] sm:$0xff] %v8715_v0  ;;  %608 = vst [vmem:[#allocation2 + $0xb8] sm:$0xff] %v8715_v0 }
 0x170   : > { %609 = vst [vmem:[#allocation2 + $0xc0] sm:$0xff] %v8715_v0  ;;  %610 = vst [vmem:[#allocation2 + $0xc8] sm:$0xff] %v8715_v0 }
 0x171   : > { %611 = vst [vmem:[#allocation2 + $0xd0] sm:$0xff] %v8715_v0  ;;  %612 = vst [vmem:[#allocation2 + $0xd8] sm:$0xff] %v8715_v0 }
 0x172   : > { %613 = vst [vmem:[#allocation2 + $0xe0] sm:$0xff] %v8715_v0  ;;  %614 = vst [vmem:[#allocation2 + $0xe8] sm:$0xff] %v8715_v0 }
 0x173   : > { %615 = vst [vmem:[#allocation2 + $0xf0] sm:$0xff] %v8715_v0  ;;  %616 = vst [vmem:[#allocation2 + $0xf8] sm:$0xff] %v8715_v0 }
 0x174   : > { %617 = vst [vmem:[#allocation2 + $0x100] sm:$0xff] %v8715_v0  ;;  %618 = vst [vmem:[#allocation2 + $0x108] sm:$0xff] %v8715_v0 }
 0x175   : > { %619 = vst [vmem:[#allocation2 + $0x110] sm:$0xff] %v8715_v0  ;;  %620 = vst [vmem:[#allocation2 + $0x118] sm:$0xff] %v8715_v0 }
 0x176   : > { %621 = vst [vmem:[#allocation2 + $0x120] sm:$0xff] %v8715_v0  ;;  %622 = vst [vmem:[#allocation2 + $0x128] sm:$0xff] %v8715_v0 }
 0x177   : > { %623 = vst [vmem:[#allocation2 + $0x130] sm:$0xff] %v8715_v0  ;;  %624 = vst [vmem:[#allocation2 + $0x138] sm:$0xff] %v8715_v0 }
 0x178   : > { %625 = vst [vmem:[#allocation2 + $0x140] sm:$0xff] %v8715_v0  ;;  %626 = vst [vmem:[#allocation2 + $0x148] sm:$0xff] %v8715_v0 }
 0x179   : > { %627 = vst [vmem:[#allocation2 + $0x150] sm:$0xff] %v8715_v0  ;;  %628 = vst [vmem:[#allocation2 + $0x158] sm:$0xff] %v8715_v0 }
 0x17a   : > { %629 = vst [vmem:[#allocation2 + $0x160] sm:$0xff] %v8715_v0  ;;  %630 = vst [vmem:[#allocation2 + $0x168] sm:$0xff] %v8715_v0 }
 0x17b   : > { %631 = vst [vmem:[#allocation2 + $0x170] sm:$0xff] %v8715_v0  ;;  %632 = vst [vmem:[#allocation2 + $0x178] sm:$0xff] %v8715_v0 }
 0x17c   : > { %633 = vst [vmem:[#allocation2 + $0x180] sm:$0xff] %v8715_v0  ;;  %634 = vst [vmem:[#allocation2 + $0x188] sm:$0xff] %v8715_v0 }
 0x17d   : > { %635 = vst [vmem:[#allocation2 + $0x190] sm:$0xff] %v8715_v0  ;;  %636 = vst [vmem:[#allocation2 + $0x198] sm:$0xff] %v8715_v0 }
 0x17e   : > { %637 = vst [vmem:[#allocation2 + $0x1a0] sm:$0xff] %v8715_v0  ;;  %638 = vst [vmem:[#allocation2 + $0x1a8] sm:$0xff] %v8715_v0 }
 0x17f   : > { %639 = vst [vmem:[#allocation2 + $0x1b0] sm:$0xff] %v8715_v0  ;;  %640 = vst [vmem:[#allocation2 + $0x1b8] sm:$0xff] %v8715_v0 }
 0x180   : > { %641 = vst [vmem:[#allocation2 + $0x1c0] sm:$0xff] %v8715_v0  ;;  %642 = vst [vmem:[#allocation2 + $0x1c8] sm:$0xff] %v8715_v0 }
 0x181   : > { %643 = vst [vmem:[#allocation2 + $0x1d0] sm:$0xff] %v8715_v0  ;;  %644 = vst [vmem:[#allocation2 + $0x1d8] sm:$0xff] %v8715_v0 }
 0x182   : > { %645 = vst [vmem:[#allocation2 + $0x1e0] sm:$0xff] %v8715_v0  ;;  %646 = vst [vmem:[#allocation2 + $0x1e8] sm:$0xff] %v8715_v0 }
 0x183   : > { %647 = vst [vmem:[#allocation2 + $0x1f0] sm:$0xff] %v8715_v0  ;;  %648 = vst [vmem:[#allocation2 + $0x1f8] sm:$0xff] %v8715_v0 }
 0x184 PF: > { %v729_v1 = vld [vmem:[%s9147_s5] sm:$0xff]  ;;  %v730_v3 = vld [vmem:[%s9147_s5 + $0x8] sm:$0xff]  ;;  %s10044_s29 = sld [smem:[#allocation30_spill]] }
 0x185   : > { %v733_v2 = vld [vmem:[%s9147_s5 + $0x20] sm:$0xff]  ;;  %v734_v5 = vld [vmem:[%s9147_s5 + $0x28] sm:$0xff] }
 0x186   : > { %v6672_v4 = vcombine.high %v729_v1, %v733_v2  ;;  %v6671_v6 = vcombine.low %v729_v1, %v733_v2  ;;  %v737_v7 = vld [vmem:[%s9147_s5 + $0x40] sm:$0xff]  ;;  %v6674_v9 = vcombine.high %v730_v3, %v734_v5  ;;  %v6673_v10 = vcombine.low %v730_v3, %v734_v5  ;;  %v738_v12 = vld [vmem:[%s9147_s5 + $0x48] sm:$0xff] }
 0x187   : > { %v741_v8 = vld [vmem:[%s9147_s5 + $0x60] sm:$0xff]  ;;  %v742_v13 = vld [vmem:[%s9147_s5 + $0x68] sm:$0xff] }
 0x188   : > { %v6680_v11 = vcombine.high %v737_v7, %v741_v8  ;;  %v745_v14 = vld [vmem:[%s9147_s5 + $0x80] sm:$0xff]  ;;  %2345 = vmatprep.subr.bf16.mxu0 %v6672_v4  ;;  %v6682_v15 = vcombine.high %v738_v12, %v742_v13  ;;  %v746_v17 = vld [vmem:[%s9147_s5 + $0x88] sm:$0xff]  ;;  %2491 = vmatprep.subr.bf16.mxu1 %v6674_v9  ;;  %v6679_v19 = vcombine.low %v737_v7, %v741_v8 }
 0x189   : > { %v749_v16 = vld [vmem:[%s9147_s5 + $0xa0] sm:$0xff]  ;;  %v750_v18 = vld [vmem:[%s9147_s5 + $0xa8] sm:$0xff]  ;;  %2346 = vmatpush1.bf16.msra.mxu0 %v6671_v6  ;;  %2492 = vmatpush1.bf16.msra.mxu1 %v6673_v10  ;;  %v6681_v20 = vcombine.low %v738_v12, %v742_v13 }
 0x18a   : > { %2347 = vmatprep.subr.bf16.mxu0 %v6680_v11  ;;  %v6688_v21 = vcombine.high %v745_v14, %v749_v16  ;;  %2493 = vmatprep.subr.bf16.mxu1 %v6682_v15  ;;  %v6690_v22 = vcombine.high %v746_v17, %v750_v18  ;;  %v753_v23 = vld [vmem:[%s9147_s5 + $0xc0] sm:$0xff]  ;;  %v754_v25 = vld [vmem:[%s9147_s5 + $0xc8] sm:$0xff]  ;;  %v6687_v27 = vcombine.low %v745_v14, %v749_v16  ;;  %p6927_p10 = scmp.ne.s32.totalorder %s10044_s29, 1 }
 0x18b   : > { %v757_v24 = vld [vmem:[%s9147_s5 + $0xe0] sm:$0xff]  ;;  %v758_v26 = vld [vmem:[%s9147_s5 + $0xe8] sm:$0xff]  ;;  %v6689_v28 = vcombine.low %v746_v17, %v750_v18 }
 0x18c   : > { %v6696_v29 = vcombine.high %v753_v23, %v757_v24  ;;  %v6698_v30 = vcombine.high %v754_v25, %v758_v26  ;;  %v761_v31 = vld [vmem:[%s9147_s5 + $0x100] sm:$0xff]  ;;  %v762_v33 = vld [vmem:[%s9147_s5 + $0x108] sm:$0xff]  ;;  %v6695_v35 = vcombine.low %v753_v23, %v757_v24  ;;  %v6697_v36 = vcombine.low %v754_v25, %v758_v26 }
 0x18d   : > { %2348 = vmatpush1.bf16.msra.mxu0 %v6679_v19  ;;  %2494 = vmatpush1.bf16.msra.mxu1 %v6681_v20  ;;  %v765_v32 = vld [vmem:[%s9147_s5 + $0x120] sm:$0xff]  ;;  %v766_v34 = vld [vmem:[%s9147_s5 + $0x128] sm:$0xff] }
 0x18e   : > { %2349 = vmatprep.subr.bf16.mxu0 %v6688_v21  ;;  %2495 = vmatprep.subr.bf16.mxu1 %v6690_v22  ;;  %v6704_v37 = vcombine.high %v761_v31, %v765_v32  ;;  %v6706_v38 = vcombine.high %v762_v33, %v766_v34  ;;  %v769_v39 = vld [vmem:[%s9147_s5 + $0x140] sm:$0xff]  ;;  %v770_v41 = vld [vmem:[%s9147_s5 + $0x148] sm:$0xff]  ;;  %v6703_v43 = vcombine.low %v761_v31, %v765_v32 }
 0x18f   : > { %v773_v40 = vld [vmem:[%s9147_s5 + $0x160] sm:$0xff]  ;;  %v774_v42 = vld [vmem:[%s9147_s5 + $0x168] sm:$0xff]  ;;  %v6705_v44 = vcombine.low %v762_v33, %v766_v34 }
 0x190   : > { %v6712_v45 = vcombine.high %v769_v39, %v773_v40  ;;  %v6714_v46 = vcombine.high %v770_v41, %v774_v42  ;;  %v777_v47 = vld [vmem:[%s9147_s5 + $0x180] sm:$0xff]  ;;  %v778_v49 = vld [vmem:[%s9147_s5 + $0x188] sm:$0xff]  ;;  %v6711_v51 = vcombine.low %v769_v39, %v773_v40  ;;  %v6713_v52 = vcombine.low %v770_v41, %v774_v42 }
 0x191   : > { %2350 = vmatpush1.bf16.msra.mxu0 %v6687_v27  ;;  %2496 = vmatpush1.bf16.msra.mxu1 %v6689_v28  ;;  %v781_v48 = vld [vmem:[%s9147_s5 + $0x1a0] sm:$0xff]  ;;  %v782_v50 = vld [vmem:[%s9147_s5 + $0x1a8] sm:$0xff] }
 0x192   : > { %2351 = vmatprep.subr.bf16.mxu0 %v6696_v29  ;;  %2497 = vmatprep.subr.bf16.mxu1 %v6698_v30  ;;  %v6720_v53 = vcombine.high %v777_v47, %v781_v48  ;;  %v6722_v54 = vcombine.high %v778_v49, %v782_v50  ;;  %v785_v55 = vld [vmem:[%s9147_s5 + $0x1c0] sm:$0xff]  ;;  %v786_v58 = vld [vmem:[%s9147_s5 + $0x1c8] sm:$0xff]  ;;  %v6719_v60 = vcombine.low %v777_v47, %v781_v48 }
 0x193   : > { %v789_v56 = vld [vmem:[%s9147_s5 + $0x1e0] sm:$0xff]  ;;  %v790_v59 = vld [vmem:[%s9147_s5 + $0x1e8] sm:$0xff]  ;;  %v6721_v61 = vcombine.low %v778_v49, %v782_v50 }
 0x194   : > { %v9269_v57 = vld [vmem:[%s9140_s17 + $0x4] ss:$16 sps:$4 sm:$0xff]   ;;  %v6728_v62 = vcombine.high %v785_v55, %v789_v56  ;;  %v6730_v63 = vcombine.high %v786_v58, %v790_v59  ;;  %v794_v2 = vld [vmem:[%s9147_s5 + $0x208] sm:$0xff]  ;;  %v6727_v4 = vcombine.low %v785_v55, %v789_v56  ;;  %v6729_v5 = vcombine.low %v786_v58, %v790_v59 }
 0x195   : > { %2352 = vmatpush1.bf16.msra.mxu0 %v6695_v35  ;;  %2498 = vmatpush1.bf16.msra.mxu1 %v6697_v36  ;;  %v793_v0 = vld [vmem:[%s9147_s5 + $0x200] sm:$0xff]  ;;  %v798_v3 = vld [vmem:[%s9147_s5 + $0x228] sm:$0xff] }
 0x196   : > { %2353 = vmatprep.subr.bf16.mxu0 %v6704_v37  ;;  %2499 = vmatprep.subr.bf16.mxu1 %v6706_v38  ;;  %v797_v1 = vld [vmem:[%s9147_s5 + $0x220] sm:$0xff]  ;;  %v6738_v7 = vcombine.high %v794_v2, %v798_v3  ;;  %v802_v10 = vld [vmem:[%s9147_s5 + $0x248] sm:$0xff]  ;;  %v6737_v13 = vcombine.low %v794_v2, %v798_v3 }
 0x197   : > { %2377 = vmatprep.mubr.bf16.mxu0 %v9269_v57  ;;  %2523 = vmatprep.mubr.bf16.mxu1 %v9269_v57  ;;  %v6736_v6 = vcombine.high %v793_v0, %v797_v1  ;;  %v801_v8 = vld [vmem:[%s9147_s5 + $0x240] sm:$0xff]  ;;  %v806_v11 = vld [vmem:[%s9147_s5 + $0x268] sm:$0xff]  ;;  %v6735_v12 = vcombine.low %v793_v0, %v797_v1 }
 0x198   : > { %v805_v9 = vld [vmem:[%s9147_s5 + $0x260] sm:$0xff]  ;;  %v6746_v15 = vcombine.high %v802_v10, %v806_v11  ;;  %v810_v18 = vld [vmem:[%s9147_s5 + $0x288] sm:$0xff]  ;;  %v6745_v21 = vcombine.low %v802_v10, %v806_v11 }
 0x199   : > { %2354 = vmatpush1.bf16.msra.mxu0 %v6703_v43  ;;  %2500 = vmatpush1.bf16.msra.mxu1 %v6705_v44  ;;  %v6744_v14 = vcombine.high %v801_v8, %v805_v9  ;;  %v809_v16 = vld [vmem:[%s9147_s5 + $0x280] sm:$0xff]  ;;  %v814_v19 = vld [vmem:[%s9147_s5 + $0x2a8] sm:$0xff]  ;;  %v6743_v20 = vcombine.low %v801_v8, %v805_v9 }
 0x19a   : > { %2355 = vmatprep.subr.bf16.mxu0 %v6712_v45  ;;  %2501 = vmatprep.subr.bf16.mxu1 %v6714_v46  ;;  %v813_v17 = vld [vmem:[%s9147_s5 + $0x2a0] sm:$0xff]  ;;  %v6754_v23 = vcombine.high %v810_v18, %v814_v19  ;;  %v818_v26 = vld [vmem:[%s9147_s5 + $0x2c8] sm:$0xff]  ;;  %v6753_v29 = vcombine.low %v810_v18, %v814_v19 }
 0x19b   : > { %v6752_v22 = vcombine.high %v809_v16, %v813_v17  ;;  %v817_v24 = vld [vmem:[%s9147_s5 + $0x2c0] sm:$0xff]  ;;  %v822_v27 = vld [vmem:[%s9147_s5 + $0x2e8] sm:$0xff]  ;;  %v6751_v28 = vcombine.low %v809_v16, %v813_v17 }
 0x19c   : > { %v821_v25 = vld [vmem:[%s9147_s5 + $0x2e0] sm:$0xff]  ;;  %v6762_v31 = vcombine.high %v818_v26, %v822_v27  ;;  %v826_v34 = vld [vmem:[%s9147_s5 + $0x308] sm:$0xff]  ;;  %v6761_v37 = vcombine.low %v818_v26, %v822_v27 }
 0x19d   : > { %2356 = vmatpush1.bf16.msra.mxu0 %v6711_v51  ;;  %2502 = vmatpush1.bf16.msra.mxu1 %v6713_v52  ;;  %v6760_v30 = vcombine.high %v817_v24, %v821_v25  ;;  %v825_v32 = vld [vmem:[%s9147_s5 + $0x300] sm:$0xff]  ;;  %v830_v35 = vld [vmem:[%s9147_s5 + $0x328] sm:$0xff]  ;;  %v6759_v36 = vcombine.low %v817_v24, %v821_v25 }
 0x19e   : > { %2357 = vmatprep.subr.bf16.mxu0 %v6720_v53  ;;  %2503 = vmatprep.subr.bf16.mxu1 %v6722_v54  ;;  %v829_v33 = vld [vmem:[%s9147_s5 + $0x320] sm:$0xff]  ;;  %v6770_v39 = vcombine.high %v826_v34, %v830_v35  ;;  %v834_v42 = vld [vmem:[%s9147_s5 + $0x348] sm:$0xff]  ;;  %v6769_v45 = vcombine.low %v826_v34, %v830_v35 }
 0x19f   : > { %v6768_v38 = vcombine.high %v825_v32, %v829_v33  ;;  %v833_v40 = vld [vmem:[%s9147_s5 + $0x340] sm:$0xff]  ;;  %v838_v43 = vld [vmem:[%s9147_s5 + $0x368] sm:$0xff]  ;;  %v6767_v44 = vcombine.low %v825_v32, %v829_v33 }
 0x1a0   : > { %v837_v41 = vld [vmem:[%s9147_s5 + $0x360] sm:$0xff]  ;;  %v6778_v47 = vcombine.high %v834_v42, %v838_v43  ;;  %v842_v50 = vld [vmem:[%s9147_s5 + $0x388] sm:$0xff]  ;;  %v6777_v53 = vcombine.low %v834_v42, %v838_v43 }
 0x1a1   : > { %2358 = vmatpush1.bf16.msra.mxu0 %v6719_v60  ;;  %2504 = vmatpush1.bf16.msra.mxu1 %v6721_v61  ;;  %v6776_v46 = vcombine.high %v833_v40, %v837_v41  ;;  %v841_v48 = vld [vmem:[%s9147_s5 + $0x380] sm:$0xff]  ;;  %v846_v51 = vld [vmem:[%s9147_s5 + $0x3a8] sm:$0xff]  ;;  %v6775_v52 = vcombine.low %v833_v40, %v837_v41 }
 0x1a2   : > { %2359 = vmatprep.subr.bf16.mxu0 %v6728_v62  ;;  %2505 = vmatprep.subr.bf16.mxu1 %v6730_v63  ;;  %v845_v49 = vld [vmem:[%s9147_s5 + $0x3a0] sm:$0xff]  ;;  %v6786_v55 = vcombine.high %v842_v50, %v846_v51  ;;  %v850_v59 = vld [vmem:[%s9147_s5 + $0x3c8] sm:$0xff]  ;;  %v6785_v62 = vcombine.low %v842_v50, %v846_v51 }
 0x1a3   : > { %v6784_v54 = vcombine.high %v841_v48, %v845_v49  ;;  %v849_v56 = vld [vmem:[%s9147_s5 + $0x3c0] sm:$0xff]  ;;  %v854_v60 = vld [vmem:[%s9147_s5 + $0x3e8] sm:$0xff]  ;;  %v6783_v61 = vcombine.low %v841_v48, %v845_v49 }
 0x1a4   : > { %v853_v58 = vld [vmem:[%s9147_s5 + $0x3e0] sm:$0xff]  ;;  %v6794_v0 = vcombine.high %v850_v59, %v854_v60  ;;  %v858_v3 = vld [vmem:[%s9147_s5 + $0x408] sm:$0xff] }
 0x1a5   : > { %2360 = vmatpush1.bf16.msra.mxu0 %v6727_v4  ;;  %2506 = vmatpush1.bf16.msra.mxu1 %v6729_v5  ;;  %v6792_v63 = vcombine.high %v849_v56, %v853_v58  ;;  %v857_v1 = vld [vmem:[%s9147_s5 + $0x400] sm:$0xff]  ;;  %v862_v4 = vld [vmem:[%s9147_s5 + $0x428] sm:$0xff]  ;;  %v6791_v5 = vcombine.low %v849_v56, %v853_v58 }
 0x1a6   : > { %2361 = vmatprep.subr.bf16.mxu0 %v6736_v6  ;;  %2507 = vmatprep.subr.bf16.mxu1 %v6738_v7  ;;  %v861_v2 = vld [vmem:[%s9147_s5 + $0x420] sm:$0xff]  ;;  %v6793_v6 = vcombine.low %v850_v59, %v854_v60  ;;  %v6802_v8 = vcombine.high %v858_v3, %v862_v4  ;;  %v894_v40 = vld [vmem:[%s9147_s5 + $0x528] sm:$0xff] }
 0x1a7   : > { %v6800_v7 = vcombine.high %v857_v1, %v861_v2  ;;  %v865_v9 = vld [vmem:[%s9147_s5 + $0x440] sm:$0xff]  ;;  %v902_v48 = vld [vmem:[%s9147_s5 + $0x568] sm:$0xff] }
 0x1a8   : > { %v869_v10 = vld [vmem:[%s9147_s5 + $0x460] sm:$0xff]  ;;  %v906_v58 = vld [vmem:[%s9147_s5 + $0x588] sm:$0xff] }
 0x1a9   : > { %2362 = vmatpush1.bf16.msra.mxu0 %v6735_v12  ;;  %2508 = vmatpush1.bf16.msra.mxu1 %v6737_v13  ;;  %v9314_v11 = vld [vmem:[%s9140_s17] ss:$16 sps:$4 sm:$0xff]   ;;  %v866_v12 = vld [vmem:[%s9147_s5 + $0x448] sm:$0xff]  ;;  %v6808_v16 = vcombine.high %v865_v9, %v869_v10  ;;  %v9357_v56 = vld [vmem:[%s9140_s17 + $0x64] ss:$16 sps:$4 sm:$0xff]  }
 0x1aa   : > { %2363 = vmatprep.subr.bf16.mxu0 %v6744_v14  ;;  %2509 = vmatprep.subr.bf16.mxu1 %v6746_v15  ;;  %v870_v13 = vld [vmem:[%s9147_s5 + $0x468] sm:$0xff]  ;;  %v6799_v14 = vcombine.low %v857_v1, %v861_v2  ;;  %v6801_v15 = vcombine.low %v858_v3, %v862_v4  ;;  %v873_v18 = vld [vmem:[%s9147_s5 + $0x480] sm:$0xff] }
 0x1ab   : > { %v6810_v17 = vcombine.high %v866_v12, %v870_v13  ;;  %v877_v19 = vld [vmem:[%s9147_s5 + $0x4a0] sm:$0xff]  ;;  %v6809_v24 = vcombine.low %v866_v12, %v870_v13  ;;  %v910_v59 = vld [vmem:[%s9147_s5 + $0x5a8] sm:$0xff] }
 0x1ac   : > { %v6816_v25 = vcombine.high %v873_v18, %v877_v19  ;;  %v881_v27 = vld [vmem:[%s9147_s5 + $0x4c0] sm:$0xff]  ;;  %v6815_v32 = vcombine.low %v873_v18, %v877_v19  ;;  %v914_v2 = vld [vmem:[%s9147_s5 + $0x5c8] sm:$0xff] }
 0x1ad   : > { %2364 = vmatpush1.bf16.msra.mxu0 %v6743_v20  ;;  %2510 = vmatpush1.bf16.msra.mxu1 %v6745_v21  ;;  %v9321_v20 = vld [vmem:[%s9140_s17 + $0x24] ss:$16 sps:$4 sm:$0xff]   ;;  %v874_v21 = vld [vmem:[%s9147_s5 + $0x488] sm:$0xff]  ;;  %v9352_v49 = vld [vmem:[%s9140_s17 + $0x40] ss:$16 sps:$4 sm:$0xff]  }
 0x1ae   : > { %2365 = vmatprep.subr.bf16.mxu0 %v6752_v22  ;;  %2511 = vmatprep.subr.bf16.mxu1 %v6754_v23  ;;  %v878_v22 = vld [vmem:[%s9147_s5 + $0x4a8] sm:$0xff]  ;;  %v6807_v23 = vcombine.low %v865_v9, %v869_v10  ;;  %v917_v1 = vld [vmem:[%s9147_s5 + $0x5e0] sm:$0xff] }
 0x1af   : > { %v6818_v26 = vcombine.high %v874_v21, %v878_v22  ;;  %v6817_v33 = vcombine.low %v874_v21, %v878_v22  ;;  %v918_v3 = vld [vmem:[%s9147_s5 + $0x5e8] sm:$0xff]  ;;  %v9370_v4 = vld [vmem:[%s9140_s17 + $0x60] ss:$16 sps:$4 sm:$0xff]  }
 0x1b0   : > { %v921_v9 = vld [vmem:[%s9147_s5 + $0x600] sm:$0xff]  ;;  %v9375_v12 = vld [vmem:[%s9140_s17 + $0xc] ss:$16 sps:$4 sm:$0xff]  }
 0x1b1   : > { %2366 = vmatpush1.bf16.msra.mxu0 %v6751_v28  ;;  %2512 = vmatpush1.bf16.msra.mxu1 %v6753_v29  ;;  %v885_v28 = vld [vmem:[%s9147_s5 + $0x4e0] sm:$0xff]  ;;  %v882_v29 = vld [vmem:[%s9147_s5 + $0x4c8] sm:$0xff] }
 0x1b2   : > { %2367 = vmatprep.subr.bf16.mxu0 %v6760_v30  ;;  %2513 = vmatprep.subr.bf16.mxu1 %v6762_v31  ;;  %v886_v30 = vld [vmem:[%s9147_s5 + $0x4e8] sm:$0xff]  ;;  %v9334_v31 = vld [vmem:[%s9140_s17 + $0x20] ss:$16 sps:$4 sm:$0xff]   ;;  %v6824_v34 = vcombine.high %v881_v27, %v885_v28  ;;  %v6823_v41 = vcombine.low %v881_v27, %v885_v28 }
 0x1b3   : > { %v6826_v35 = vcombine.high %v882_v29, %v886_v30  ;;  %v6825_v42 = vcombine.low %v882_v29, %v886_v30  ;;  %v925_v10 = vld [vmem:[%s9147_s5 + $0x620] sm:$0xff]  ;;  %v922_v13 = vld [vmem:[%s9147_s5 + $0x608] sm:$0xff] }
 0x1b4   : > { %v929_v19 = vld [vmem:[%s9147_s5 + $0x640] sm:$0xff]  ;;  %v930_v22 = vld [vmem:[%s9147_s5 + $0x648] sm:$0xff] }
 0x1b5   : > { %2368 = vmatpush1.bf16.msra.mxu0 %v6759_v36  ;;  %2514 = vmatpush1.bf16.msra.mxu1 %v6761_v37  ;;  %v889_v36 = vld [vmem:[%s9147_s5 + $0x500] sm:$0xff]  ;;  %v938_v30 = vld [vmem:[%s9147_s5 + $0x688] sm:$0xff] }
 0x1b6   : > { %2369 = vmatprep.subr.bf16.mxu0 %v6768_v38  ;;  %2515 = vmatprep.subr.bf16.mxu1 %v6770_v39  ;;  %v893_v37 = vld [vmem:[%s9147_s5 + $0x520] sm:$0xff]  ;;  %v890_v39 = vld [vmem:[%s9147_s5 + $0x508] sm:$0xff] }
 0x1b7   : > { %v9339_v38 = vld [vmem:[%s9140_s17 + $0x44] ss:$16 sps:$4 sm:$0xff]   ;;  %v6832_v43 = vcombine.high %v889_v36, %v893_v37  ;;  %v6831_v50 = vcombine.low %v889_v36, %v893_v37  ;;  %v6833_v51 = vcombine.low %v890_v39, %v894_v40 }
 0x1b8   : > { %v933_v21 = vld [vmem:[%s9147_s5 + $0x660] sm:$0xff] }
 0x1b9   : > { %2370 = vmatpush1.bf16.msra.mxu0 %v6767_v44  ;;  %2516 = vmatpush1.bf16.msra.mxu1 %v6769_v45  ;;  %v6834_v44 = vcombine.high %v890_v39, %v894_v40  ;;  %v897_v45 = vld [vmem:[%s9147_s5 + $0x540] sm:$0xff]  ;;  %v946_v40 = vld [vmem:[%s9147_s5 + $0x6c8] sm:$0xff] }
 0x1ba   : > { %2371 = vmatprep.subr.bf16.mxu0 %v6776_v46  ;;  %2517 = vmatprep.subr.bf16.mxu1 %v6778_v47  ;;  %v901_v46 = vld [vmem:[%s9147_s5 + $0x560] sm:$0xff]  ;;  %v898_v47 = vld [vmem:[%s9147_s5 + $0x548] sm:$0xff] }
 0x1bb   : > { %v6839_v60 = vcombine.low %v897_v45, %v901_v46  ;;  %v937_v28 = vld [vmem:[%s9147_s5 + $0x680] sm:$0xff] }
 0x1bc   : > { %v941_v29 = vld [vmem:[%s9147_s5 + $0x6a0] sm:$0xff] }
 0x1bd   : > { %2372 = vmatpush1.bf16.msra.mxu0 %v6775_v52  ;;  %2518 = vmatpush1.bf16.msra.mxu1 %v6777_v53  ;;  %v6840_v52 = vcombine.high %v897_v45, %v901_v46  ;;  %v6842_v53 = vcombine.high %v898_v47, %v902_v48  ;;  %v945_v37 = vld [vmem:[%s9147_s5 + $0x6c0] sm:$0xff] }
 0x1be   : > { %2373 = vmatprep.subr.bf16.mxu0 %v6784_v54  ;;  %2519 = vmatprep.subr.bf16.mxu1 %v6786_v55  ;;  %v905_v54 = vld [vmem:[%s9147_s5 + $0x580] sm:$0xff] }
 0x1bf   : > { %v909_v55 = vld [vmem:[%s9147_s5 + $0x5a0] sm:$0xff] }
 0x1c0   : > { %v949_v39 = vld [vmem:[%s9147_s5 + $0x6e0] sm:$0xff] }
 0x1c1   : > { %2374 = vmatpush1.bf16.msra.mxu0 %v6783_v61  ;;  %2520 = vmatpush1.bf16.msra.mxu1 %v6785_v62  ;;  %v6841_v61 = vcombine.low %v898_v47, %v902_v48  ;;  %v6848_v62 = vcombine.high %v905_v54, %v909_v55  ;;  %v953_v46 = vld [vmem:[%s9147_s5 + $0x700] sm:$0xff]  ;;  %v954_v48 = vld [vmem:[%s9147_s5 + $0x708] sm:$0xff] }
 0x1c2   : > { %2375 = vmatprep.subr.bf16.mxu0 %v6792_v63  ;;  %2521 = vmatprep.subr.bf16.mxu1 %v6794_v0  ;;  %v6850_v63 = vcombine.high %v906_v58, %v910_v59  ;;  %v913_v0 = vld [vmem:[%s9147_s5 + $0x5c0] sm:$0xff] }
 0x1c3   : > { %v957_v47 = vld [vmem:[%s9147_s5 + $0x720] sm:$0xff] }
 0x1c5   : > { %2376 = vmatpush1.bf16.msra.mxu0 %v6791_v5  ;;  %2522 = vmatpush1.bf16.msra.mxu1 %v6793_v6  ;;  %v6847_v5 = vcombine.low %v905_v54, %v909_v55  ;;  %v6849_v6 = vcombine.low %v906_v58, %v910_v59  ;;  %v961_v55 = vld [vmem:[%s9147_s5 + $0x740] sm:$0xff]  ;;  %v962_v59 = vld [vmem:[%s9147_s5 + $0x748] sm:$0xff] }
 0x1c6   : > { %2418 = vmatprep.subr.bf16.mxu0 %v6800_v7  ;;  %2564 = vmatprep.subr.bf16.mxu1 %v6802_v8  ;;  %v6856_v7 = vcombine.high %v913_v0, %v917_v1  ;;  %v6858_v8 = vcombine.high %v914_v2, %v918_v3  ;;  %v965_v58 = vld [vmem:[%s9147_s5 + $0x760] sm:$0xff] }
 0x1c8   : > { %2378 = vmatmul.mubr.bf16.vlgmr.msra.gmra.mrb[0].mxu0 %v9314_v11  ;;  %2524 = vmatmul.mubr.bf16.vlgmr.msra.gmra.mrb[0].mxu1 %v9314_v11 }
 0x1c9   : > { %2419 = vmatpush1.bf16.msra.mxu0 %v6799_v14  ;;  %2565 = vmatpush1.bf16.msra.mxu1 %v6801_v15  ;;  %v926_v14 = vld [vmem:[%s9147_s5 + $0x628] sm:$0xff]  ;;  %v6855_v15 = vcombine.low %v913_v0, %v917_v1  ;;  %v969_v1 = vld [vmem:[%s9147_s5 + $0x780] sm:$0xff] }
 0x1ca   : > { %2420 = vmatprep.subr.bf16.mxu0 %v6808_v16  ;;  %2566 = vmatprep.subr.bf16.mxu1 %v6810_v17  ;;  %v6857_v16 = vcombine.low %v914_v2, %v918_v3  ;;  %v6864_v17 = vcombine.high %v921_v9, %v925_v10  ;;  %v6866_v18 = vcombine.high %v922_v13, %v926_v14  ;;  %v973_v2 = vld [vmem:[%s9147_s5 + $0x7a0] sm:$0xff]  ;;  %v970_v3 = vld [vmem:[%s9147_s5 + $0x788] sm:$0xff] }
 0x1cb   : > { %2387 = vmatprep.mubr.bf16.mxu0 %v9321_v20  ;;  %2533 = vmatprep.mubr.bf16.mxu1 %v9321_v20 }
 0x1cd   : > { %2421 = vmatpush1.bf16.msra.mxu0 %v6807_v23  ;;  %2567 = vmatpush1.bf16.msra.mxu1 %v6809_v24  ;;  %v934_v23 = vld [vmem:[%s9147_s5 + $0x668] sm:$0xff]  ;;  %v6863_v24 = vcombine.low %v921_v9, %v925_v10  ;;  %v977_v10 = vld [vmem:[%s9147_s5 + $0x7c0] sm:$0xff] }
 0x1ce   : > { %2422 = vmatprep.subr.bf16.mxu0 %v6816_v25  ;;  %2568 = vmatprep.subr.bf16.mxu1 %v6818_v26  ;;  %v6865_v25 = vcombine.low %v922_v13, %v926_v14  ;;  %v6872_v26 = vcombine.high %v929_v19, %v933_v21  ;;  %v6874_v27 = vcombine.high %v930_v22, %v934_v23  ;;  %v981_v13 = vld [vmem:[%s9147_s5 + $0x7e0] sm:$0xff]  ;;  %v978_v14 = vld [vmem:[%s9147_s5 + $0x7c8] sm:$0xff] }
 0x1d0   : > { %2388 = vmatmul.mubr.bf16.gmra.mrb[4].mxu0 %v9334_v31  ;;  %2534 = vmatmul.mubr.bf16.gmra.mrb[4].mxu1 %v9334_v31 }
 0x1d1   : > { %2423 = vmatpush1.bf16.msra.mxu0 %v6815_v32  ;;  %2569 = vmatpush1.bf16.msra.mxu1 %v6817_v33  ;;  %v942_v32 = vld [vmem:[%s9147_s5 + $0x6a8] sm:$0xff]  ;;  %v6871_v33 = vcombine.low %v929_v19, %v933_v21  ;;  %v731_v21 = vld [vmem:[%s9147_s5 + $0x10] sm:$0xff] }
 0x1d2   : > { %2424 = vmatprep.subr.bf16.mxu0 %v6824_v34  ;;  %2570 = vmatprep.subr.bf16.mxu1 %v6826_v35  ;;  %v6873_v34 = vcombine.low %v930_v22, %v934_v23  ;;  %v6880_v35 = vcombine.high %v937_v28, %v941_v29  ;;  %v6882_v36 = vcombine.high %v938_v30, %v942_v32  ;;  %v735_v22 = vld [vmem:[%s9147_s5 + $0x30] sm:$0xff]  ;;  %v732_v23 = vld [vmem:[%s9147_s5 + $0x18] sm:$0xff] }
 0x1d3   : > { %2397 = vmatprep.mubr.bf16.mxu0 %v9339_v38  ;;  %2543 = vmatprep.mubr.bf16.mxu1 %v9339_v38 }
 0x1d5   : > { %2425 = vmatpush1.bf16.msra.mxu0 %v6823_v41  ;;  %2571 = vmatpush1.bf16.msra.mxu1 %v6825_v42  ;;  %v950_v41 = vld [vmem:[%s9147_s5 + $0x6e8] sm:$0xff]  ;;  %v6879_v42 = vcombine.low %v937_v28, %v941_v29  ;;  %v739_v29 = vld [vmem:[%s9147_s5 + $0x50] sm:$0xff] }
 0x1d6   : > { %2426 = vmatprep.subr.bf16.mxu0 %v6832_v43  ;;  %2572 = vmatprep.subr.bf16.mxu1 %v6834_v44  ;;  %v6881_v43 = vcombine.low %v938_v30, %v942_v32  ;;  %v6888_v44 = vcombine.high %v945_v37, %v949_v39  ;;  %v6890_v45 = vcombine.high %v946_v40, %v950_v41  ;;  %v743_v30 = vld [vmem:[%s9147_s5 + $0x70] sm:$0xff]  ;;  %v9418_v32 = vld [vmem:[%s9140_s17 + $0x8] ss:$16 sps:$4 sm:$0xff]  }
 0x1d8   : > { %2398 = vmatmul.mubr.bf16.gmra.mrb[8].mxu0 %v9352_v49  ;;  %2544 = vmatmul.mubr.bf16.gmra.mrb[8].mxu1 %v9352_v49 }
 0x1d9   : > { %2427 = vmatpush1.bf16.msra.mxu0 %v6831_v50  ;;  %2573 = vmatpush1.bf16.msra.mxu1 %v6833_v51  ;;  %v958_v50 = vld [vmem:[%s9147_s5 + $0x728] sm:$0xff]  ;;  %v6887_v51 = vcombine.low %v945_v37, %v949_v39  ;;  %v6684_v37 = vcombine.high %v739_v29, %v743_v30 }
 0x1da   : > { %2428 = vmatprep.subr.bf16.mxu0 %v6840_v52  ;;  %2574 = vmatprep.subr.bf16.mxu1 %v6842_v53  ;;  %v6889_v52 = vcombine.low %v946_v40, %v950_v41  ;;  %v6896_v53 = vcombine.high %v953_v46, %v957_v47  ;;  %v6898_v54 = vcombine.high %v954_v48, %v958_v50  ;;  %v9423_v40 = vld [vmem:[%s9140_s17 + $0x2c] ss:$16 sps:$4 sm:$0xff]   ;;  %v747_v41 = vld [vmem:[%s9147_s5 + $0x90] sm:$0xff] }
 0x1db   : > { %2407 = vmatprep.mubr.bf16.mxu0 %v9357_v56  ;;  %2553 = vmatprep.mubr.bf16.mxu1 %v9357_v56 }
 0x1dd   : > { %2429 = vmatpush1.bf16.msra.mxu0 %v6839_v60  ;;  %2575 = vmatpush1.bf16.msra.mxu1 %v6841_v61  ;;  %v966_v60 = vld [vmem:[%s9147_s5 + $0x768] sm:$0xff]  ;;  %v6895_v61 = vcombine.low %v953_v46, %v957_v47 }
 0x1de   : > { %2430 = vmatprep.subr.bf16.mxu0 %v6848_v62  ;;  %2576 = vmatprep.subr.bf16.mxu1 %v6850_v63  ;;  %v6897_v62 = vcombine.low %v954_v48, %v958_v50  ;;  %v6904_v63 = vcombine.high %v961_v55, %v965_v58  ;;  %v6906_v0 = vcombine.high %v962_v59, %v966_v60  ;;  %v755_v50 = vld [vmem:[%s9147_s5 + $0xd0] sm:$0xff] }
 0x1e0   : > { %2408 = vmatmul.mubr.bf16.gmra.mrb[12].mxu0 %v9370_v4  ;;  %2554 = vmatmul.mubr.bf16.gmra.mrb[12].mxu1 %v9370_v4 }
 0x1e1   : > { %2431 = vmatpush1.bf16.msra.mxu0 %v6847_v5  ;;  %2577 = vmatpush1.bf16.msra.mxu1 %v6849_v6  ;;  %v974_v5 = vld [vmem:[%s9147_s5 + $0x7a8] sm:$0xff]  ;;  %v6903_v6 = vcombine.low %v961_v55, %v965_v58 }
 0x1e2   : > { %2432 = vmatprep.subr.bf16.mxu0 %v6856_v7  ;;  %2578 = vmatprep.subr.bf16.mxu1 %v6858_v8  ;;  %v6905_v7 = vcombine.low %v962_v59, %v966_v60  ;;  %v6912_v8 = vcombine.high %v969_v1, %v973_v2  ;;  %v6914_v9 = vcombine.high %v970_v3, %v974_v5 }
 0x1e3   : > { %2450 = vmatprep.mubr.bf16.mxu0 %v9375_v12  ;;  %2596 = vmatprep.mubr.bf16.mxu1 %v9375_v12 }
 0x1e5   : > { %2433 = vmatpush1.bf16.msra.mxu0 %v6855_v15  ;;  %2579 = vmatpush1.bf16.msra.mxu1 %v6857_v16  ;;  %v982_v15 = vld [vmem:[%s9147_s5 + $0x7e8] sm:$0xff]  ;;  %v6911_v16 = vcombine.low %v969_v1, %v973_v2  ;;  %v768_v1 = vld [vmem:[%s9147_s5 + $0x138] sm:$0xff] }
 0x1e6   : > { %2434 = vmatprep.subr.bf16.mxu0 %v6864_v17  ;;  %2580 = vmatprep.subr.bf16.mxu1 %v6866_v18  ;;  %v6913_v17 = vcombine.low %v970_v3, %v974_v5  ;;  %v6920_v18 = vcombine.high %v977_v10, %v981_v13  ;;  %v6922_v19 = vcombine.high %v978_v14, %v982_v15 }
 0x1e9   : > { %2435 = vmatpush1.bf16.msra.mxu0 %v6863_v24  ;;  %2581 = vmatpush1.bf16.msra.mxu1 %v6865_v25  ;;  %v736_v24 = vld [vmem:[%s9147_s5 + $0x38] sm:$0xff]  ;;  %v6919_v25 = vcombine.low %v977_v10, %v981_v13 }
 0x1ea   : > { %2436 = vmatprep.subr.bf16.mxu0 %v6872_v26  ;;  %2582 = vmatprep.subr.bf16.mxu1 %v6874_v27  ;;  %v6921_v26 = vcombine.low %v978_v14, %v982_v15  ;;  %v6676_v27 = vcombine.high %v731_v21, %v735_v22  ;;  %v6678_v28 = vcombine.high %v732_v23, %v736_v24  ;;  %v772_v10 = vld [vmem:[%s9147_s5 + $0x158] sm:$0xff] }
 0x1eb   : > { %v776_v13 = vld [vmem:[%s9147_s5 + $0x178] sm:$0xff] }
 0x1ed   : > { %2437 = vmatpush1.bf16.msra.mxu0 %v6871_v33  ;;  %2583 = vmatpush1.bf16.msra.mxu1 %v6873_v34  ;;  %v740_v33 = vld [vmem:[%s9147_s5 + $0x58] sm:$0xff] }
 0x1ee   : > { %2438 = vmatprep.subr.bf16.mxu0 %v6880_v35  ;;  %2584 = vmatprep.subr.bf16.mxu1 %v6882_v36  ;;  %v744_v34 = vld [vmem:[%s9147_s5 + $0x78] sm:$0xff]  ;;  %v6675_v35 = vcombine.low %v731_v21, %v735_v22  ;;  %v6677_v36 = vcombine.low %v732_v23, %v736_v24  ;;  %v783_v21 = vld [vmem:[%s9147_s5 + $0x1b0] sm:$0xff] }
 0x1ef   : > { %v6686_v39 = vcombine.high %v740_v33, %v744_v34  ;;  %v6685_v46 = vcombine.low %v740_v33, %v744_v34  ;;  %v780_v22 = vld [vmem:[%s9147_s5 + $0x198] sm:$0xff] }
 0x1f0   : > { %v784_v23 = vld [vmem:[%s9147_s5 + $0x1b8] sm:$0xff] }
 0x1f1   : > { %2439 = vmatpush1.bf16.msra.mxu0 %v6879_v42  ;;  %2585 = vmatpush1.bf16.msra.mxu1 %v6881_v43  ;;  %v751_v42 = vld [vmem:[%s9147_s5 + $0xb0] sm:$0xff]  ;;  %v748_v43 = vld [vmem:[%s9147_s5 + $0x98] sm:$0xff] }
 0x1f2   : > { %2440 = vmatprep.subr.bf16.mxu0 %v6888_v44  ;;  %2586 = vmatprep.subr.bf16.mxu1 %v6890_v45  ;;  %v752_v44 = vld [vmem:[%s9147_s5 + $0xb8] sm:$0xff]  ;;  %v6683_v45 = vcombine.low %v739_v29, %v743_v30  ;;  %v6692_v47 = vcombine.high %v747_v41, %v751_v42  ;;  %v6691_v55 = vcombine.low %v747_v41, %v751_v42  ;;  %v791_v29 = vld [vmem:[%s9147_s5 + $0x1f0] sm:$0xff] }
 0x1f3   : > { %v6694_v48 = vcombine.high %v748_v43, %v752_v44  ;;  %v6693_v58 = vcombine.low %v748_v43, %v752_v44  ;;  %v9472_v30 = vld [vmem:[%s9140_s17 + $0x68] ss:$16 sps:$4 sm:$0xff]   ;;  %v795_v41 = vld [vmem:[%s9147_s5 + $0x210] sm:$0xff] }
 0x1f4   : > { %v788_v33 = vld [vmem:[%s9147_s5 + $0x1d8] sm:$0xff]  ;;  %v799_v42 = vld [vmem:[%s9147_s5 + $0x230] sm:$0xff] }
 0x1f5   : > { %2441 = vmatpush1.bf16.msra.mxu0 %v6887_v51  ;;  %2587 = vmatpush1.bf16.msra.mxu1 %v6889_v52  ;;  %v759_v51 = vld [vmem:[%s9147_s5 + $0xf0] sm:$0xff]  ;;  %v9436_v52 = vld [vmem:[%s9140_s17 + $0x28] ss:$16 sps:$4 sm:$0xff]  }
 0x1f6   : > { %2442 = vmatprep.subr.bf16.mxu0 %v6896_v53  ;;  %2588 = vmatprep.subr.bf16.mxu1 %v6898_v54  ;;  %v756_v53 = vld [vmem:[%s9147_s5 + $0xd8] sm:$0xff]  ;;  %v6700_v59 = vcombine.high %v755_v50, %v759_v51  ;;  %v6699_v2 = vcombine.low %v755_v50, %v759_v51  ;;  %v803_v50 = vld [vmem:[%s9147_s5 + $0x250] sm:$0xff] }
 0x1f7   : > { %v760_v54 = vld [vmem:[%s9147_s5 + $0xf8] sm:$0xff]  ;;  %v807_v51 = vld [vmem:[%s9147_s5 + $0x270] sm:$0xff] }
 0x1f8   : > { %v6702_v60 = vcombine.high %v756_v53, %v760_v54  ;;  %v6701_v3 = vcombine.low %v756_v53, %v760_v54  ;;  %v792_v34 = vld [vmem:[%s9147_s5 + $0x1f8] sm:$0xff] }
 0x1f9   : > { %2443 = vmatpush1.bf16.msra.mxu0 %v6895_v61  ;;  %2589 = vmatpush1.bf16.msra.mxu1 %v6897_v62  ;;  %v9441_v61 = vld [vmem:[%s9140_s17 + $0x4c] ss:$16 sps:$4 sm:$0xff]   ;;  %v763_v62 = vld [vmem:[%s9147_s5 + $0x110] sm:$0xff] }
 0x1fa   : > { %2444 = vmatprep.subr.bf16.mxu0 %v6904_v63  ;;  %2590 = vmatprep.subr.bf16.mxu1 %v6906_v0  ;;  %v767_v63 = vld [vmem:[%s9147_s5 + $0x130] sm:$0xff]  ;;  %v764_v0 = vld [vmem:[%s9147_s5 + $0x118] sm:$0xff] }
 0x1fb   : > { %v6708_v5 = vcombine.high %v763_v62, %v767_v63  ;;  %v6707_v14 = vcombine.low %v763_v62, %v767_v63  ;;  %v6709_v15 = vcombine.low %v764_v0, %v768_v1  ;;  %v796_v43 = vld [vmem:[%s9147_s5 + $0x218] sm:$0xff]  ;;  %v811_v62 = vld [vmem:[%s9147_s5 + $0x290] sm:$0xff] }
 0x1fc   : > { %v800_v44 = vld [vmem:[%s9147_s5 + $0x238] sm:$0xff]  ;;  %v815_v63 = vld [vmem:[%s9147_s5 + $0x2b0] sm:$0xff] }
 0x1fd   : > { %2445 = vmatpush1.bf16.msra.mxu0 %v6903_v6  ;;  %2591 = vmatpush1.bf16.msra.mxu1 %v6905_v7  ;;  %v6710_v6 = vcombine.high %v764_v0, %v768_v1  ;;  %v771_v7 = vld [vmem:[%s9147_s5 + $0x150] sm:$0xff]  ;;  %v804_v53 = vld [vmem:[%s9147_s5 + $0x258] sm:$0xff] }
 0x1fe   : > { %2446 = vmatprep.subr.bf16.mxu0 %v6912_v8  ;;  %2592 = vmatprep.subr.bf16.mxu1 %v6914_v9  ;;  %v775_v8 = vld [vmem:[%s9147_s5 + $0x170] sm:$0xff]  ;;  %v9454_v9 = vld [vmem:[%s9140_s17 + $0x48] ss:$16 sps:$4 sm:$0xff]  }
 0x1ff   : > { %v6715_v24 = vcombine.low %v771_v7, %v775_v8  ;;  %v808_v54 = vld [vmem:[%s9147_s5 + $0x278] sm:$0xff] }
 0x200   : > { %v812_v0 = vld [vmem:[%s9147_s5 + $0x298] sm:$0xff] }
 0x201   : > { %2447 = vmatpush1.bf16.msra.mxu0 %v6911_v16  ;;  %2593 = vmatpush1.bf16.msra.mxu1 %v6913_v17  ;;  %v6716_v16 = vcombine.high %v771_v7, %v775_v8  ;;  %v6718_v17 = vcombine.high %v772_v10, %v776_v13  ;;  %v816_v1 = vld [vmem:[%s9147_s5 + $0x2b8] sm:$0xff]  ;;  %v823_v7 = vld [vmem:[%s9147_s5 + $0x2f0] sm:$0xff] }
 0x202   : > { %2448 = vmatprep.subr.bf16.mxu0 %v6920_v18  ;;  %2594 = vmatprep.subr.bf16.mxu1 %v6922_v19  ;;  %v9459_v18 = vld [vmem:[%s9140_s17 + $0x6c] ss:$16 sps:$4 sm:$0xff]   ;;  %v779_v19 = vld [vmem:[%s9147_s5 + $0x190] sm:$0xff] }
 0x203   : > { %v820_v8 = vld [vmem:[%s9147_s5 + $0x2d8] sm:$0xff] }
 0x205   : > { %2449 = vmatpush1.bf16.msra.mxu0 %v6919_v25  ;;  %2595 = vmatpush1.bf16.msra.mxu1 %v6921_v26  ;;  %v6717_v25 = vcombine.low %v772_v10, %v776_v13  ;;  %v6724_v26 = vcombine.high %v779_v19, %v783_v21  ;;  %v824_v10 = vld [vmem:[%s9147_s5 + $0x2f8] sm:$0xff]  ;;  %v6755_v13 = vcombine.low %v811_v62, %v815_v63 }
 0x206   : > { %2637 = vmatprep.subr.bf16.mxu0 %v6676_v27  ;;  %2783 = vmatprep.subr.bf16.mxu1 %v6678_v28  ;;  %v6726_v27 = vcombine.high %v780_v22, %v784_v23  ;;  %v787_v28 = vld [vmem:[%s9147_s5 + $0x1d0] sm:$0xff] }
 0x208   : > { %2451 = vmatmul.mubr.bf16.vlgmr.msra.gmra.mrb[0].mxu0 %v9418_v32  ;;  %2597 = vmatmul.mubr.bf16.vlgmr.msra.gmra.mrb[0].mxu1 %v9418_v32 }
 0x209   : > { %2638 = vmatpush1.bf16.msra.mxu0 %v6675_v35  ;;  %2784 = vmatpush1.bf16.msra.mxu1 %v6677_v36  ;;  %v6723_v35 = vcombine.low %v779_v19, %v783_v21  ;;  %v6725_v36 = vcombine.low %v780_v22, %v784_v23  ;;  %v831_v19 = vld [vmem:[%s9147_s5 + $0x330] sm:$0xff]  ;;  %v828_v21 = vld [vmem:[%s9147_s5 + $0x318] sm:$0xff] }
 0x20a   : > { %2639 = vmatprep.subr.bf16.mxu0 %v6684_v37  ;;  %2785 = vmatprep.subr.bf16.mxu1 %v6686_v39  ;;  %v6732_v37 = vcombine.high %v787_v28, %v791_v29  ;;  %v6734_v39 = vcombine.high %v788_v33, %v792_v34  ;;  %v832_v22 = vld [vmem:[%s9147_s5 + $0x338] sm:$0xff] }
 0x20b   : > { %2460 = vmatprep.mubr.bf16.mxu0 %v9423_v40  ;;  %2606 = vmatprep.mubr.bf16.mxu1 %v9423_v40 }
 0x20d   : > { %2640 = vmatpush1.bf16.msra.mxu0 %v6683_v45  ;;  %2786 = vmatpush1.bf16.msra.mxu1 %v6685_v46  ;;  %v6731_v45 = vcombine.low %v787_v28, %v791_v29  ;;  %v6733_v46 = vcombine.low %v788_v33, %v792_v34  ;;  %v839_v28 = vld [vmem:[%s9147_s5 + $0x370] sm:$0xff]  ;;  %v836_v29 = vld [vmem:[%s9147_s5 + $0x358] sm:$0xff] }
 0x20e   : > { %2641 = vmatprep.subr.bf16.mxu0 %v6692_v47  ;;  %2787 = vmatprep.subr.bf16.mxu1 %v6694_v48  ;;  %v6740_v47 = vcombine.high %v795_v41, %v799_v42  ;;  %v6742_v48 = vcombine.high %v796_v43, %v800_v44  ;;  %v840_v33 = vld [vmem:[%s9147_s5 + $0x378] sm:$0xff] }
 0x210   : > { %2461 = vmatmul.mubr.bf16.gmra.mrb[4].mxu0 %v9436_v52  ;;  %2607 = vmatmul.mubr.bf16.gmra.mrb[4].mxu1 %v9436_v52 }
 0x211   : > { %2642 = vmatpush1.bf16.msra.mxu0 %v6691_v55  ;;  %2788 = vmatpush1.bf16.msra.mxu1 %v6693_v58  ;;  %v6739_v55 = vcombine.low %v795_v41, %v799_v42  ;;  %v6741_v58 = vcombine.low %v796_v43, %v800_v44  ;;  %v847_v41 = vld [vmem:[%s9147_s5 + $0x3b0] sm:$0xff]  ;;  %v844_v42 = vld [vmem:[%s9147_s5 + $0x398] sm:$0xff] }
 0x212   : > { %2643 = vmatprep.subr.bf16.mxu0 %v6700_v59  ;;  %2789 = vmatprep.subr.bf16.mxu1 %v6702_v60  ;;  %v6748_v59 = vcombine.high %v803_v50, %v807_v51  ;;  %v6750_v60 = vcombine.high %v804_v53, %v808_v54  ;;  %v848_v43 = vld [vmem:[%s9147_s5 + $0x3b8] sm:$0xff] }
 0x213   : > { %2470 = vmatprep.mubr.bf16.mxu0 %v9441_v61  ;;  %2616 = vmatprep.mubr.bf16.mxu1 %v9441_v61 }
 0x215   : > { %2644 = vmatpush1.bf16.msra.mxu0 %v6699_v2  ;;  %2790 = vmatpush1.bf16.msra.mxu1 %v6701_v3  ;;  %v6747_v2 = vcombine.low %v803_v50, %v807_v51  ;;  %v6756_v3 = vcombine.high %v811_v62, %v815_v63  ;;  %v855_v50 = vld [vmem:[%s9147_s5 + $0x3f0] sm:$0xff]  ;;  %v852_v51 = vld [vmem:[%s9147_s5 + $0x3d8] sm:$0xff] }
 0x216   : > { %2645 = vmatprep.subr.bf16.mxu0 %v6708_v5  ;;  %2791 = vmatprep.subr.bf16.mxu1 %v6710_v6  ;;  %v6758_v5 = vcombine.high %v812_v0, %v816_v1  ;;  %v819_v6 = vld [vmem:[%s9147_s5 + $0x2d0] sm:$0xff]  ;;  %v860_v63 = vld [vmem:[%s9147_s5 + $0x418] sm:$0xff] }
 0x217   : > { %v6763_v23 = vcombine.low %v819_v6, %v823_v7  ;;  %v863_v62 = vld [vmem:[%s9147_s5 + $0x430] sm:$0xff] }
 0x218   : > { %2471 = vmatmul.mubr.bf16.gmra.mrb[8].mxu0 %v9454_v9  ;;  %2617 = vmatmul.mubr.bf16.gmra.mrb[8].mxu1 %v9454_v9 }
 0x219   : > { %2646 = vmatpush1.bf16.msra.mxu0 %v6707_v14  ;;  %2792 = vmatpush1.bf16.msra.mxu1 %v6709_v15  ;;  %v6757_v14 = vcombine.low %v812_v0, %v816_v1  ;;  %v6764_v15 = vcombine.high %v819_v6, %v823_v7  ;;  %v864_v0 = vld [vmem:[%s9147_s5 + $0x438] sm:$0xff]  ;;  %v871_v6 = vld [vmem:[%s9147_s5 + $0x470] sm:$0xff] }
 0x21a   : > { %2647 = vmatprep.subr.bf16.mxu0 %v6716_v16  ;;  %2793 = vmatprep.subr.bf16.mxu1 %v6718_v17  ;;  %v6766_v16 = vcombine.high %v820_v8, %v824_v10  ;;  %v827_v17 = vld [vmem:[%s9147_s5 + $0x310] sm:$0xff]  ;;  %v868_v7 = vld [vmem:[%s9147_s5 + $0x458] sm:$0xff] }
 0x21b   : > { %2480 = vmatprep.mubr.bf16.mxu0 %v9459_v18  ;;  %2626 = vmatprep.mubr.bf16.mxu1 %v9459_v18  ;;  %v6771_v34 = vcombine.low %v827_v17, %v831_v19 }
 0x21d   : > { %2648 = vmatpush1.bf16.msra.mxu0 %v6715_v24  ;;  %2794 = vmatpush1.bf16.msra.mxu1 %v6717_v25  ;;  %v6765_v24 = vcombine.low %v820_v8, %v824_v10  ;;  %v6772_v25 = vcombine.high %v827_v17, %v831_v19  ;;  %v872_v8 = vld [vmem:[%s9147_s5 + $0x478] sm:$0xff]  ;;  %v879_v17 = vld [vmem:[%s9147_s5 + $0x4b0] sm:$0xff] }
 0x21e   : > { %2649 = vmatprep.subr.bf16.mxu0 %v6724_v26  ;;  %2795 = vmatprep.subr.bf16.mxu1 %v6726_v27  ;;  %v6774_v26 = vcombine.high %v828_v21, %v832_v22  ;;  %v835_v27 = vld [vmem:[%s9147_s5 + $0x350] sm:$0xff]  ;;  %v876_v19 = vld [vmem:[%s9147_s5 + $0x498] sm:$0xff] }
 0x21f   : > { %v6779_v44 = vcombine.low %v835_v27, %v839_v28 }
 0x220   : > { %2481 = vmatmul.mubr.bf16.gmra.mrb[12].mxu0 %v9472_v30  ;;  %2627 = vmatmul.mubr.bf16.gmra.mrb[12].mxu1 %v9472_v30 }
 0x221   : > { %2650 = vmatpush1.bf16.msra.mxu0 %v6723_v35  ;;  %2796 = vmatpush1.bf16.msra.mxu1 %v6725_v36  ;;  %v6773_v35 = vcombine.low %v828_v21, %v832_v22  ;;  %v6780_v36 = vcombine.high %v835_v27, %v839_v28  ;;  %v880_v21 = vld [vmem:[%s9147_s5 + $0x4b8] sm:$0xff]  ;;  %v887_v27 = vld [vmem:[%s9147_s5 + $0x4f0] sm:$0xff] }
 0x222   : > { %2651 = vmatprep.subr.bf16.mxu0 %v6732_v37  ;;  %2797 = vmatprep.subr.bf16.mxu1 %v6734_v39  ;;  %v6782_v37 = vcombine.high %v836_v29, %v840_v33  ;;  %v843_v39 = vld [vmem:[%s9147_s5 + $0x390] sm:$0xff]  ;;  %v884_v28 = vld [vmem:[%s9147_s5 + $0x4d8] sm:$0xff] }
 0x223   : > { %2669 = vmatprep.mubr.bf16.mxu0 %v9269_v57  ;;  %2815 = vmatprep.mubr.bf16.mxu1 %v9269_v57  ;;  %v6749_v57 = vcombine.low %v804_v53, %v808_v54  ;;  %v856_v53 = vld [vmem:[%s9147_s5 + $0x3f8] sm:$0xff]  ;;  %v6787_v54 = vcombine.low %v843_v39, %v847_v41 }
 0x225   : > { %2652 = vmatpush1.bf16.msra.mxu0 %v6731_v45  ;;  %2798 = vmatpush1.bf16.msra.mxu1 %v6733_v46  ;;  %v6781_v45 = vcombine.low %v836_v29, %v840_v33  ;;  %v6788_v46 = vcombine.high %v843_v39, %v847_v41  ;;  %v888_v29 = vld [vmem:[%s9147_s5 + $0x4f8] sm:$0xff]  ;;  %v6821_v33 = vcombine.low %v876_v19, %v880_v21 }
 0x226   : > { %2653 = vmatprep.subr.bf16.mxu0 %v6740_v47  ;;  %2799 = vmatprep.subr.bf16.mxu1 %v6742_v48  ;;  %v6790_v47 = vcombine.high %v844_v42, %v848_v43  ;;  %v851_v48 = vld [vmem:[%s9147_s5 + $0x3d0] sm:$0xff]  ;;  %v892_v39 = vld [vmem:[%s9147_s5 + $0x518] sm:$0xff] }
 0x227   : > { %v6795_v1 = vcombine.low %v851_v48, %v855_v50  ;;  %v896_v41 = vld [vmem:[%s9147_s5 + $0x538] sm:$0xff] }
 0x229   : > { %2654 = vmatpush1.bf16.msra.mxu0 %v6739_v55  ;;  %2800 = vmatpush1.bf16.msra.mxu1 %v6741_v58  ;;  %v6789_v55 = vcombine.low %v844_v42, %v848_v43  ;;  %v6796_v58 = vcombine.high %v851_v48, %v855_v50  ;;  %v6829_v42 = vcombine.low %v884_v28, %v888_v29  ;;  %v904_v48 = vld [vmem:[%s9147_s5 + $0x578] sm:$0xff] }
 0x22a   : > { %2655 = vmatprep.subr.bf16.mxu0 %v6748_v59  ;;  %2801 = vmatprep.subr.bf16.mxu1 %v6750_v60  ;;  %v6798_v59 = vcombine.high %v852_v51, %v856_v53  ;;  %v859_v60 = vld [vmem:[%s9147_s5 + $0x410] sm:$0xff]  ;;  %v6837_v50 = vcombine.low %v892_v39, %v896_v41 }
 0x22b   : > { %v6803_v10 = vcombine.low %v859_v60, %v863_v62 }
 0x22d   : > { %2656 = vmatpush1.bf16.msra.mxu0 %v6747_v2  ;;  %2802 = vmatpush1.bf16.msra.mxu1 %v6749_v57  ;;  %v6797_v2 = vcombine.low %v852_v51, %v856_v53  ;;  %v6804_v57 = vcombine.high %v859_v60, %v863_v62 }
 0x22e   : > { %2657 = vmatprep.subr.bf16.mxu0 %v6756_v3  ;;  %2803 = vmatprep.subr.bf16.mxu1 %v6758_v5  ;;  %v6806_v3 = vcombine.high %v860_v63, %v864_v0  ;;  %v867_v5 = vld [vmem:[%s9147_s5 + $0x450] sm:$0xff] }
 0x22f   : > { %v6811_v22 = vcombine.low %v867_v5, %v871_v6 }
 0x231   : > { %2658 = vmatpush1.bf16.msra.mxu0 %v6755_v13  ;;  %2804 = vmatpush1.bf16.msra.mxu1 %v6757_v14  ;;  %v6805_v13 = vcombine.low %v860_v63, %v864_v0  ;;  %v6812_v14 = vcombine.high %v867_v5, %v871_v6  ;;  %v915_v0 = vld [vmem:[%s9147_s5 + $0x5d0] sm:$0xff] }
 0x232   : > { %2659 = vmatprep.subr.bf16.mxu0 %v6764_v15  ;;  %2805 = vmatprep.subr.bf16.mxu1 %v6766_v16  ;;  %v6814_v15 = vcombine.high %v868_v7, %v872_v8  ;;  %v875_v16 = vld [vmem:[%s9147_s5 + $0x490] sm:$0xff] }
 0x235   : > { %2660 = vmatpush1.bf16.msra.mxu0 %v6763_v23  ;;  %2806 = vmatpush1.bf16.msra.mxu1 %v6765_v24  ;;  %v6813_v23 = vcombine.low %v868_v7, %v872_v8  ;;  %v6820_v24 = vcombine.high %v875_v16, %v879_v17  ;;  %v923_v7 = vld [vmem:[%s9147_s5 + $0x610] sm:$0xff] }
 0x236   : > { %2661 = vmatprep.subr.bf16.mxu0 %v6772_v25  ;;  %2807 = vmatprep.subr.bf16.mxu1 %v6774_v26  ;;  %v6822_v25 = vcombine.high %v876_v19, %v880_v21  ;;  %v883_v26 = vld [vmem:[%s9147_s5 + $0x4d0] sm:$0xff]  ;;  %v932_v21 = vld [vmem:[%s9147_s5 + $0x658] sm:$0xff] }
 0x237   : > { %v927_v8 = vld [vmem:[%s9147_s5 + $0x630] sm:$0xff] }
 0x238   : > { %v935_v19 = vld [vmem:[%s9147_s5 + $0x670] sm:$0xff] }
 0x239   : > { %2662 = vmatpush1.bf16.msra.mxu0 %v6771_v34  ;;  %2808 = vmatpush1.bf16.msra.mxu1 %v6773_v35  ;;  %v6828_v34 = vcombine.high %v883_v26, %v887_v27  ;;  %v6830_v35 = vcombine.high %v884_v28, %v888_v29  ;;  %v940_v28 = vld [vmem:[%s9147_s5 + $0x698] sm:$0xff] }
 0x23a   : > { %2663 = vmatprep.subr.bf16.mxu0 %v6780_v36  ;;  %2809 = vmatprep.subr.bf16.mxu1 %v6782_v37  ;;  %v891_v36 = vld [vmem:[%s9147_s5 + $0x510] sm:$0xff]  ;;  %v944_v29 = vld [vmem:[%s9147_s5 + $0x6b8] sm:$0xff] }
 0x23b   : > { %v895_v37 = vld [vmem:[%s9147_s5 + $0x530] sm:$0xff] }
 0x23c   : > { %v6836_v43 = vcombine.high %v891_v36, %v895_v37 }
 0x23d   : > { %2664 = vmatpush1.bf16.msra.mxu0 %v6779_v44  ;;  %2810 = vmatpush1.bf16.msra.mxu1 %v6781_v45  ;;  %v6838_v44 = vcombine.high %v892_v39, %v896_v41  ;;  %v899_v45 = vld [vmem:[%s9147_s5 + $0x550] sm:$0xff]  ;;  %v952_v39 = vld [vmem:[%s9147_s5 + $0x6f8] sm:$0xff] }
 0x23e   : > { %2665 = vmatprep.subr.bf16.mxu0 %v6788_v46  ;;  %2811 = vmatprep.subr.bf16.mxu1 %v6790_v47  ;;  %v903_v46 = vld [vmem:[%s9147_s5 + $0x570] sm:$0xff]  ;;  %v900_v47 = vld [vmem:[%s9147_s5 + $0x558] sm:$0xff] }
 0x23f   : > { %v6844_v51 = vcombine.high %v899_v45, %v903_v46  ;;  %v6846_v53 = vcombine.high %v900_v47, %v904_v48  ;;  %v6845_v60 = vcombine.low %v900_v47, %v904_v48  ;;  %v960_v47 = vld [vmem:[%s9147_s5 + $0x738] sm:$0xff] }
 0x241   : > { %2666 = vmatpush1.bf16.msra.mxu0 %v6787_v54  ;;  %2812 = vmatpush1.bf16.msra.mxu1 %v6789_v55  ;;  %v907_v54 = vld [vmem:[%s9147_s5 + $0x590] sm:$0xff] }
 0x242   : > { %2667 = vmatprep.subr.bf16.mxu0 %v6796_v58  ;;  %2813 = vmatprep.subr.bf16.mxu1 %v6798_v59  ;;  %v911_v55 = vld [vmem:[%s9147_s5 + $0x5b0] sm:$0xff]  ;;  %v908_v58 = vld [vmem:[%s9147_s5 + $0x598] sm:$0xff] }
 0x243   : > { %v912_v59 = vld [vmem:[%s9147_s5 + $0x5b8] sm:$0xff]  ;;  %v6852_v62 = vcombine.high %v907_v54, %v911_v55 }
 0x244   : > { %v6854_v63 = vcombine.high %v908_v58, %v912_v59 }
 0x245   : > { %2668 = vmatpush1.bf16.msra.mxu0 %v6795_v1  ;;  %2814 = vmatpush1.bf16.msra.mxu1 %v6797_v2  ;;  %v919_v1 = vld [vmem:[%s9147_s5 + $0x5f0] sm:$0xff]  ;;  %v916_v2 = vld [vmem:[%s9147_s5 + $0x5d8] sm:$0xff] }
 0x246   : > { %2710 = vmatprep.subr.bf16.mxu0 %v6804_v57  ;;  %2856 = vmatprep.subr.bf16.mxu1 %v6806_v3  ;;  %v920_v57 = vld [vmem:[%s9147_s5 + $0x5f8] sm:$0xff]  ;;  %v6853_v3 = vcombine.low %v908_v58, %v912_v59  ;;  %v6860_v5 = vcombine.high %v915_v0, %v919_v1 }
 0x247   : > { %v6862_v6 = vcombine.high %v916_v2, %v920_v57  ;;  %v968_v58 = vld [vmem:[%s9147_s5 + $0x778] sm:$0xff] }
 0x248   : > { %2670 = vmatmul.mubr.bf16.vlgmr.msra.gmra.mrb[16].mxu0 %v9314_v11  ;;  %2816 = vmatmul.mubr.bf16.vlgmr.msra.gmra.mrb[16].mxu1 %v9314_v11  ;;  %v6819_v11 = vcombine.low %v875_v16, %v879_v17  ;;  %v931_v17 = vld [vmem:[%s9147_s5 + $0x650] sm:$0xff] }
 0x249   : > { %2711 = vmatpush1.bf16.msra.mxu0 %v6803_v10  ;;  %2857 = vmatpush1.bf16.msra.mxu1 %v6805_v13  ;;  %v924_v10 = vld [vmem:[%s9147_s5 + $0x618] sm:$0xff] }
 0x24a   : > { %2712 = vmatprep.subr.bf16.mxu0 %v6812_v14  ;;  %2858 = vmatprep.subr.bf16.mxu1 %v6814_v15  ;;  %v928_v13 = vld [vmem:[%s9147_s5 + $0x638] sm:$0xff]  ;;  %v6861_v14 = vcombine.low %v916_v2, %v920_v57  ;;  %v6868_v15 = vcombine.high %v923_v7, %v927_v8 }
 0x24b   : > { %2679 = vmatprep.mubr.bf16.mxu0 %v9321_v20  ;;  %2825 = vmatprep.mubr.bf16.mxu1 %v9321_v20  ;;  %v6827_v20 = vcombine.low %v883_v26, %v887_v27  ;;  %v6870_v16 = vcombine.high %v924_v10, %v928_v13  ;;  %v939_v26 = vld [vmem:[%s9147_s5 + $0x690] sm:$0xff]  ;;  %v976_v2 = vld [vmem:[%s9147_s5 + $0x7b8] sm:$0xff] }
 0x24c   : > { %v943_v27 = vld [vmem:[%s9147_s5 + $0x6b0] sm:$0xff] }
 0x24d   : > { %2713 = vmatpush1.bf16.msra.mxu0 %v6811_v22  ;;  %2859 = vmatpush1.bf16.msra.mxu1 %v6813_v23  ;;  %v936_v22 = vld [vmem:[%s9147_s5 + $0x678] sm:$0xff]  ;;  %v6869_v23 = vcombine.low %v924_v10, %v928_v13  ;;  %v6883_v41 = vcombine.low %v939_v26, %v943_v27 }
 0x24e   : > { %2714 = vmatprep.subr.bf16.mxu0 %v6820_v24  ;;  %2860 = vmatprep.subr.bf16.mxu1 %v6822_v25  ;;  %v6876_v24 = vcombine.high %v931_v17, %v935_v19  ;;  %v6878_v25 = vcombine.high %v932_v21, %v936_v22  ;;  %v984_v10 = vld [vmem:[%s9147_s5 + $0x7f8] sm:$0xff] }
 0x250   : > { %2680 = vmatmul.mubr.bf16.gmra.mrb[20].mxu0 %v9334_v31  ;;  %2826 = vmatmul.mubr.bf16.gmra.mrb[20].mxu1 %v9334_v31  ;;  %v6835_v31 = vcombine.low %v891_v36, %v895_v37  ;;  %v951_v36 = vld [vmem:[%s9147_s5 + $0x6f0] sm:$0xff]  ;;  %v948_v37 = vld [vmem:[%s9147_s5 + $0x6d8] sm:$0xff] }
 0x251   : > { %2715 = vmatpush1.bf16.msra.mxu0 %v6819_v11  ;;  %2861 = vmatpush1.bf16.msra.mxu1 %v6821_v33  ;;  %v6875_v11 = vcombine.low %v931_v17, %v935_v19  ;;  %v6884_v33 = vcombine.high %v939_v26, %v943_v27  ;;  %v650_v19 = vld [vmem:[#allocation2 + $0x8] sm:$0xff] }
 0x252   : > { %2716 = vmatprep.subr.bf16.mxu0 %v6828_v34  ;;  %2862 = vmatprep.subr.bf16.mxu1 %v6830_v35  ;;  %v6886_v34 = vcombine.high %v940_v28, %v944_v29  ;;  %v947_v35 = vld [vmem:[%s9147_s5 + $0x6d0] sm:$0xff] }
 0x253   : > { %2689 = vmatprep.mubr.bf16.mxu0 %v9339_v38  ;;  %2835 = vmatprep.mubr.bf16.mxu1 %v9339_v38  ;;  %v6843_v38 = vcombine.low %v899_v45, %v903_v46  ;;  %v959_v45 = vld [vmem:[%s9147_s5 + $0x730] sm:$0xff]  ;;  %v956_v46 = vld [vmem:[%s9147_s5 + $0x718] sm:$0xff]  ;;  %v6891_v48 = vcombine.low %v947_v35, %v951_v36 }
 0x255   : > { %2717 = vmatpush1.bf16.msra.mxu0 %v6827_v20  ;;  %2863 = vmatpush1.bf16.msra.mxu1 %v6829_v42  ;;  %v6885_v20 = vcombine.low %v940_v28, %v944_v29  ;;  %v6892_v42 = vcombine.high %v947_v35, %v951_v36 }
 0x256   : > { %2718 = vmatprep.subr.bf16.mxu0 %v6836_v43  ;;  %2864 = vmatprep.subr.bf16.mxu1 %v6838_v44  ;;  %v6894_v43 = vcombine.high %v948_v37, %v952_v39  ;;  %v955_v44 = vld [vmem:[%s9147_s5 + $0x710] sm:$0xff] }
 0x257   : > { %v6899_v59 = vcombine.low %v955_v44, %v959_v45 }
 0x258   : > { %2690 = vmatmul.mubr.bf16.gmra.mrb[24].mxu0 %v9352_v49  ;;  %2836 = vmatmul.mubr.bf16.gmra.mrb[24].mxu1 %v9352_v49  ;;  %v6851_v49 = vcombine.low %v907_v54, %v911_v55  ;;  %v967_v54 = vld [vmem:[%s9147_s5 + $0x770] sm:$0xff]  ;;  %v964_v55 = vld [vmem:[%s9147_s5 + $0x758] sm:$0xff] }
 0x259   : > { %2719 = vmatpush1.bf16.msra.mxu0 %v6835_v31  ;;  %2865 = vmatpush1.bf16.msra.mxu1 %v6837_v50  ;;  %v6893_v31 = vcombine.low %v948_v37, %v952_v39  ;;  %v6900_v50 = vcombine.high %v955_v44, %v959_v45  ;;  %v665_v37 = vld [vmem:[#allocation2 + $0x80] sm:$0xff]  ;;  %v667_v39 = vld [vmem:[#allocation2 + $0x90] sm:$0xff] }
 0x25a   : > { %2720 = vmatprep.subr.bf16.mxu0 %v6844_v51  ;;  %2866 = vmatprep.subr.bf16.mxu1 %v6846_v53  ;;  %v6902_v51 = vcombine.high %v956_v46, %v960_v47  ;;  %v963_v53 = vld [vmem:[%s9147_s5 + $0x750] sm:$0xff] }
 0x25b   : > { %2699 = vmatprep.mubr.bf16.mxu0 %v9357_v56  ;;  %2845 = vmatprep.mubr.bf16.mxu1 %v9357_v56  ;;  %v6859_v56 = vcombine.low %v915_v0, %v919_v1  ;;  %v975_v0 = vld [vmem:[%s9147_s5 + $0x7b0] sm:$0xff]  ;;  %v972_v1 = vld [vmem:[%s9147_s5 + $0x798] sm:$0xff]  ;;  %v6907_v57 = vcombine.low %v963_v53, %v967_v54 }
 0x25d   : > { %2721 = vmatpush1.bf16.msra.mxu0 %v6843_v38  ;;  %2867 = vmatpush1.bf16.msra.mxu1 %v6845_v60  ;;  %v6901_v38 = vcombine.low %v956_v46, %v960_v47  ;;  %v6908_v60 = vcombine.high %v963_v53, %v967_v54  ;;  %v675_v47 = vld [vmem:[#allocation2 + $0xd0] sm:$0xff]  ;;  %v676_v54 = vld [vmem:[#allocation2 + $0xd8] sm:$0xff] }
 0x25e   : > { %2722 = vmatprep.subr.bf16.mxu0 %v6852_v62  ;;  %2868 = vmatprep.subr.bf16.mxu1 %v6854_v63  ;;  %v6910_v62 = vcombine.high %v964_v55, %v968_v58  ;;  %v971_v63 = vld [vmem:[%s9147_s5 + $0x790] sm:$0xff] }
 0x25f   : > { %v6915_v13 = vcombine.low %v971_v63, %v975_v0 }
 0x260   : > { %2700 = vmatmul.mubr.bf16.gmra.mrb[28].mxu0 %v9370_v4  ;;  %2846 = vmatmul.mubr.bf16.gmra.mrb[28].mxu1 %v9370_v4  ;;  %v6867_v4 = vcombine.low %v923_v7, %v927_v8  ;;  %v983_v7 = vld [vmem:[%s9147_s5 + $0x7f0] sm:$0xff]  ;;  %v980_v8 = vld [vmem:[%s9147_s5 + $0x7d8] sm:$0xff] }
 0x261   : > { %2723 = vmatpush1.bf16.msra.mxu0 %v6851_v49  ;;  %2869 = vmatpush1.bf16.msra.mxu1 %v6853_v3  ;;  %v6909_v49 = vcombine.low %v964_v55, %v968_v58  ;;  %v6916_v3 = vcombine.high %v971_v63, %v975_v0  ;;  %v6925_v17 = vcombine.low %v980_v8, %v984_v10 }
 0x262   : > { %2724 = vmatprep.subr.bf16.mxu0 %v6860_v5  ;;  %2870 = vmatprep.subr.bf16.mxu1 %v6862_v6  ;;  %v6918_v5 = vcombine.high %v972_v1, %v976_v2  ;;  %v979_v6 = vld [vmem:[%s9147_s5 + $0x7d0] sm:$0xff] }
 0x263   : > { %2742 = vmatprep.mubr.bf16.mxu0 %v9375_v12  ;;  %2888 = vmatprep.mubr.bf16.mxu1 %v9375_v12  ;;  %v6877_v12 = vcombine.low %v932_v21, %v936_v22  ;;  %v652_v21 = vld [vmem:[#allocation2 + $0x18] sm:$0xff]  ;;  %v657_v22 = vld [vmem:[#allocation2 + $0x40] sm:$0xff] }
 0x265   : > { %2725 = vmatpush1.bf16.msra.mxu0 %v6859_v56  ;;  %2871 = vmatpush1.bf16.msra.mxu1 %v6861_v14  ;;  %v6917_v56 = vcombine.low %v972_v1, %v976_v2  ;;  %v6924_v14 = vcombine.high %v979_v6, %v983_v7  ;;  %v681_v1 = vld [vmem:[#allocation2 + $0x100] sm:$0xff]  ;;  %v683_v2 = vld [vmem:[#allocation2 + $0x110] sm:$0xff] }
 0x266   : > { %2726 = vmatprep.subr.bf16.mxu0 %v6868_v15  ;;  %2872 = vmatprep.subr.bf16.mxu1 %v6870_v16  ;;  %v6926_v15 = vcombine.high %v980_v8, %v984_v10  ;;  %v6923_v16 = vcombine.low %v979_v6, %v983_v7  ;;  %v691_v10 = vld [vmem:[#allocation2 + $0x150] sm:$0xff] }
 0x269   : > { %2727 = vmatpush1.bf16.msra.mxu0 %v6867_v4  ;;  %2873 = vmatpush1.bf16.msra.mxu1 %v6869_v23 }
 0x26a   : > { %2728 = vmatprep.subr.bf16.mxu0 %v6876_v24  ;;  %2874 = vmatprep.subr.bf16.mxu1 %v6878_v25  ;;  %v659_v24 = vld [vmem:[#allocation2 + $0x50] sm:$0xff]  ;;  %v658_v25 = vld [vmem:[#allocation2 + $0x48] sm:$0xff] }
 0x26d   : > { %2729 = vmatpush1.bf16.msra.mxu0 %v6875_v11  ;;  %2875 = vmatpush1.bf16.msra.mxu1 %v6877_v12 }
 0x26e   : > { %2730 = vmatprep.subr.bf16.mxu0 %v6884_v33  ;;  %2876 = vmatprep.subr.bf16.mxu1 %v6886_v34 }
 0x271   : > { %2731 = vmatpush1.bf16.msra.mxu0 %v6883_v41  ;;  %2877 = vmatpush1.bf16.msra.mxu1 %v6885_v20  ;;  %v666_v41 = vld [vmem:[#allocation2 + $0x88] sm:$0xff] }
 0x272   : > { %2732 = vmatprep.subr.bf16.mxu0 %v6892_v42  ;;  %2878 = vmatprep.subr.bf16.mxu1 %v6894_v43  ;;  %v668_v42 = vld [vmem:[#allocation2 + $0x98] sm:$0xff]  ;;  %v673_v43 = vld [vmem:[#allocation2 + $0xc0] sm:$0xff] }
 0x275   : > { %2733 = vmatpush1.bf16.msra.mxu0 %v6891_v48  ;;  %2879 = vmatpush1.bf16.msra.mxu1 %v6893_v31  ;;  %v674_v48 = vld [vmem:[#allocation2 + $0xc8] sm:$0xff] }
 0x276   : > { %2734 = vmatprep.subr.bf16.mxu0 %v6900_v50  ;;  %2880 = vmatprep.subr.bf16.mxu1 %v6902_v51 }
 0x279   : > { %2735 = vmatpush1.bf16.msra.mxu0 %v6899_v59  ;;  %2881 = vmatpush1.bf16.msra.mxu1 %v6901_v38 }
 0x27a   : > { %2736 = vmatprep.subr.bf16.mxu0 %v6908_v60  ;;  %2882 = vmatprep.subr.bf16.mxu1 %v6910_v62 }
 0x27d   : > { %2737 = vmatpush1.bf16.msra.mxu0 %v6907_v57  ;;  %2883 = vmatpush1.bf16.msra.mxu1 %v6909_v49  ;;  %v682_v57 = vld [vmem:[#allocation2 + $0x108] sm:$0xff] }
 0x27e   : > { %2738 = vmatprep.subr.bf16.mxu0 %v6916_v3  ;;  %2884 = vmatprep.subr.bf16.mxu1 %v6918_v5  ;;  %v684_v3 = vld [vmem:[#allocation2 + $0x118] sm:$0xff]  ;;  %v689_v5 = vld [vmem:[#allocation2 + $0x140] sm:$0xff] }
 0x281   : > { %2739 = vmatpush1.bf16.msra.mxu0 %v6915_v13  ;;  %2885 = vmatpush1.bf16.msra.mxu1 %v6917_v56  ;;  %v690_v13 = vld [vmem:[#allocation2 + $0x148] sm:$0xff] }
 0x282   : > { %2740 = vmatprep.subr.bf16.mxu0 %v6924_v14  ;;  %2886 = vmatprep.subr.bf16.mxu1 %v6926_v15 }
 0x285   : > { %2741 = vmatpush1.bf16.msra.mxu0 %v6923_v16  ;;  %2887 = vmatpush1.bf16.msra.mxu1 %v6925_v17  ;;  %v692_v17 = vld [vmem:[#allocation2 + $0x158] sm:$0xff] }
 0x288   : > { %2743 = vmatmul.mubr.bf16.vlgmr.msra.gmra.mrb[16].mxu0 %v9418_v32  ;;  %2889 = vmatmul.mubr.bf16.vlgmr.msra.gmra.mrb[16].mxu1 %v9418_v32  ;;  %v649_v32 = vld [vmem:[#allocation2] sm:$0xff] }
 0x289   : > { %2752 = vmatprep.mubr.bf16.mxu0 %v9423_v40  ;;  %2898 = vmatprep.mubr.bf16.mxu1 %v9423_v40  ;;  %v651_v40 = vld [vmem:[#allocation2 + $0x10] sm:$0xff] }
 0x290   : > { %2753 = vmatmul.mubr.bf16.gmra.mrb[20].mxu0 %v9436_v52  ;;  %2899 = vmatmul.mubr.bf16.gmra.mrb[20].mxu1 %v9436_v52 }
 0x291   : > { %2762 = vmatprep.mubr.bf16.mxu0 %v9441_v61  ;;  %2908 = vmatprep.mubr.bf16.mxu1 %v9441_v61 }
 0x298   : > { %2763 = vmatmul.mubr.bf16.gmra.mrb[24].mxu0 %v9454_v9  ;;  %2909 = vmatmul.mubr.bf16.gmra.mrb[24].mxu1 %v9454_v9 }
 0x299   : > { %2772 = vmatprep.mubr.bf16.mxu0 %v9459_v18  ;;  %2918 = vmatprep.mubr.bf16.mxu1 %v9459_v18  ;;  %v660_v18 = vld [vmem:[#allocation2 + $0x58] sm:$0xff] }
 0x2a0   : > { %2773 = vmatmul.mubr.bf16.gmra.mrb[28].mxu0 %v9472_v30  ;;  %2919 = vmatmul.mubr.bf16.gmra.mrb[28].mxu1 %v9472_v30 }
 0x2db   : > { %v2452_v52 = vpop.f32.mrb[0].mxu0  ;;  %v2598_v61 = vpop.f32.mrb[0].mxu1 }
 0x2dc   : > { %v2929_v4 = vadd.f32 %v2452_v52, %v649_v32  ;;  %v2454_v23 = vpop.f32.mrb[1].mxu0  ;;  %v2931_v9 = vadd.f32 %v2598_v61, %v651_v40  ;;  %v2600_v27 = vpop.f32.mrb[1].mxu1 }
 0x2dd   : > { %v2930_v26 = vadd.f32 %v2454_v23, %v650_v19  ;;  %v2456_v28 = vpop.f32.mrb[2].mxu0  ;;  %v2932_v29 = vadd.f32 %v2600_v27, %v652_v21  ;;  %v2602_v30 = vpop.f32.mrb[2].mxu1  ;;  %v697_v23 = vld [vmem:[#allocation2 + $0x180] sm:$0xff] }
 0x2de   : > { %2993 = vst [vmem:[#allocation2] sm:$0xff] %v2929_v4  ;;  %v2937_v11 = vadd.f32 %v2456_v28, %v657_v22  ;;  %v2458_v12 = vpop.f32.mrb[3].mxu0  ;;  %2995 = vst [vmem:[#allocation2 + $0x10] sm:$0xff] %v2931_v9  ;;  %v2939_v33 = vadd.f32 %v2602_v30, %v659_v24  ;;  %v2604_v35 = vpop.f32.mrb[3].mxu1  ;;  %v699_v24 = vld [vmem:[#allocation2 + $0x190] sm:$0xff]  ;;  %v705_v27 = vld [vmem:[#allocation2 + $0x1c0] sm:$0xff] }
 0x2df   : > { %2994 = vst [vmem:[#allocation2 + $0x8] sm:$0xff] %v2930_v26  ;;  %v2938_v34 = vadd.f32 %v2458_v12, %v658_v25  ;;  %2996 = vst [vmem:[#allocation2 + $0x18] sm:$0xff] %v2932_v29  ;;  %v2940_v36 = vadd.f32 %v2604_v35, %v660_v18  ;;  %v698_v25 = vld [vmem:[#allocation2 + $0x188] sm:$0xff]  ;;  %v700_v26 = vld [vmem:[#allocation2 + $0x198] sm:$0xff] }
 0x2e0   : > { %3001 = vst [vmem:[#allocation2 + $0x40] sm:$0xff] %v2937_v11  ;;  %3003 = vst [vmem:[#allocation2 + $0x50] sm:$0xff] %v2939_v33  ;;  %v707_v11 = vld [vmem:[#allocation2 + $0x1d0] sm:$0xff]  ;;  %v706_v30 = vld [vmem:[#allocation2 + $0x1c8] sm:$0xff] }
 0x2e1   : > { %3002 = vst [vmem:[#allocation2 + $0x48] sm:$0xff] %v2938_v34  ;;  %3004 = vst [vmem:[#allocation2 + $0x58] sm:$0xff] %v2940_v36  ;;  %v708_v36 = vld [vmem:[#allocation2 + $0x1d8] sm:$0xff] }
 0x2e3   : > { %v2462_v20 = vpop.f32.mrb[4].mxu0  ;;  %v2608_v45 = vpop.f32.mrb[4].mxu1 }
 0x2e4   : > { %v2945_v44 = vadd.f32 %v2462_v20, %v665_v37  ;;  %v2464_v46 = vpop.f32.mrb[5].mxu0  ;;  %v2947_v31 = vadd.f32 %v2608_v45, %v667_v39  ;;  %v2610_v51 = vpop.f32.mrb[5].mxu1 }
 0x2e5   : > { %v2946_v50 = vadd.f32 %v2464_v46, %v666_v41  ;;  %v2466_v53 = vpop.f32.mrb[6].mxu0  ;;  %v2948_v55 = vadd.f32 %v2610_v51, %v668_v42  ;;  %v2612_v59 = vpop.f32.mrb[6].mxu1  ;;  %v653_v46 = vld [vmem:[#allocation2 + $0x20] sm:$0xff] }
 0x2e6   : > { %3009 = vst [vmem:[#allocation2 + $0x80] sm:$0xff] %v2945_v44  ;;  %v2953_v58 = vadd.f32 %v2466_v53, %v673_v43  ;;  %v2468_v38 = vpop.f32.mrb[7].mxu0  ;;  %3011 = vst [vmem:[#allocation2 + $0x90] sm:$0xff] %v2947_v31  ;;  %v2955_v60 = vadd.f32 %v2612_v59, %v675_v47  ;;  %v2614_v63 = vpop.f32.mrb[7].mxu1  ;;  %v655_v47 = vld [vmem:[#allocation2 + $0x30] sm:$0xff]  ;;  %v661_v51 = vld [vmem:[#allocation2 + $0x60] sm:$0xff] }
 0x2e7   : > { %3010 = vst [vmem:[#allocation2 + $0x88] sm:$0xff] %v2946_v50  ;;  %v2954_v62 = vadd.f32 %v2468_v38, %v674_v48  ;;  %3012 = vst [vmem:[#allocation2 + $0x98] sm:$0xff] %v2948_v55  ;;  %v2956_v0 = vadd.f32 %v2614_v63, %v676_v54  ;;  %v654_v48 = vld [vmem:[#allocation2 + $0x28] sm:$0xff]  ;;  %v656_v50 = vld [vmem:[#allocation2 + $0x38] sm:$0xff] }
 0x2e8   : > { %3017 = vst [vmem:[#allocation2 + $0xc0] sm:$0xff] %v2953_v58  ;;  %3019 = vst [vmem:[#allocation2 + $0xd0] sm:$0xff] %v2955_v60  ;;  %v663_v58 = vld [vmem:[#allocation2 + $0x70] sm:$0xff]  ;;  %v662_v59 = vld [vmem:[#allocation2 + $0x68] sm:$0xff] }
 0x2e9   : > { %3018 = vst [vmem:[#allocation2 + $0xc8] sm:$0xff] %v2954_v62  ;;  %3020 = vst [vmem:[#allocation2 + $0xd8] sm:$0xff] %v2956_v0  ;;  %v664_v0 = vld [vmem:[#allocation2 + $0x78] sm:$0xff] }
 0x2eb   : > { %v2472_v49 = vpop.f32.mrb[8].mxu0  ;;  %v2618_v7 = vpop.f32.mrb[8].mxu1 }
 0x2ec   : > { %v2961_v6 = vadd.f32 %v2472_v49, %v681_v1  ;;  %v2474_v8 = vpop.f32.mrb[9].mxu0  ;;  %v2963_v56 = vadd.f32 %v2618_v7, %v683_v2  ;;  %v2620_v15 = vpop.f32.mrb[9].mxu1 }
 0x2ed   : > { %v2962_v14 = vadd.f32 %v2474_v8, %v682_v57  ;;  %v2476_v16 = vpop.f32.mrb[10].mxu0  ;;  %v2964_v32 = vadd.f32 %v2620_v15, %v684_v3  ;;  %v2622_v19 = vpop.f32.mrb[10].mxu1  ;;  %v669_v8 = vld [vmem:[#allocation2 + $0xa0] sm:$0xff] }
 0x2ee   : > { %3025 = vst [vmem:[#allocation2 + $0x100] sm:$0xff] %v2961_v6  ;;  %v2969_v40 = vadd.f32 %v2476_v16, %v689_v5  ;;  %v2478_v52 = vpop.f32.mrb[11].mxu0  ;;  %3027 = vst [vmem:[#allocation2 + $0x110] sm:$0xff] %v2963_v56  ;;  %v2971_v21 = vadd.f32 %v2622_v19, %v691_v10  ;;  %v2624_v4 = vpop.f32.mrb[11].mxu1  ;;  %v671_v10 = vld [vmem:[#allocation2 + $0xb0] sm:$0xff]  ;;  %v677_v15 = vld [vmem:[#allocation2 + $0xe0] sm:$0xff] }
 0x2ef   : > { %3026 = vst [vmem:[#allocation2 + $0x108] sm:$0xff] %v2962_v14  ;;  %v2970_v22 = vadd.f32 %v2478_v52, %v690_v13  ;;  %3028 = vst [vmem:[#allocation2 + $0x118] sm:$0xff] %v2964_v32  ;;  %v2972_v61 = vadd.f32 %v2624_v4, %v692_v17  ;;  %v670_v13 = vld [vmem:[#allocation2 + $0xa8] sm:$0xff]  ;;  %v672_v14 = vld [vmem:[#allocation2 + $0xb8] sm:$0xff] }
 0x2f0   : > { %3033 = vst [vmem:[#allocation2 + $0x140] sm:$0xff] %v2969_v40  ;;  %3035 = vst [vmem:[#allocation2 + $0x150] sm:$0xff] %v2971_v21  ;;  %v679_v40 = vld [vmem:[#allocation2 + $0xf0] sm:$0xff]  ;;  %v678_v19 = vld [vmem:[#allocation2 + $0xe8] sm:$0xff] }
 0x2f1   : > { %3034 = vst [vmem:[#allocation2 + $0x148] sm:$0xff] %v2970_v22  ;;  %3036 = vst [vmem:[#allocation2 + $0x158] sm:$0xff] %v2972_v61  ;;  %v680_v61 = vld [vmem:[#allocation2 + $0xf8] sm:$0xff] }
 0x2f3   : > { %v2482_v9 = vpop.f32.mrb[12].mxu0  ;;  %v2628_v18 = vpop.f32.mrb[12].mxu1 }
 0x2f4   : > { %v2977_v28 = vadd.f32 %v2482_v9, %v697_v23  ;;  %v2484_v29 = vpop.f32.mrb[13].mxu0  ;;  %v2979_v12 = vadd.f32 %v2628_v18, %v699_v24  ;;  %v2630_v34 = vpop.f32.mrb[13].mxu1 }
 0x2f5   : > { %v2978_v33 = vadd.f32 %v2484_v29, %v698_v25  ;;  %v2486_v35 = vpop.f32.mrb[14].mxu0  ;;  %v2980_v37 = vadd.f32 %v2630_v34, %v700_v26  ;;  %v2632_v41 = vpop.f32.mrb[14].mxu1  ;;  %v685_v29 = vld [vmem:[#allocation2 + $0x120] sm:$0xff] }
 0x2f6   : > { %3041 = vst [vmem:[#allocation2 + $0x180] sm:$0xff] %v2977_v28  ;;  %v2985_v39 = vadd.f32 %v2486_v35, %v705_v27  ;;  %v2488_v20 = vpop.f32.mrb[15].mxu0  ;;  %3043 = vst [vmem:[#allocation2 + $0x190] sm:$0xff] %v2979_v12  ;;  %v2987_v42 = vadd.f32 %v2632_v41, %v707_v11  ;;  %v2634_v44 = vpop.f32.mrb[15].mxu1  ;;  %v687_v11 = vld [vmem:[#allocation2 + $0x130] sm:$0xff]  ;;  %v693_v34 = vld [vmem:[#allocation2 + $0x160] sm:$0xff] }
 0x2f7   : > { %3042 = vst [vmem:[#allocation2 + $0x188] sm:$0xff] %v2978_v33  ;;  %v2986_v43 = vadd.f32 %v2488_v20, %v706_v30  ;;  %3044 = vst [vmem:[#allocation2 + $0x198] sm:$0xff] %v2980_v37  ;;  %v2988_v45 = vadd.f32 %v2634_v44, %v708_v36  ;;  %v686_v30 = vld [vmem:[#allocation2 + $0x128] sm:$0xff]  ;;  %v688_v33 = vld [vmem:[#allocation2 + $0x138] sm:$0xff] }
 0x2f8   : > { %3049 = vst [vmem:[#allocation2 + $0x1c0] sm:$0xff] %v2985_v39  ;;  %3051 = vst [vmem:[#allocation2 + $0x1d0] sm:$0xff] %v2987_v42  ;;  %v695_v39 = vld [vmem:[#allocation2 + $0x170] sm:$0xff]  ;;  %v694_v41 = vld [vmem:[#allocation2 + $0x168] sm:$0xff] }
 0x2f9   : > { %3050 = vst [vmem:[#allocation2 + $0x1c8] sm:$0xff] %v2986_v43  ;;  %3052 = vst [vmem:[#allocation2 + $0x1d8] sm:$0xff] %v2988_v45  ;;  %v696_v45 = vld [vmem:[#allocation2 + $0x178] sm:$0xff] }
 0x35b   : > { %v2744_v31 = vpop.f32.mrb[16].mxu0  ;;  %v2890_v54 = vpop.f32.mrb[16].mxu1 }
 0x35c   : > { %v2933_v53 = vadd.f32 %v2744_v31, %v653_v46  ;;  %v2746_v55 = vpop.f32.mrb[17].mxu0  ;;  %v2935_v38 = vadd.f32 %v2890_v54, %v655_v47  ;;  %v2892_v62 = vpop.f32.mrb[17].mxu1 }
 0x35d   : > { %v2934_v60 = vadd.f32 %v2746_v55, %v654_v48  ;;  %v2748_v63 = vpop.f32.mrb[18].mxu0  ;;  %v2936_v1 = vadd.f32 %v2892_v62, %v656_v50  ;;  %v2894_v57 = vpop.f32.mrb[18].mxu1  ;;  %v701_v55 = vld [vmem:[#allocation2 + $0x1a0] sm:$0xff] }
 0x35e   : > { %2997 = vst [vmem:[#allocation2 + $0x20] sm:$0xff] %v2933_v53  ;;  %v2941_v2 = vadd.f32 %v2748_v63, %v661_v51  ;;  %v2750_v49 = vpop.f32.mrb[19].mxu0  ;;  %2999 = vst [vmem:[#allocation2 + $0x30] sm:$0xff] %v2935_v38  ;;  %v2943_v3 = vadd.f32 %v2894_v57, %v663_v58  ;;  %v2896_v6 = vpop.f32.mrb[19].mxu1  ;;  %v703_v58 = vld [vmem:[#allocation2 + $0x1b0] sm:$0xff]  ;;  %v709_v62 = vld [vmem:[#allocation2 + $0x1e0] sm:$0xff] }
 0x35f   : > { %2998 = vst [vmem:[#allocation2 + $0x28] sm:$0xff] %v2934_v60  ;;  %v2942_v5 = vadd.f32 %v2750_v49, %v662_v59  ;;  %3000 = vst [vmem:[#allocation2 + $0x38] sm:$0xff] %v2936_v1  ;;  %v2944_v7 = vadd.f32 %v2896_v6, %v664_v0  ;;  %v702_v59 = vld [vmem:[#allocation2 + $0x1a8] sm:$0xff]  ;;  %v704_v60 = vld [vmem:[#allocation2 + $0x1b8] sm:$0xff] }
 0x360   : > { %3005 = vst [vmem:[#allocation2 + $0x60] sm:$0xff] %v2941_v2  ;;  %3007 = vst [vmem:[#allocation2 + $0x70] sm:$0xff] %v2943_v3  ;;  %v711_v2 = vld [vmem:[#allocation2 + $0x1f0] sm:$0xff]  ;;  %v710_v57 = vld [vmem:[#allocation2 + $0x1e8] sm:$0xff] }
 0x361   : > { %3006 = vst [vmem:[#allocation2 + $0x68] sm:$0xff] %v2942_v5  ;;  %3008 = vst [vmem:[#allocation2 + $0x78] sm:$0xff] %v2944_v7  ;;  %v712_v7 = vld [vmem:[#allocation2 + $0x1f8] sm:$0xff] }
 0x363   : > { %v2754_v56 = vpop.f32.mrb[20].mxu0  ;;  %v2900_v17 = vpop.f32.mrb[20].mxu1 }
 0x364   : > { %v2949_v16 = vadd.f32 %v2754_v56, %v669_v8  ;;  %v2756_v32 = vpop.f32.mrb[21].mxu0  ;;  %v2951_v52 = vadd.f32 %v2900_v17, %v671_v10  ;;  %v2902_v22 = vpop.f32.mrb[21].mxu1 }
 0x365   : > { %v2950_v21 = vadd.f32 %v2756_v32, %v670_v13  ;;  %v2758_v4 = vpop.f32.mrb[22].mxu0  ;;  %v2952_v23 = vadd.f32 %v2902_v22, %v672_v14  ;;  %v2904_v25 = vpop.f32.mrb[22].mxu1  ;;  %v7774_v32 = vld [vmem:[#allocation9 + $0x4] ss:$16 sps:$4 sm:$0xff] (!%p6927_p10)  }
 0x366   : > { %3013 = vst [vmem:[#allocation2 + $0xa0] sm:$0xff] %v2949_v16  ;;  %v2957_v24 = vadd.f32 %v2758_v4, %v677_v15  ;;  %v2760_v9 = vpop.f32.mrb[23].mxu0  ;;  %3015 = vst [vmem:[#allocation2 + $0xb0] sm:$0xff] %v2951_v52  ;;  %v2959_v26 = vadd.f32 %v2904_v25, %v679_v40  ;;  %v2906_v28 = vpop.f32.mrb[23].mxu1  ;;  %v7776_v40 = vld [vmem:[#allocation9 + $0x204] ss:$16 sps:$4 sm:$0xff] (!%p6927_p10)   ;;  %4885 = vmatprep.subr.bf16.mxu1 (!%p6927_p10), %v7774_v32 }
 0x367   : > { %3014 = vst [vmem:[#allocation2 + $0xa8] sm:$0xff] %v2950_v21  ;;  %v2958_v27 = vadd.f32 %v2760_v9, %v678_v19  ;;  %3016 = vst [vmem:[#allocation2 + $0xb8] sm:$0xff] %v2952_v23  ;;  %v2960_v18 = vadd.f32 %v2906_v28, %v680_v61  ;;  %v7778_v19 = vld [vmem:[#allocation9] ss:$16 sps:$4 sm:$0xff] (!%p6927_p10)   ;;  %4958 = vmatprep.subr.bf16.mxu0 (!%p6927_p10), %v7776_v40  ;;  %v7780_v21 = vld [vmem:[#allocation9 + $0x24] ss:$16 sps:$4 sm:$0xff] (!%p6927_p10)  }
 0x368   : > { %3021 = vst [vmem:[#allocation2 + $0xe0] sm:$0xff] %v2957_v24  ;;  %3023 = vst [vmem:[#allocation2 + $0xf0] sm:$0xff] %v2959_v26  ;;  %v7779_v52 = vld [vmem:[#allocation9 + $0x200] ss:$16 sps:$4 sm:$0xff] (!%p6927_p10)   ;;  %4886 = vmatpush1.bf16.msra.mxu1 (!%p6927_p10), %v7778_v19  ;;  %v7782_v22 = vld [vmem:[#allocation9 + $0x224] ss:$16 sps:$4 sm:$0xff] (!%p6927_p10)  }
 0x369   : > { %3022 = vst [vmem:[#allocation2 + $0xe8] sm:$0xff] %v2958_v27  ;;  %3024 = vst [vmem:[#allocation2 + $0xf8] sm:$0xff] %v2960_v18  ;;  %4959 = vmatpush1.bf16.msra.mxu0 (!%p6927_p10), %v7779_v52  ;;  %v7784_v4 = vld [vmem:[#allocation9 + $0x20] ss:$16 sps:$4 sm:$0xff] (!%p6927_p10)   ;;  %4887 = vmatprep.subr.bf16.mxu1 (!%p6927_p10), %v7780_v21  ;;  %v7786_v23 = vld [vmem:[#allocation9 + $0x44] ss:$16 sps:$4 sm:$0xff] (!%p6927_p10)  }
 0x36a   : > { %v7785_v61 = vld [vmem:[#allocation9 + $0x220] ss:$16 sps:$4 sm:$0xff] (!%p6927_p10)   ;;  %4960 = vmatprep.subr.bf16.mxu0 (!%p6927_p10), %v7782_v22  ;;  %v7788_v24 = vld [vmem:[#allocation9 + $0x244] ss:$16 sps:$4 sm:$0xff] (!%p6927_p10)  }
 0x36b   : > { %v2764_v12 = vpop.f32.mrb[24].mxu0  ;;  %v2910_v36 = vpop.f32.mrb[24].mxu1  ;;  %v7790_v25 = vld [vmem:[#allocation9 + $0x40] ss:$16 sps:$4 sm:$0xff] (!%p6927_p10)   ;;  %v7792_v26 = vld [vmem:[#allocation9 + $0x64] ss:$16 sps:$4 sm:$0xff] (!%p6927_p10)  }
 0x36c   : > { %v2965_v35 = vadd.f32 %v2764_v12, %v685_v29  ;;  %v2766_v37 = vpop.f32.mrb[25].mxu0  ;;  %v2967_v20 = vadd.f32 %v2910_v36, %v687_v11  ;;  %v2912_v43 = vpop.f32.mrb[25].mxu1  ;;  %v7791_v9 = vld [vmem:[#allocation9 + $0x240] ss:$16 sps:$4 sm:$0xff] (!%p6927_p10)   ;;  %4888 = vmatpush1.bf16.msra.mxu1 (!%p6927_p10), %v7784_v4  ;;  %v7794_v27 = vld [vmem:[#allocation9 + $0x264] ss:$16 sps:$4 sm:$0xff] (!%p6927_p10)  }
 0x36d   : > { %v2966_v42 = vadd.f32 %v2766_v37, %v686_v30  ;;  %v2768_v44 = vpop.f32.mrb[26].mxu0  ;;  %v2968_v46 = vadd.f32 %v2912_v43, %v688_v33  ;;  %v2914_v48 = vpop.f32.mrb[26].mxu1  ;;  %4961 = vmatpush1.bf16.msra.mxu0 (!%p6927_p10), %v7785_v61  ;;  %4889 = vmatprep.subr.bf16.mxu1 (!%p6927_p10), %v7786_v23  ;;  %v7796_v28 = vld [vmem:[#allocation9 + $0x60] ss:$16 sps:$4 sm:$0xff] (!%p6927_p10)   ;;  %v7798_v29 = vld [vmem:[#allocation9 + $0x84] ss:$16 sps:$4 sm:$0xff] (!%p6927_p10)  }
 0x36e   : > { %3029 = vst [vmem:[#allocation2 + $0x120] sm:$0xff] %v2965_v35  ;;  %v2973_v47 = vadd.f32 %v2768_v44, %v693_v34  ;;  %v2770_v31 = vpop.f32.mrb[27].mxu0  ;;  %3031 = vst [vmem:[#allocation2 + $0x130] sm:$0xff] %v2967_v20  ;;  %v2975_v50 = vadd.f32 %v2914_v48, %v695_v39  ;;  %v2916_v53 = vpop.f32.mrb[27].mxu1  ;;  %4962 = vmatprep.subr.bf16.mxu0 (!%p6927_p10), %v7788_v24  ;;  %v7797_v18 = vld [vmem:[#allocation9 + $0x260] ss:$16 sps:$4 sm:$0xff] (!%p6927_p10)  }
 0x36f   : > { %3030 = vst [vmem:[#allocation2 + $0x128] sm:$0xff] %v2966_v42  ;;  %v2974_v51 = vadd.f32 %v2770_v31, %v694_v41  ;;  %3032 = vst [vmem:[#allocation2 + $0x138] sm:$0xff] %v2968_v46  ;;  %v2976_v54 = vadd.f32 %v2916_v53, %v696_v45  ;;  %v7800_v11 = vld [vmem:[#allocation9 + $0x284] ss:$16 sps:$4 sm:$0xff] (!%p6927_p10)   ;;  %v7802_v30 = vld [vmem:[#allocation9 + $0x80] ss:$16 sps:$4 sm:$0xff] (!%p6927_p10)  }
 0x370   : > { %3037 = vst [vmem:[#allocation2 + $0x160] sm:$0xff] %v2973_v47  ;;  %3039 = vst [vmem:[#allocation2 + $0x170] sm:$0xff] %v2975_v50  ;;  %4890 = vmatpush1.bf16.msra.mxu1 (!%p6927_p10), %v7790_v25  ;;  %v7803_v12 = vld [vmem:[#allocation9 + $0x280] ss:$16 sps:$4 sm:$0xff] (!%p6927_p10)   ;;  %v7804_v33 = vld [vmem:[#allocation9 + $0xa4] ss:$16 sps:$4 sm:$0xff] (!%p6927_p10)  }
 0x371   : > { %3038 = vst [vmem:[#allocation2 + $0x168] sm:$0xff] %v2974_v51  ;;  %3040 = vst [vmem:[#allocation2 + $0x178] sm:$0xff] %v2976_v54  ;;  %4963 = vmatpush1.bf16.msra.mxu0 (!%p6927_p10), %v7791_v9  ;;  %4891 = vmatprep.subr.bf16.mxu1 (!%p6927_p10), %v7792_v26  ;;  %v7806_v34 = vld [vmem:[#allocation9 + $0x2a4] ss:$16 sps:$4 sm:$0xff] (!%p6927_p10)   ;;  %v7808_v35 = vld [vmem:[#allocation9 + $0xa0] ss:$16 sps:$4 sm:$0xff] (!%p6927_p10)   ;;  %v3127_v51 = vlaneseq (!%p6927_p10) }
 0x372   : > { %4964 = vmatprep.subr.bf16.mxu0 (!%p6927_p10), %v7794_v27  ;;  %v7809_v36 = vld [vmem:[#allocation9 + $0x2a0] ss:$16 sps:$4 sm:$0xff] (!%p6927_p10)   ;;  %v7810_v37 = vld [vmem:[#allocation9 + $0xc4] ss:$16 sps:$4 sm:$0xff] (!%p6927_p10)  }
 0x373   : > { %v2774_v38 = vpop.f32.mrb[28].mxu0  ;;  %v2920_v0 = vpop.f32.mrb[28].mxu1  ;;  %3060 = sbr.rel (%p6927_p10) target bundleno = 2100 (0x834), region = 116  ;;  %v7812_v39 = vld [vmem:[#allocation9 + $0x2c4] ss:$16 sps:$4 sm:$0xff] (!%p6927_p10)  }
 0x374   : > { %v2981_v63 = vadd.f32 %v2774_v38, %v701_v55  ;;  %v2776_v1 = vpop.f32.mrb[29].mxu0  ;;  %v2983_v49 = vadd.f32 %v2920_v0, %v703_v58  ;;  %v2922_v5 = vpop.f32.mrb[29].mxu1  ;;  %4892 = vmatpush1.bf16.msra.mxu1 (!%p6927_p10), %v7796_v28  ;;  %v7814_v41 = vld [vmem:[#allocation9 + $0xc0] ss:$16 sps:$4 sm:$0xff] (!%p6927_p10)   ;;  %v7816_v42 = vld [vmem:[#allocation9 + $0xe4] ss:$16 sps:$4 sm:$0xff] (!%p6927_p10)  }
 0x375   : > { %v2982_v3 = vadd.f32 %v2776_v1, %v702_v59  ;;  %v2778_v6 = vpop.f32.mrb[30].mxu0  ;;  %v2984_v8 = vadd.f32 %v2922_v5, %v704_v60  ;;  %v2924_v13 = vpop.f32.mrb[30].mxu1  ;;  %4965 = vmatpush1.bf16.msra.mxu0 (!%p6927_p10), %v7797_v18  ;;  %4893 = vmatprep.subr.bf16.mxu1 (!%p6927_p10), %v7798_v29  ;;  %v7815_v20 = vld [vmem:[#allocation9 + $0x2c0] ss:$16 sps:$4 sm:$0xff] (!%p6927_p10)   ;;  %v7818_v43 = vld [vmem:[#allocation9 + $0x2e4] ss:$16 sps:$4 sm:$0xff] (!%p6927_p10)  }
 0x376   : > { %3045 = vst [vmem:[#allocation2 + $0x1a0] sm:$0xff] %v2981_v63  ;;  %v2989_v10 = vadd.f32 %v2778_v6, %v709_v62  ;;  %v2780_v56 = vpop.f32.mrb[31].mxu0  ;;  %3047 = vst [vmem:[#allocation2 + $0x1b0] sm:$0xff] %v2983_v49  ;;  %v2991_v14 = vadd.f32 %v2924_v13, %v711_v2  ;;  %v2926_v16 = vpop.f32.mrb[31].mxu1  ;;  %4966 = vmatprep.subr.bf16.mxu0 (!%p6927_p10), %v7800_v11  ;;  %v7820_v44 = vld [vmem:[#allocation9 + $0xe0] ss:$16 sps:$4 sm:$0xff] (!%p6927_p10)  }
 0x377   : > { %3046 = vst [vmem:[#allocation2 + $0x1a8] sm:$0xff] %v2982_v3  ;;  %v2990_v15 = vadd.f32 %v2780_v56, %v710_v57  ;;  %3048 = vst [vmem:[#allocation2 + $0x1b8] sm:$0xff] %v2984_v8  ;;  %v2992_v17 = vadd.f32 %v2926_v16, %v712_v7  ;;  %v7821_v45 = vld [vmem:[#allocation9 + $0x2e0] ss:$16 sps:$4 sm:$0xff] (!%p6927_p10)   ;;  %v7822_v46 = vld [vmem:[#allocation9 + $0x104] ss:$16 sps:$4 sm:$0xff] (!%p6927_p10)  }
 0x378   : > { %3053 = vst [vmem:[#allocation2 + $0x1e0] sm:$0xff] %v2989_v10  ;;  %3055 = vst [vmem:[#allocation2 + $0x1f0] sm:$0xff] %v2991_v14  ;;  %4894 = vmatpush1.bf16.msra.mxu1 (!%p6927_p10), %v7802_v30  ;;  %v7824_v47 = vld [vmem:[#allocation9 + $0x304] ss:$16 sps:$4 sm:$0xff] (!%p6927_p10)   ;;  %v7826_v48 = vld [vmem:[#allocation9 + $0x100] ss:$16 sps:$4 sm:$0xff] (!%p6927_p10)  }
 0x379   : > { %3054 = vst [vmem:[#allocation2 + $0x1e8] sm:$0xff] %v2990_v15  ;;  %3056 = vst [vmem:[#allocation2 + $0x1f8] sm:$0xff] %v2992_v17  ;;  %4967 = vmatpush1.bf16.msra.mxu0 (!%p6927_p10), %v7803_v12  ;;  %4895 = vmatprep.subr.bf16.mxu1 (!%p6927_p10), %v7804_v33  ;;  %v7827_v31 = vld [vmem:[#allocation9 + $0x300] ss:$16 sps:$4 sm:$0xff] (!%p6927_p10)   ;;  %v7828_v50 = vld [vmem:[#allocation9 + $0x124] ss:$16 sps:$4 sm:$0xff] (!%p6927_p10)  }
 0x37a   : > { %4968 = vmatprep.subr.bf16.mxu0 %v7806_v34  ;;  %v7830_v53 = vld [vmem:[#allocation9 + $0x324] ss:$16 sps:$4 sm:$0xff]   ;;  %v7832_v54 = vld [vmem:[#allocation9 + $0x120] ss:$16 sps:$4 sm:$0xff]   ;;  %v9607_v59 = vshrl.u32 %v3127_v51, 7  ;;  %v9614_v7 = vld [vmem:[#allocation8] sm:$0xff] }
 0x37b   : > { %v7833_v55 = vld [vmem:[#allocation9 + $0x320] ss:$16 sps:$4 sm:$0xff]   ;;  %v7834_v58 = vld [vmem:[#allocation9 + $0x144] ss:$16 sps:$4 sm:$0xff]   ;;  %v3061_v29 = vld [vmem:[#allocation2] sm:$0xff] }
 0x37c   : > { %4896 = vmatpush1.bf16.msra.mxu1 %v7808_v35  ;;  %v7836_v38 = vld [vmem:[#allocation9 + $0x344] ss:$16 sps:$4 sm:$0xff]   ;;  %v7838_v60 = vld [vmem:[#allocation9 + $0x140] ss:$16 sps:$4 sm:$0xff]   ;;  %v9610_v0 = vsub.s32 1, %v9607_v59  ;;  %v3141_v1 = vsub.s32 3, %v9607_v59 }
 0x37d   : > { %4969 = vmatpush1.bf16.msra.mxu0 %v7809_v36  ;;  %4897 = vmatprep.subr.bf16.mxu1 %v7810_v37  ;;  %v7839_v62 = vld [vmem:[#allocation9 + $0x340] ss:$16 sps:$4 sm:$0xff]   ;;  %v7840_v63 = vld [vmem:[#allocation9 + $0x164] ss:$16 sps:$4 sm:$0xff]   ;;  %v3145_v57 = vsub.s32 4, %v9607_v59  ;;  %v9631_v40 = vsub.s32 0, %v9607_v59 }
 0x37e   : > { %4970 = vmatprep.subr.bf16.mxu0 %v7812_v39  ;;  %v7842_v2 = vld [vmem:[#allocation9 + $0x364] ss:$16 sps:$4 sm:$0xff]   ;;  %v7844_v49 = vld [vmem:[#allocation9 + $0x160] ss:$16 sps:$4 sm:$0xff]   ;;  %v9618_v10 = vrot.slane %v9614_v7, %v9610_v0  ;;  %v9623_v14 = vrot.slane %v9614_v7, %v3141_v1  ;;  %v3137_v4 = vsub.s32 2, %v9607_v59  ;;  %v3069_v30 = vld [vmem:[#allocation2 + $0x40] sm:$0xff] }
 0x37f   : > { %v7845_v3 = vld [vmem:[#allocation9 + $0x360] ss:$16 sps:$4 sm:$0xff]   ;;  %v7846_v8 = vld [vmem:[#allocation9 + $0x184] ss:$16 sps:$4 sm:$0xff]   ;;  %v9626_v16 = vrot.slane %v9614_v7, %v3145_v57  ;;  %v9640_v11 = vrot.slane %v9614_v7, %v9631_v40  ;;  %v3063_v34 = vld [vmem:[#allocation2 + $0x10] sm:$0xff] }
 0x380   : > { %4898 = vmatpush1.bf16.msra.mxu1 %v7814_v41  ;;  %v3062_v5 = vld [vmem:[#allocation2 + $0x8] sm:$0xff]  ;;  %v3064_v13 = vld [vmem:[#allocation2 + $0x18] sm:$0xff]  ;;  %v9647_v33 = vrot.slane %v9614_v7, %v3137_v4  ;;  %v3071_v35 = vld [vmem:[#allocation2 + $0x50] sm:$0xff] }
 0x381   : > { %4971 = vmatpush1.bf16.msra.mxu0 %v7815_v20  ;;  %4899 = vmatprep.subr.bf16.mxu1 %v7816_v42  ;;  %v3070_v6 = vld [vmem:[#allocation2 + $0x48] sm:$0xff]  ;;  %v3072_v56 = vld [vmem:[#allocation2 + $0x58] sm:$0xff]  ;;  %v3168_v17 = vadd.f32 %v9618_v10, %v3062_v5  ;;  %v3170_v21 = vadd.f32 %v9623_v14, %v3064_v13  ;;  %v3167_v39 = vadd.f32 %v9640_v11, %v3061_v29  ;;  %v7881_v5 = vld [vmem:[#allocation9 + $0x2c] ss:$16 sps:$4 sm:$0xff]  }
 0x382   : > { %4972 = vmatprep.subr.bf16.mxu0 %v7818_v43  ;;  %v7848_v15 = vld [vmem:[#allocation9 + $0x384] ss:$16 sps:$4 sm:$0xff]   ;;  %v3176_v32 = vadd.f32 %v9618_v10, %v3070_v6  ;;  %v7850_v19 = vld [vmem:[#allocation9 + $0x180] ss:$16 sps:$4 sm:$0xff]   ;;  %v3178_v22 = vadd.f32 %v9623_v14, %v3072_v56  ;;  %v3175_v41 = vadd.f32 %v9640_v11, %v3069_v30  ;;  %v3169_v20 = vadd.f32 %v9647_v33, %v3063_v34  ;;  %v7887_v56 = vld [vmem:[#allocation9 + $0x4c] ss:$16 sps:$4 sm:$0xff]  }
 0x383   : > { %v7851_v52 = vld [vmem:[#allocation9 + $0x380] ss:$16 sps:$4 sm:$0xff]   ;;  %v7852_v61 = vld [vmem:[#allocation9 + $0x1a4] ss:$16 sps:$4 sm:$0xff]   ;;  %v3232_v23 = vmax.f32 %v3168_v17, 0.0  ;;  %v3234_v9 = vmax.f32 %v3170_v21, 0.0  ;;  %v3177_v42 = vadd.f32 %v9647_v33, %v3071_v35 }
 0x384   : > { %4900 = vmatpush1.bf16.msra.mxu1 %v7820_v44  ;;  %v3240_v24 = vmax.f32 %v3176_v32, 0.0  ;;  %v7854_v25 = vld [vmem:[#allocation9 + $0x3a4] ss:$16 sps:$4 sm:$0xff]   ;;  %v3242_v26 = vmax.f32 %v3178_v22, 0.0  ;;  %v7856_v27 = vld [vmem:[#allocation9 + $0x1a0] ss:$16 sps:$4 sm:$0xff]  }
 0x385   : > { %4973 = vmatpush1.bf16.msra.mxu0 %v7821_v45  ;;  %4901 = vmatprep.subr.bf16.mxu1 %v7822_v46  ;;  %v7857_v28 = vld [vmem:[#allocation9 + $0x3a0] ss:$16 sps:$4 sm:$0xff]   ;;  %v7858_v36 = vld [vmem:[#allocation9 + $0x1c4] ss:$16 sps:$4 sm:$0xff]   ;;  %v3157_v45 = vsub.s32 7, %v9607_v59  ;;  %v3239_v51 = vmax.f32 %v3175_v41, 0.0 }
 0x386   : > { %4974 = vmatprep.subr.bf16.mxu0 %v7824_v47  ;;  %v9636_v18 = vpack.c.bf16 %v3240_v24, %v3232_v23  ;;  %v9642_v12 = vpack.c.bf16 %v3242_v26, %v3234_v9  ;;  %v7860_v37 = vld [vmem:[#allocation9 + $0x3c4] ss:$16 sps:$4 sm:$0xff]   ;;  %v7862_v43 = vld [vmem:[#allocation9 + $0x1c0] ss:$16 sps:$4 sm:$0xff]   ;;  %v7885_v17 = vld [vmem:[#allocation9 + $0x48] ss:$16 sps:$4 sm:$0xff]  }
 0x387   : > { %v7863_v44 = vld [vmem:[#allocation9 + $0x3c0] ss:$16 sps:$4 sm:$0xff]   ;;  %v7864_v46 = vld [vmem:[#allocation9 + $0x1e4] ss:$16 sps:$4 sm:$0xff]   ;;  %v3085_v23 = vld [vmem:[#allocation2 + $0xc0] sm:$0xff] }
 0x388   : > { %4902 = vmatpush1.bf16.msra.mxu1 %v7826_v48  ;;  %4917 = vmatprep.mubr.bf16.mxu1 %v9636_v18  ;;  %v7866_v47 = vld [vmem:[#allocation9 + $0x3e4] ss:$16 sps:$4 sm:$0xff]   ;;  %v3153_v48 = vsub.s32 6, %v9607_v59  ;;  %v7870_v57 = vld [vmem:[#allocation9 + $0x400] ss:$16 sps:$4 sm:$0xff]   ;;  %v3191_v9 = vadd.f32 %v9640_v11, %v3085_v23  ;;  %v3079_v41 = vld [vmem:[#allocation2 + $0x90] sm:$0xff] }
 0x389   : > { %4975 = vmatpush1.bf16.msra.mxu0 %v7827_v31  ;;  %4903 = vmatprep.subr.bf16.mxu1 %v7828_v50  ;;  %v3231_v31 = vmax.f32 %v3167_v39, 0.0  ;;  %v9658_v50 = vrot.slane %v9614_v7, %v3157_v45  ;;  %v7876_v6 = vld [vmem:[#allocation9 + $0x420] ss:$16 sps:$4 sm:$0xff]   ;;  %v7884_v13 = vld [vmem:[#allocation9 + $0x444] ss:$16 sps:$4 sm:$0xff]   ;;  %v3185_v45 = vadd.f32 %v9647_v33, %v3079_v41 }
 0x38a   : > { %4976 = vmatprep.subr.bf16.mxu0 %v7830_v53  ;;  %4990 = vmatprep.mubr.bf16.mxu0 %v9642_v12  ;;  %v3233_v53 = vmax.f32 %v3169_v20, 0.0  ;;  %v7890_v32 = vld [vmem:[#allocation9 + $0x464] ss:$16 sps:$4 sm:$0xff]   ;;  %v7891_v29 = vld [vmem:[#allocation9 + $0x68] ss:$16 sps:$4 sm:$0xff]   ;;  %v3255_v39 = vmax.f32 %v3191_v9, 0.0 }
 0x38b   : > { %v3086_v21 = vld [vmem:[#allocation2 + $0xc8] sm:$0xff]  ;;  %v3080_v26 = vld [vmem:[#allocation2 + $0x98] sm:$0xff]  ;;  %v7911_v9 = vld [vmem:[#allocation9 + $0xcc] ss:$16 sps:$4 sm:$0xff]  }
 0x38c   : > { %4904 = vmatpush1.bf16.msra.mxu1 %v7832_v54  ;;  %v3241_v54 = vmax.f32 %v3177_v42, 0.0  ;;  %v3192_v24 = vadd.f32 %v9618_v10, %v3086_v21  ;;  %v3186_v34 = vadd.f32 %v9623_v14, %v3080_v26  ;;  %v7896_v20 = vld [vmem:[#allocation9 + $0x484] ss:$16 sps:$4 sm:$0xff]   ;;  %v7899_v42 = vld [vmem:[#allocation9 + $0x8c] ss:$16 sps:$4 sm:$0xff]  }
 0x38d   : > { %4977 = vmatpush1.bf16.msra.mxu0 %v7833_v55  ;;  %4905 = vmatprep.subr.bf16.mxu1 %v7834_v58  ;;  %v9661_v55 = vrot.slane %v9614_v7, %v3153_v48  ;;  %v7868_v58 = vld [vmem:[#allocation9 + $0x1e0] ss:$16 sps:$4 sm:$0xff]  }
 0x38e   : > { %4978 = vmatprep.subr.bf16.mxu0 %v7836_v38  ;;  %v7869_v38 = vld [vmem:[#allocation9 + $0x3e0] ss:$16 sps:$4 sm:$0xff]  }
 0x38f   : > { %v7894_v48 = vld [vmem:[#allocation9 + $0x480] ss:$16 sps:$4 sm:$0xff]  }
 0x390   : > { %4906 = vmatpush1.bf16.msra.mxu1 %v7838_v60  ;;  %v7872_v60 = vld [vmem:[#allocation9 + $0x404] ss:$16 sps:$4 sm:$0xff]  }
 0x391   : > { %4979 = vmatpush1.bf16.msra.mxu0 %v7839_v62  ;;  %4907 = vmatprep.subr.bf16.mxu1 %v7840_v63  ;;  %v7875_v62 = vld [vmem:[#allocation9 + $0xc] ss:$16 sps:$4 sm:$0xff]   ;;  %v9663_v63 = vpack.c.bf16 %v3239_v51, %v3231_v31  ;;  %v7897_v31 = vld [vmem:[#allocation9 + $0x88] ss:$16 sps:$4 sm:$0xff]  }
 0x392   : > { %4980 = vmatprep.subr.bf16.mxu0 %v7842_v2  ;;  %v9665_v2 = vpack.c.bf16 %v3241_v54, %v3233_v53 }
 0x394   : > { %4908 = vmatpush1.bf16.msra.mxu1 %v7844_v49  ;;  %v7873_v49 = vld [vmem:[#allocation9 + $0x8] ss:$16 sps:$4 sm:$0xff]  }
 0x395   : > { %4981 = vmatpush1.bf16.msra.mxu0 %v7845_v3  ;;  %4909 = vmatprep.subr.bf16.mxu1 %v7846_v8  ;;  %v7878_v3 = vld [vmem:[#allocation9 + $0x424] ss:$16 sps:$4 sm:$0xff]   ;;  %v7879_v8 = vld [vmem:[#allocation9 + $0x28] ss:$16 sps:$4 sm:$0xff]  }
 0x396   : > { %4982 = vmatprep.subr.bf16.mxu0 %v7848_v15  ;;  %v7882_v15 = vld [vmem:[#allocation9 + $0x440] ss:$16 sps:$4 sm:$0xff]  }
 0x398   : > { %4910 = vmatpush1.bf16.msra.mxu1 %v7850_v19  ;;  %v7893_v19 = vld [vmem:[#allocation9 + $0x6c] ss:$16 sps:$4 sm:$0xff]  }
 0x399   : > { %4983 = vmatpush1.bf16.msra.mxu0 %v7851_v52  ;;  %4911 = vmatprep.subr.bf16.mxu1 %v7852_v61  ;;  %v3078_v52 = vld [vmem:[#allocation2 + $0x88] sm:$0xff]  ;;  %v3077_v61 = vld [vmem:[#allocation2 + $0x80] sm:$0xff] }
 0x39a   : > { %4984 = vmatprep.subr.bf16.mxu0 %v7854_v25  ;;  %v3184_v22 = vadd.f32 %v9618_v10, %v3078_v52  ;;  %v3183_v25 = vadd.f32 %v9640_v11, %v3077_v61  ;;  %v7908_v61 = vld [vmem:[#allocation9 + $0x4c4] ss:$16 sps:$4 sm:$0xff]  }
 0x39c   : > { %4912 = vmatpush1.bf16.msra.mxu1 %v7856_v27  ;;  %v3088_v27 = vld [vmem:[#allocation2 + $0xd8] sm:$0xff]  ;;  %v3248_v30 = vmax.f32 %v3184_v22, 0.0 }
 0x39d   : > { %4985 = vmatpush1.bf16.msra.mxu0 %v7857_v28  ;;  %4913 = vmatprep.subr.bf16.mxu1 %v7858_v36  ;;  %v7888_v28 = vld [vmem:[#allocation9 + $0x460] ss:$16 sps:$4 sm:$0xff]   ;;  %v3194_v35 = vadd.f32 %v9623_v14, %v3088_v27  ;;  %v3256_v36 = vmax.f32 %v3192_v24, 0.0 }
 0x39e   : > { %4986 = vmatprep.subr.bf16.mxu0 %v7860_v37  ;;  %v3247_v37 = vmax.f32 %v3183_v25, 0.0 }
 0x3a0   : > { %4914 = vmatpush1.bf16.msra.mxu1 %v7862_v43  ;;  %v3250_v43 = vmax.f32 %v3186_v34, 0.0  ;;  %v9678_v51 = vpack.c.bf16 %v3255_v39, %v3247_v37  ;;  %v3103_v34 = vld [vmem:[#allocation2 + $0x150] sm:$0xff] }
 0x3a1   : > { %4987 = vmatpush1.bf16.msra.mxu0 %v7863_v44  ;;  %4915 = vmatprep.subr.bf16.mxu1 %v7864_v46  ;;  %v3258_v44 = vmax.f32 %v3194_v35, 0.0  ;;  %v9676_v46 = vpack.c.bf16 %v3256_v36, %v3248_v30  ;;  %v3095_v30 = vld [vmem:[#allocation2 + $0x110] sm:$0xff]  ;;  %v7906_v35 = vld [vmem:[#allocation9 + $0x4c0] ss:$16 sps:$4 sm:$0xff]   ;;  %v3209_v41 = vadd.f32 %v9647_v33, %v3103_v34 }
 0x3a2   : > { %4988 = vmatprep.subr.bf16.mxu0 %v7866_v47  ;;  %v3087_v47 = vld [vmem:[#allocation2 + $0xd0] sm:$0xff]  ;;  %v3201_v39 = vadd.f32 %v9647_v33, %v3095_v30 }
 0x3a3   : > { %v9680_v53 = vpack.c.bf16 %v3258_v44, %v3250_v43  ;;  %v3193_v54 = vadd.f32 %v9647_v33, %v3087_v47  ;;  %v7917_v43 = vld [vmem:[#allocation9 + $0xec] ss:$16 sps:$4 sm:$0xff]   ;;  %v7912_v47 = vld [vmem:[#allocation9 + $0x4e0] ss:$16 sps:$4 sm:$0xff]  }
 0x3a4   : > { %4916 = vmatpush1.bf16.msra.mxu1 %v7868_v58  ;;  %v3249_v58 = vmax.f32 %v3185_v45, 0.0  ;;  %v3265_v44 = vmax.f32 %v3201_v39, 0.0  ;;  %v3273_v45 = vmax.f32 %v3209_v41, 0.0  ;;  %v7929_v34 = vld [vmem:[#allocation9 + $0x12c] ss:$16 sps:$4 sm:$0xff]   ;;  %v3066_v39 = vld [vmem:[#allocation2 + $0x28] sm:$0xff] }
 0x3a5   : > { %4989 = vmatpush1.bf16.msra.mxu0 %v7869_v38  ;;  %5177 = vmatprep.subr.bf16.mxu1 %v7875_v62  ;;  %v7902_v38 = vld [vmem:[#allocation9 + $0x4a4] ss:$16 sps:$4 sm:$0xff]   ;;  %v3257_v62 = vmax.f32 %v3193_v54, 0.0 }
 0x3a6   : > { %5031 = vmatprep.subr.bf16.mxu0 %v7872_v60  ;;  %v7905_v60 = vld [vmem:[#allocation9 + $0xac] ss:$16 sps:$4 sm:$0xff]   ;;  %v3118_v54 = vld [vmem:[#allocation2 + $0x1c8] sm:$0xff] }
 0x3a7   : > { %4918 = vmatmul.mubr.bf16.vlgmr.msra.gmra.mrb[0].mxu1 %v9663_v63 }
 0x3a8   : > { %4991 = vmatmul.mubr.bf16.vlgmr.msra.gmra.mrb[0].mxu0 %v9665_v2  ;;  %5178 = vmatpush1.bf16.msra.mxu1 %v7873_v49  ;;  %v3102_v49 = vld [vmem:[#allocation2 + $0x148] sm:$0xff] }
 0x3a9   : > { %5032 = vmatpush1.bf16.msra.mxu0 %v7870_v57  ;;  %5179 = vmatprep.subr.bf16.mxu1 %v7881_v5  ;;  %v3094_v57 = vld [vmem:[#allocation2 + $0x108] sm:$0xff] }
 0x3aa   : > { %5033 = vmatprep.subr.bf16.mxu0 %v7878_v3  ;;  %v3093_v3 = vld [vmem:[#allocation2 + $0x100] sm:$0xff]  ;;  %v7900_v5 = vld [vmem:[#allocation9 + $0x4a0] ss:$16 sps:$4 sm:$0xff]   ;;  %4927 = vmatprep.mubr.bf16.mxu1 %v9676_v46 }
 0x3ab   : > { %5000 = vmatprep.mubr.bf16.mxu0 %v9680_v53 }
 0x3ac   : > { %5180 = vmatpush1.bf16.msra.mxu1 %v7879_v8  ;;  %v3208_v8 = vadd.f32 %v9618_v10, %v3102_v49  ;;  %v3117_v49 = vld [vmem:[#allocation2 + $0x1c0] sm:$0xff] }
 0x3ad   : > { %5034 = vmatpush1.bf16.msra.mxu0 %v7876_v6  ;;  %5181 = vmatprep.subr.bf16.mxu1 %v7887_v56  ;;  %v3200_v6 = vadd.f32 %v9618_v10, %v3094_v57  ;;  %v3199_v56 = vadd.f32 %v9640_v11, %v3093_v3  ;;  %v3224_v57 = vadd.f32 %v9618_v10, %v3118_v54 }
 0x3ae   : > { %5035 = vmatprep.subr.bf16.mxu0 %v7884_v13  ;;  %v3101_v13 = vld [vmem:[#allocation2 + $0x140] sm:$0xff]  ;;  %v3272_v24 = vmax.f32 %v3208_v8, 0.0  ;;  %v7920_v8 = vld [vmem:[#allocation9 + $0x504] ss:$16 sps:$4 sm:$0xff]  }
 0x3af   : > { %4928 = vmatmul.mubr.bf16.gmra.mrb[4].mxu1 %v9678_v51  ;;  %v3207_v52 = vadd.f32 %v9640_v11, %v3101_v13  ;;  %v3264_v23 = vmax.f32 %v3200_v6, 0.0  ;;  %v3263_v25 = vmax.f32 %v3199_v56, 0.0  ;;  %v3120_v6 = vld [vmem:[#allocation2 + $0x1d8] sm:$0xff]  ;;  %v3223_v13 = vadd.f32 %v9640_v11, %v3117_v49  ;;  %v7941_v49 = vld [vmem:[#allocation9 + $0x16c] ss:$16 sps:$4 sm:$0xff]  }
 0x3b0   : > { %5182 = vmatpush1.bf16.msra.mxu1 %v7885_v17  ;;  %v3104_v17 = vld [vmem:[#allocation2 + $0x158] sm:$0xff] }
 0x3b1   : > { %5036 = vmatpush1.bf16.msra.mxu0 %v7882_v15  ;;  %5183 = vmatprep.subr.bf16.mxu1 %v7893_v19  ;;  %v3096_v15 = vld [vmem:[#allocation2 + $0x118] sm:$0xff]  ;;  %v9689_v19 = vpack.c.bf16 %v3257_v62, %v3249_v58  ;;  %v3210_v22 = vadd.f32 %v9623_v14, %v3104_v17  ;;  %v3271_v26 = vmax.f32 %v3207_v52, 0.0  ;;  %v3109_v58 = vld [vmem:[#allocation2 + $0x180] sm:$0xff]  ;;  %v3288_v52 = vmax.f32 %v3224_v57, 0.0 }
 0x3b2   : > { %5037 = vmatprep.subr.bf16.mxu0 %v7890_v32  ;;  %v7903_v32 = vld [vmem:[#allocation9 + $0xa8] ss:$16 sps:$4 sm:$0xff]   ;;  %v3202_v21 = vadd.f32 %v9623_v14, %v3096_v15  ;;  %v3215_v3 = vadd.f32 %v9640_v11, %v3109_v58  ;;  %v3226_v15 = vadd.f32 %v9623_v14, %v3120_v6  ;;  %v7923_v17 = vld [vmem:[#allocation9 + $0x10c] ss:$16 sps:$4 sm:$0xff]   ;;  %v7930_v58 = vld [vmem:[#allocation9 + $0x540] ss:$16 sps:$4 sm:$0xff]  }
 0x3b3   : > { %5001 = vmatmul.mubr.bf16.gmra.mrb[4].mxu0 %v9689_v19  ;;  %v9697_v36 = vpack.c.bf16 %v3271_v26, %v3263_v25  ;;  %v3111_v11 = vld [vmem:[#allocation2 + $0x190] sm:$0xff]  ;;  %v7944_v6 = vld [vmem:[#allocation9 + $0x584] ss:$16 sps:$4 sm:$0xff]  }
 0x3b4   : > { %5184 = vmatpush1.bf16.msra.mxu1 %v7891_v29  ;;  %v3266_v27 = vmax.f32 %v3202_v21, 0.0  ;;  %v9695_v29 = vpack.c.bf16 %v3272_v24, %v3264_v23  ;;  %v7918_v21 = vld [vmem:[#allocation9 + $0x500] ss:$16 sps:$4 sm:$0xff]   ;;  %v3290_v23 = vmax.f32 %v3226_v15, 0.0  ;;  %v7921_v24 = vld [vmem:[#allocation9 + $0x108] ss:$16 sps:$4 sm:$0xff]   ;;  %v3217_v30 = vadd.f32 %v9647_v33, %v3111_v11 }
 0x3b5   : > { %5038 = vmatpush1.bf16.msra.mxu0 %v7888_v28  ;;  %5185 = vmatprep.subr.bf16.mxu1 %v7899_v42  ;;  %v3274_v28 = vmax.f32 %v3210_v22, 0.0  ;;  %v7914_v42 = vld [vmem:[#allocation9 + $0x4e4] ss:$16 sps:$4 sm:$0xff]   ;;  %v3287_v22 = vmax.f32 %v3223_v13, 0.0  ;;  %v7945_v13 = vld [vmem:[#allocation9 + $0x188] ss:$16 sps:$4 sm:$0xff]  }
 0x3b6   : > { %5039 = vmatprep.subr.bf16.mxu0 %v7896_v20  ;;  %v7909_v20 = vld [vmem:[#allocation9 + $0xc8] ss:$16 sps:$4 sm:$0xff]   ;;  %4937 = vmatprep.mubr.bf16.mxu1 %v9695_v29  ;;  %v7953_v15 = vld [vmem:[#allocation9 + $0x1ac] ss:$16 sps:$4 sm:$0xff]  }
 0x3b7   : > { %v9699_v37 = vpack.c.bf16 %v3274_v28, %v3266_v27  ;;  %4938 = vmatmul.mubr.bf16.gmra.mrb[8].mxu1 %v9697_v36 }
 0x3b8   : > { %5186 = vmatpush1.bf16.msra.mxu1 %v7897_v31  ;;  %v3110_v31 = vld [vmem:[#allocation2 + $0x188] sm:$0xff] }
 0x3b9   : > { %5040 = vmatpush1.bf16.msra.mxu0 %v7894_v48  ;;  %5187 = vmatprep.subr.bf16.mxu1 %v7905_v60  ;;  %v7915_v48 = vld [vmem:[#allocation9 + $0xe8] ss:$16 sps:$4 sm:$0xff]   ;;  %v9707_v60 = vpack.c.bf16 %v3273_v45, %v3265_v44  ;;  %v3216_v62 = vadd.f32 %v9618_v10, %v3110_v31  ;;  %v3279_v10 = vmax.f32 %v3215_v3, 0.0  ;;  %v7936_v3 = vld [vmem:[#allocation9 + $0x560] ss:$16 sps:$4 sm:$0xff]  }
 0x3ba   : > { %5041 = vmatprep.subr.bf16.mxu0 %v7902_v38  ;;  %5010 = vmatprep.mubr.bf16.mxu0 %v9699_v37  ;;  %v3149_v38 = vsub.s32 5, %v9607_v59  ;;  %v7927_v44 = vld [vmem:[#allocation9 + $0x128] ss:$16 sps:$4 sm:$0xff]  }
 0x3bb   : > { %5011 = vmatmul.mubr.bf16.gmra.mrb[8].mxu0 %v9707_v60  ;;  %v9721_v27 = vpack.c.bf16 %v3287_v22, %v3279_v10  ;;  %v3065_v10 = vld [vmem:[#allocation2 + $0x20] sm:$0xff] }
 0x3bc   : > { %5188 = vmatpush1.bf16.msra.mxu1 %v7903_v32  ;;  %v3280_v32 = vmax.f32 %v3216_v62, 0.0  ;;  %v9719_v26 = vrot.slane %v9614_v7, %v3149_v38  ;;  %v3281_v7 = vmax.f32 %v3217_v30, 0.0  ;;  %v7933_v38 = vld [vmem:[#allocation9 + $0x148] ss:$16 sps:$4 sm:$0xff]   ;;  %v7938_v62 = vld [vmem:[#allocation9 + $0x564] ss:$16 sps:$4 sm:$0xff]  }
 0x3bd   : > { %5042 = vmatpush1.bf16.msra.mxu0 %v7900_v5  ;;  %5189 = vmatprep.subr.bf16.mxu1 %v7911_v9  ;;  %v3112_v5 = vld [vmem:[#allocation2 + $0x198] sm:$0xff]  ;;  %v3119_v9 = vld [vmem:[#allocation2 + $0x1d0] sm:$0xff] }
 0x3be   : > { %5043 = vmatprep.subr.bf16.mxu0 %v7908_v61  ;;  %v3218_v56 = vadd.f32 %v9623_v14, %v3112_v5  ;;  %v9716_v25 = vpack.c.bf16 %v3288_v52, %v3280_v32  ;;  %v7926_v14 = vld [vmem:[#allocation9 + $0x524] ss:$16 sps:$4 sm:$0xff]   ;;  %v7939_v5 = vld [vmem:[#allocation9 + $0x168] ss:$16 sps:$4 sm:$0xff]   ;;  %v7959_v22 = vld [vmem:[#allocation9 + $0x1cc] ss:$16 sps:$4 sm:$0xff]  }
 0x3bf   : > { %v7951_v32 = vld [vmem:[#allocation9 + $0x1a8] ss:$16 sps:$4 sm:$0xff]   ;;  %v7956_v52 = vld [vmem:[#allocation9 + $0x5c4] ss:$16 sps:$4 sm:$0xff]   ;;  %v7960_v30 = vld [vmem:[#allocation9 + $0x5e0] ss:$16 sps:$4 sm:$0xff]  }
 0x3c0   : > { %5190 = vmatpush1.bf16.msra.mxu1 %v7909_v20  ;;  %v3282_v61 = vmax.f32 %v3218_v56, 0.0  ;;  %4947 = vmatprep.mubr.bf16.mxu1 %v9716_v25  ;;  %v3074_v20 = vld [vmem:[#allocation2 + $0x68] sm:$0xff] }
 0x3c1   : > { %5044 = vmatpush1.bf16.msra.mxu0 %v7906_v35  ;;  %5191 = vmatprep.subr.bf16.mxu1 %v7917_v43  ;;  %v3225_v35 = vadd.f32 %v9647_v33, %v3119_v9  ;;  %v7924_v43 = vld [vmem:[#allocation9 + $0x520] ss:$16 sps:$4 sm:$0xff]   ;;  %v3180_v45 = vadd.f32 %v9719_v26, %v3074_v20  ;;  %v7932_v33 = vld [vmem:[#allocation9 + $0x544] ss:$16 sps:$4 sm:$0xff]  }
 0x3c2   : > { %5045 = vmatprep.subr.bf16.mxu0 %v7914_v42  ;;  %v9723_v28 = vpack.c.bf16 %v3290_v23, %v3282_v61  ;;  %4948 = vmatmul.mubr.bf16.gmra.mrb[12].mxu1 %v9721_v27  ;;  %v3172_v42 = vadd.f32 %v9719_v26, %v3066_v39  ;;  %v7950_v56 = vld [vmem:[#allocation9 + $0x5a4] ss:$16 sps:$4 sm:$0xff]   ;;  %v7954_v61 = vld [vmem:[#allocation9 + $0x5c0] ss:$16 sps:$4 sm:$0xff]   ;;  %v7957_v23 = vld [vmem:[#allocation9 + $0x1c8] ss:$16 sps:$4 sm:$0xff]  }
 0x3c3   : > { %v3289_v41 = vmax.f32 %v3225_v35, 0.0  ;;  %v3244_v54 = vmax.f32 %v3180_v45, 0.0  ;;  %5209 = vmatprep.mubr.bf16.mxu1 %v9636_v18  ;;  %v7947_v18 = vld [vmem:[#allocation9 + $0x18c] ss:$16 sps:$4 sm:$0xff]   ;;  %v7962_v9 = vld [vmem:[#allocation9 + $0x5e4] ss:$16 sps:$4 sm:$0xff]  }
 0x3c4   : > { %5192 = vmatpush1.bf16.msra.mxu1 %v7915_v48  ;;  %5020 = vmatprep.mubr.bf16.mxu0 %v9723_v28  ;;  %v3236_v31 = vmax.f32 %v3172_v42, 0.0  ;;  %v7968_v39 = vld [vmem:[#allocation9 + $0x604] ss:$16 sps:$4 sm:$0xff]   ;;  %v7966_v20 = vld [vmem:[#allocation9 + $0x600] ss:$16 sps:$4 sm:$0xff]  }
 0x3c5   : > { %5046 = vmatpush1.bf16.msra.mxu0 %v7912_v47  ;;  %5193 = vmatprep.subr.bf16.mxu1 %v7923_v17  ;;  %v7935_v47 = vld [vmem:[#allocation9 + $0x14c] ss:$16 sps:$4 sm:$0xff]   ;;  %v9732_v48 = vpack.c.bf16 %v3289_v41, %v3281_v7  ;;  %v7948_v17 = vld [vmem:[#allocation9 + $0x5a0] ss:$16 sps:$4 sm:$0xff]   ;;  %v7969_v42 = vld [vmem:[#allocation9 + $0x208] ss:$16 sps:$4 sm:$0xff]  }
 0x3c6   : > { %5047 = vmatprep.subr.bf16.mxu0 %v7920_v8  ;;  %v9736_v57 = vpack.c.bf16 %v3244_v54, %v3236_v31  ;;  %v7942_v8 = vld [vmem:[#allocation9 + $0x580] ss:$16 sps:$4 sm:$0xff]   ;;  %v7971_v41 = vld [vmem:[#allocation9 + $0x20c] ss:$16 sps:$4 sm:$0xff]   ;;  %v7974_v54 = vld [vmem:[#allocation9 + $0x624] ss:$16 sps:$4 sm:$0xff]  }
 0x3c7   : > { %5021 = vmatmul.mubr.bf16.gmra.mrb[12].mxu0 %v9732_v48  ;;  %v3090_v45 = vld [vmem:[#allocation2 + $0xe8] sm:$0xff]  ;;  %v3089_v31 = vld [vmem:[#allocation2 + $0xe0] sm:$0xff] }
 0x3c8   : > { %5194 = vmatpush1.bf16.msra.mxu1 %v7921_v24  ;;  %5063 = vmatprep.mubr.bf16.mxu0 %v9736_v57  ;;  %v3171_v24 = vadd.f32 %v9626_v16, %v3065_v10  ;;  %v3097_v10 = vld [vmem:[#allocation2 + $0x120] sm:$0xff] }
 0x3c9   : > { %5048 = vmatpush1.bf16.msra.mxu0 %v7918_v21  ;;  %5195 = vmatprep.subr.bf16.mxu1 %v7929_v34  ;;  %v3073_v21 = vld [vmem:[#allocation2 + $0x60] sm:$0xff] }
 0x3ca   : > { %5049 = vmatprep.subr.bf16.mxu0 %v7926_v14  ;;  %v3179_v11 = vadd.f32 %v9626_v16, %v3073_v21  ;;  %v7965_v14 = vld [vmem:[#allocation9 + $0x1ec] ss:$16 sps:$4 sm:$0xff]   ;;  %v7963_v34 = vld [vmem:[#allocation9 + $0x1e8] ss:$16 sps:$4 sm:$0xff]   ;;  %v3235_v35 = vmax.f32 %v3171_v24, 0.0  ;;  %v3203_v24 = vadd.f32 %v9626_v16, %v3097_v10 }
 0x3cb   : > { %v3105_v21 = vld [vmem:[#allocation2 + $0x160] sm:$0xff] }
 0x3cc   : > { %5196 = vmatpush1.bf16.msra.mxu1 %v7927_v44  ;;  %v3243_v7 = vmax.f32 %v3179_v11, 0.0  ;;  %v3211_v11 = vadd.f32 %v9626_v16, %v3105_v21  ;;  %v8007_v10 = vld [vmem:[#allocation9 + $0x2cc] ss:$16 sps:$4 sm:$0xff]  }
 0x3cd   : > { %5050 = vmatpush1.bf16.msra.mxu0 %v7924_v43  ;;  %5197 = vmatprep.subr.bf16.mxu1 %v7935_v47  ;;  %v3082_v43 = vld [vmem:[#allocation2 + $0xa8] sm:$0xff]  ;;  %v3081_v47 = vld [vmem:[#allocation2 + $0xa0] sm:$0xff] }
 0x3ce   : > { %5051 = vmatprep.subr.bf16.mxu0 %v7932_v33  ;;  %v9741_v44 = vpack.c.bf16 %v3243_v7, %v3235_v35  ;;  %v3188_v33 = vadd.f32 %v9719_v26, %v3082_v43  ;;  %v7984_v35 = vld [vmem:[#allocation9 + $0x660] ss:$16 sps:$4 sm:$0xff]   ;;  %v7987_v7 = vld [vmem:[#allocation9 + $0x268] ss:$16 sps:$4 sm:$0xff]   ;;  %v7995_v43 = vld [vmem:[#allocation9 + $0x28c] ss:$16 sps:$4 sm:$0xff]  }
 0x3d0   : > { %5198 = vmatpush1.bf16.msra.mxu1 %v7933_v38  ;;  %v3187_v38 = vadd.f32 %v9626_v16, %v3081_v47 }
 0x3d1   : > { %5052 = vmatpush1.bf16.msra.mxu0 %v7930_v58  ;;  %5199 = vmatprep.subr.bf16.mxu1 %v7941_v49  ;;  %v3196_v58 = vadd.f32 %v9719_v26, %v3090_v45  ;;  %v7977_v49 = vld [vmem:[#allocation9 + $0x22c] ss:$16 sps:$4 sm:$0xff]   ;;  %v3114_v45 = vld [vmem:[#allocation2 + $0x1a8] sm:$0xff] }
 0x3d2   : > { %5053 = vmatprep.subr.bf16.mxu0 %v7938_v62  ;;  %v3195_v62 = vadd.f32 %v9626_v16, %v3089_v31  ;;  %v3220_v47 = vadd.f32 %v9719_v26, %v3114_v45  ;;  %v3113_v31 = vld [vmem:[#allocation2 + $0x1a0] sm:$0xff]  ;;  %v8028_v45 = vld [vmem:[#allocation9 + $0x744] ss:$16 sps:$4 sm:$0xff]  }
 0x3d4   : > { %5200 = vmatpush1.bf16.msra.mxu1 %v7939_v5  ;;  %v3260_v5 = vmax.f32 %v3196_v58, 0.0 }
 0x3d5   : > { %5054 = vmatpush1.bf16.msra.mxu0 %v7936_v3  ;;  %5201 = vmatprep.subr.bf16.mxu1 %v7947_v18  ;;  %v3252_v3 = vmax.f32 %v3188_v33, 0.0  ;;  %v3251_v18 = vmax.f32 %v3187_v38, 0.0  ;;  %v3122_v33 = vld [vmem:[#allocation2 + $0x1e8] sm:$0xff]  ;;  %v3284_v38 = vmax.f32 %v3220_v47, 0.0 }
 0x3d6   : > { %5055 = vmatprep.subr.bf16.mxu0 %v7944_v6  ;;  %v7972_v6 = vld [vmem:[#allocation9 + $0x620] ss:$16 sps:$4 sm:$0xff]  }
 0x3d7   : > { %v8026_v47 = vld [vmem:[#allocation9 + $0x740] ss:$16 sps:$4 sm:$0xff]  }
 0x3d8   : > { %5202 = vmatpush1.bf16.msra.mxu1 %v7945_v13  ;;  %v7975_v13 = vld [vmem:[#allocation9 + $0x228] ss:$16 sps:$4 sm:$0xff]  }
 0x3d9   : > { %5056 = vmatpush1.bf16.msra.mxu0 %v7942_v8  ;;  %5203 = vmatprep.subr.bf16.mxu1 %v7953_v15  ;;  %v3259_v8 = vmax.f32 %v3195_v62, 0.0  ;;  %v7980_v15 = vld [vmem:[#allocation9 + $0x644] ss:$16 sps:$4 sm:$0xff]   ;;  %v3219_v62 = vadd.f32 %v9626_v16, %v3113_v31  ;;  %v8029_v31 = vld [vmem:[#allocation9 + $0x348] ss:$16 sps:$4 sm:$0xff]  }
 0x3da   : > { %5057 = vmatprep.subr.bf16.mxu0 %v7950_v56  ;;  %v9749_v56 = vpack.c.bf16 %v3260_v5, %v3252_v3  ;;  %v7990_v3 = vld [vmem:[#allocation9 + $0x680] ss:$16 sps:$4 sm:$0xff]   ;;  %v7993_v5 = vld [vmem:[#allocation9 + $0x288] ss:$16 sps:$4 sm:$0xff]  }
 0x3dc   : > { %5204 = vmatpush1.bf16.msra.mxu1 %v7951_v32  ;;  %v3098_v32 = vld [vmem:[#allocation2 + $0x128] sm:$0xff] }
 0x3dd   : > { %5058 = vmatpush1.bf16.msra.mxu0 %v7948_v17  ;;  %5205 = vmatprep.subr.bf16.mxu1 %v7959_v22  ;;  %v7983_v17 = vld [vmem:[#allocation9 + $0x24c] ss:$16 sps:$4 sm:$0xff]   ;;  %v7978_v22 = vld [vmem:[#allocation9 + $0x640] ss:$16 sps:$4 sm:$0xff]  }
 0x3de   : > { %5059 = vmatprep.subr.bf16.mxu0 %v7956_v52  ;;  %v3106_v52 = vld [vmem:[#allocation2 + $0x168] sm:$0xff] }
 0x3e0   : > { %5206 = vmatpush1.bf16.msra.mxu1 %v7957_v23  ;;  %v3212_v23 = vadd.f32 %v9719_v26, %v3106_v52  ;;  %v3076_v52 = vld [vmem:[#allocation2 + $0x78] sm:$0xff] }
 0x3e1   : > { %5060 = vmatpush1.bf16.msra.mxu0 %v7954_v61  ;;  %5207 = vmatprep.subr.bf16.mxu1 %v7965_v14  ;;  %v9754_v61 = vpack.c.bf16 %v3259_v8, %v3251_v18  ;;  %v7998_v18 = vld [vmem:[#allocation9 + $0x6a4] ss:$16 sps:$4 sm:$0xff]   ;;  %v8001_v8 = vld [vmem:[#allocation9 + $0x2ac] ss:$16 sps:$4 sm:$0xff]   ;;  %v3182_v21 = vadd.f32 %v9658_v50, %v3076_v52 }
 0x3e2   : > { %5061 = vmatprep.subr.bf16.mxu0 %v7962_v9  ;;  %v7981_v9 = vld [vmem:[#allocation9 + $0x248] ss:$16 sps:$4 sm:$0xff]   ;;  %v3092_v52 = vld [vmem:[#allocation2 + $0xf8] sm:$0xff] }
 0x3e4   : > { %5208 = vmatpush1.bf16.msra.mxu1 %v7963_v34  ;;  %v3276_v34 = vmax.f32 %v3212_v23, 0.0  ;;  %v3246_v23 = vmax.f32 %v3182_v21, 0.0 }
 0x3e5   : > { %5062 = vmatpush1.bf16.msra.mxu0 %v7960_v30  ;;  %5250 = vmatprep.subr.bf16.mxu1 %v7971_v41  ;;  %v7989_v30 = vld [vmem:[#allocation9 + $0x26c] ss:$16 sps:$4 sm:$0xff]   ;;  %v3267_v41 = vmax.f32 %v3203_v24, 0.0  ;;  %v8002_v24 = vld [vmem:[#allocation9 + $0x6c0] ss:$16 sps:$4 sm:$0xff]  }
 0x3e6   : > { %5104 = vmatprep.subr.bf16.mxu0 %v7968_v39 }
 0x3e7   : > { %5210 = vmatmul.mubr.bf16.vlgmr.msra.gmra.mrb[16].mxu1 %v9663_v63  ;;  %v3204_v63 = vadd.f32 %v9719_v26, %v3098_v32  ;;  %v8004_v32 = vld [vmem:[#allocation9 + $0x6c4] ss:$16 sps:$4 sm:$0xff]  }
 0x3e8   : > { %5064 = vmatmul.mubr.bf16.vlgmr.msra.gmra.mrb[0].mxu0 %v9741_v44  ;;  %5251 = vmatpush1.bf16.msra.mxu1 %v7969_v42  ;;  %v7992_v42 = vld [vmem:[#allocation9 + $0x684] ss:$16 sps:$4 sm:$0xff]  }
 0x3e9   : > { %5105 = vmatpush1.bf16.msra.mxu0 %v7966_v20  ;;  %5252 = vmatprep.subr.bf16.mxu1 %v7977_v49  ;;  %v3268_v14 = vmax.f32 %v3204_v63, 0.0  ;;  %v3275_v20 = vmax.f32 %v3211_v11, 0.0  ;;  %v8005_v11 = vld [vmem:[#allocation9 + $0x2c8] ss:$16 sps:$4 sm:$0xff]  }
 0x3ea   : > { %5106 = vmatprep.subr.bf16.mxu0 %v7974_v54  ;;  %5073 = vmatprep.mubr.bf16.mxu0 %v9749_v56  ;;  %v3121_v54 = vld [vmem:[#allocation2 + $0x1e0] sm:$0xff] }
 0x3eb   : > { %5219 = vmatprep.mubr.bf16.mxu1 %v9676_v46  ;;  %v7986_v46 = vld [vmem:[#allocation9 + $0x664] ss:$16 sps:$4 sm:$0xff]   ;;  %v9761_v39 = vpack.c.bf16 %v3276_v34, %v3268_v14  ;;  %v9767_v58 = vpack.c.bf16 %v3275_v20, %v3267_v41  ;;  %v3227_v49 = vadd.f32 %v9626_v16, %v3121_v54  ;;  %v7999_v16 = vld [vmem:[#allocation9 + $0x2a8] ss:$16 sps:$4 sm:$0xff]   ;;  %v8013_v14 = vld [vmem:[#allocation9 + $0x2ec] ss:$16 sps:$4 sm:$0xff]  }
 0x3ec   : > { %5253 = vmatpush1.bf16.msra.mxu1 %v7975_v13  ;;  %v8016_v34 = vld [vmem:[#allocation9 + $0x704] ss:$16 sps:$4 sm:$0xff]   ;;  %v8017_v41 = vld [vmem:[#allocation9 + $0x308] ss:$16 sps:$4 sm:$0xff]   ;;  %v8037_v54 = vld [vmem:[#allocation9 + $0x36c] ss:$16 sps:$4 sm:$0xff]  }
 0x3ed   : > { %5107 = vmatpush1.bf16.msra.mxu0 %v7972_v6  ;;  %5254 = vmatprep.subr.bf16.mxu1 %v7983_v17  ;;  %v3068_v17 = vld [vmem:[#allocation2 + $0x38] sm:$0xff] }
 0x3ee   : > { %5108 = vmatprep.subr.bf16.mxu0 %v7980_v15  ;;  %v3291_v15 = vmax.f32 %v3227_v49, 0.0  ;;  %v3174_v63 = vadd.f32 %v9658_v50, %v3068_v17  ;;  %v8022_v20 = vld [vmem:[#allocation9 + $0x724] ss:$16 sps:$4 sm:$0xff]   ;;  %v8043_v49 = vld [vmem:[#allocation9 + $0x38c] ss:$16 sps:$4 sm:$0xff]  }
 0x3ef   : > { %5220 = vmatmul.mubr.bf16.gmra.mrb[20].mxu1 %v9678_v51  ;;  %v3228_v51 = vadd.f32 %v9719_v26, %v3122_v33  ;;  %v3283_v26 = vmax.f32 %v3219_v62, 0.0  ;;  %v8031_v33 = vld [vmem:[#allocation9 + $0x34c] ss:$16 sps:$4 sm:$0xff]   ;;  %v8040_v62 = vld [vmem:[#allocation9 + $0x784] ss:$16 sps:$4 sm:$0xff]  }
 0x3f0   : > { %5074 = vmatmul.mubr.bf16.gmra.mrb[4].mxu0 %v9754_v61  ;;  %5255 = vmatpush1.bf16.msra.mxu1 %v7981_v9  ;;  %v8010_v9 = vld [vmem:[#allocation9 + $0x6e4] ss:$16 sps:$4 sm:$0xff]   ;;  %v3067_v17 = vld [vmem:[#allocation2 + $0x30] sm:$0xff] }
 0x3f1   : > { %5109 = vmatpush1.bf16.msra.mxu0 %v7978_v22  ;;  %5256 = vmatprep.subr.bf16.mxu1 %v7989_v30  ;;  %v3292_v6 = vmax.f32 %v3228_v51, 0.0  ;;  %v9779_v22 = vpack.c.bf16 %v3291_v15, %v3283_v26  ;;  %v8011_v30 = vld [vmem:[#allocation9 + $0x2e8] ss:$16 sps:$4 sm:$0xff]   ;;  %v8032_v51 = vld [vmem:[#allocation9 + $0x760] ss:$16 sps:$4 sm:$0xff]  }
 0x3f2   : > { %5110 = vmatprep.subr.bf16.mxu0 %v7986_v46  ;;  %5083 = vmatprep.mubr.bf16.mxu0 %v9761_v39  ;;  %v8052_v26 = vld [vmem:[#allocation9 + $0x7c4] ss:$16 sps:$4 sm:$0xff]   ;;  %v8055_v15 = vld [vmem:[#allocation9 + $0x3cc] ss:$16 sps:$4 sm:$0xff]  }
 0x3f3   : > { %5229 = vmatprep.mubr.bf16.mxu1 %v9695_v29  ;;  %v9771_v13 = vpack.c.bf16 %v3292_v6, %v3284_v38  ;;  %v7996_v29 = vld [vmem:[#allocation9 + $0x6a0] ss:$16 sps:$4 sm:$0xff]   ;;  %v8035_v38 = vld [vmem:[#allocation9 + $0x368] ss:$16 sps:$4 sm:$0xff]   ;;  %v8046_v6 = vld [vmem:[#allocation9 + $0x7a4] ss:$16 sps:$4 sm:$0xff]  }
 0x3f4   : > { %5257 = vmatpush1.bf16.msra.mxu1 %v7987_v7  ;;  %v8014_v7 = vld [vmem:[#allocation9 + $0x700] ss:$16 sps:$4 sm:$0xff]  }
 0x3f5   : > { %5111 = vmatpush1.bf16.msra.mxu0 %v7984_v35  ;;  %5258 = vmatprep.subr.bf16.mxu1 %v7995_v43  ;;  %v8019_v35 = vld [vmem:[#allocation9 + $0x30c] ss:$16 sps:$4 sm:$0xff]   ;;  %v8023_v43 = vld [vmem:[#allocation9 + $0x328] ss:$16 sps:$4 sm:$0xff]  }
 0x3f6   : > { %5112 = vmatprep.subr.bf16.mxu0 %v7992_v42  ;;  %v8020_v42 = vld [vmem:[#allocation9 + $0x720] ss:$16 sps:$4 sm:$0xff]  }
 0x3f7   : > { %5230 = vmatmul.mubr.bf16.gmra.mrb[24].mxu1 %v9697_v36  ;;  %v3238_v36 = vmax.f32 %v3174_v63, 0.0  ;;  %v8050_v63 = vld [vmem:[#allocation9 + $0x7c0] ss:$16 sps:$4 sm:$0xff]  }
 0x3f8   : > { %5084 = vmatmul.mubr.bf16.gmra.mrb[8].mxu0 %v9767_v58  ;;  %5259 = vmatpush1.bf16.msra.mxu1 %v7993_v5  ;;  %v8041_v5 = vld [vmem:[#allocation9 + $0x388] ss:$16 sps:$4 sm:$0xff]  }
 0x3f9   : > { %5113 = vmatpush1.bf16.msra.mxu0 %v7990_v3  ;;  %5260 = vmatprep.subr.bf16.mxu1 %v8001_v8  ;;  %v9781_v46 = vpack.c.bf16 %v3246_v23, %v3238_v36  ;;  %v8038_v3 = vld [vmem:[#allocation9 + $0x780] ss:$16 sps:$4 sm:$0xff]   ;;  %v8053_v36 = vld [vmem:[#allocation9 + $0x3c8] ss:$16 sps:$4 sm:$0xff]  }
 0x3fa   : > { %5114 = vmatprep.subr.bf16.mxu0 %v7998_v18  ;;  %5093 = vmatprep.mubr.bf16.mxu0 %v9771_v13  ;;  %v8049_v18 = vld [vmem:[#allocation9 + $0x3ac] ss:$16 sps:$4 sm:$0xff]   ;;  %v8044_v8 = vld [vmem:[#allocation9 + $0x7a0] ss:$16 sps:$4 sm:$0xff]  }
 0x3fb   : > { %5239 = vmatprep.mubr.bf16.mxu1 %v9716_v25  ;;  %v8008_v25 = vld [vmem:[#allocation9 + $0x6e0] ss:$16 sps:$4 sm:$0xff]  }
 0x3fc   : > { %5261 = vmatpush1.bf16.msra.mxu1 %v7999_v16  ;;  %v3075_v16 = vld [vmem:[#allocation2 + $0x70] sm:$0xff] }
 0x3fd   : > { %5115 = vmatpush1.bf16.msra.mxu0 %v7996_v29  ;;  %5262 = vmatprep.subr.bf16.mxu1 %v8007_v10  ;;  %v8047_v29 = vld [vmem:[#allocation9 + $0x3a8] ss:$16 sps:$4 sm:$0xff]   ;;  %v3173_v10 = vadd.f32 %v9661_v55, %v3067_v17  ;;  %v3181_v21 = vadd.f32 %v9661_v55, %v3075_v16 }
 0x3fe   : > { %5116 = vmatprep.subr.bf16.mxu0 %v8004_v32  ;;  %v3084_v32 = vld [vmem:[#allocation2 + $0xb8] sm:$0xff]  ;;  %v8068_v17 = vld [vmem:[#allocation9 + $0x448] ss:$16 sps:$4 sm:$0xff]  }
 0x3ff   : > { %5240 = vmatmul.mubr.bf16.gmra.mrb[28].mxu1 %v9721_v27  ;;  %v8025_v27 = vld [vmem:[#allocation9 + $0x32c] ss:$16 sps:$4 sm:$0xff]   ;;  %v3190_v23 = vadd.f32 %v9658_v50, %v3084_v32 }
 0x400   : > { %5094 = vmatmul.mubr.bf16.gmra.mrb[12].mxu0 %v9779_v22  ;;  %5263 = vmatpush1.bf16.msra.mxu1 %v8005_v11  ;;  %v8058_v11 = vld [vmem:[#allocation9 + $0x7e4] ss:$16 sps:$4 sm:$0xff]   ;;  %v8073_v32 = vld [vmem:[#allocation9 + $0x46c] ss:$16 sps:$4 sm:$0xff]  }
 0x401   : > { %5117 = vmatpush1.bf16.msra.mxu0 %v8002_v24  ;;  %5264 = vmatprep.subr.bf16.mxu1 %v8013_v14  ;;  %v3198_v24 = vadd.f32 %v9658_v50, %v3092_v52  ;;  %v8056_v14 = vld [vmem:[#allocation9 + $0x7e0] ss:$16 sps:$4 sm:$0xff]  }
 0x402   : > { %5118 = vmatprep.subr.bf16.mxu0 %v8010_v9  ;;  %5136 = vmatprep.mubr.bf16.mxu0 %v9781_v46  ;;  %v8061_v9 = vld [vmem:[#allocation9 + $0x3ec] ss:$16 sps:$4 sm:$0xff]  }
 0x403   : > { %5282 = vmatprep.mubr.bf16.mxu1 %v9642_v12  ;;  %v8034_v12 = vld [vmem:[#allocation9 + $0x764] ss:$16 sps:$4 sm:$0xff]  }
 0x404   : > { %5265 = vmatpush1.bf16.msra.mxu1 %v8011_v30  ;;  %v3237_v30 = vmax.f32 %v3173_v10, 0.0 }
 0x405   : > { %5119 = vmatpush1.bf16.msra.mxu0 %v8008_v25  ;;  %5266 = vmatprep.subr.bf16.mxu1 %v8019_v35  ;;  %v8059_v25 = vld [vmem:[#allocation9 + $0x3e8] ss:$16 sps:$4 sm:$0xff]   ;;  %v8064_v35 = vld [vmem:[#allocation9 + $0x40c] ss:$16 sps:$4 sm:$0xff]  }
 0x406   : > { %5120 = vmatprep.subr.bf16.mxu0 %v8016_v34  ;;  %v3245_v34 = vmax.f32 %v3181_v21, 0.0 }
 0x408   : > { %5267 = vmatpush1.bf16.msra.mxu1 %v8017_v41  ;;  %v3254_v41 = vmax.f32 %v3190_v23, 0.0  ;;  %v3115_v23 = vld [vmem:[#allocation2 + $0x1b0] sm:$0xff] }
 0x409   : > { %5121 = vmatpush1.bf16.msra.mxu0 %v8014_v7  ;;  %5268 = vmatprep.subr.bf16.mxu1 %v8025_v27  ;;  %v3083_v7 = vld [vmem:[#allocation2 + $0xb0] sm:$0xff] }
 0x40a   : > { %5122 = vmatprep.subr.bf16.mxu0 %v8022_v20  ;;  %v3262_v20 = vmax.f32 %v3198_v24, 0.0  ;;  %v3091_v27 = vld [vmem:[#allocation2 + $0xf0] sm:$0xff] }
 0x40b   : > { %v3123_v24 = vld [vmem:[#allocation2 + $0x1f0] sm:$0xff] }
 0x40c   : > { %5269 = vmatpush1.bf16.msra.mxu1 %v8023_v43  ;;  %v3108_v43 = vld [vmem:[#allocation2 + $0x178] sm:$0xff] }
 0x40d   : > { %5123 = vmatpush1.bf16.msra.mxu0 %v8020_v42  ;;  %5270 = vmatprep.subr.bf16.mxu1 %v8031_v33  ;;  %v3100_v42 = vld [vmem:[#allocation2 + $0x138] sm:$0xff]  ;;  %v3189_v33 = vadd.f32 %v9661_v55, %v3083_v7  ;;  %v3229_v7 = vadd.f32 %v9661_v55, %v3123_v24  ;;  %v8106_v24 = vld [vmem:[#allocation9 + $0x5cc] ss:$16 sps:$4 sm:$0xff]  }
 0x40e   : > { %5124 = vmatprep.subr.bf16.mxu0 %v8028_v45  ;;  %v9791_v45 = vpack.c.bf16 %v3245_v34, %v3237_v30  ;;  %v8079_v34 = vld [vmem:[#allocation9 + $0x4ac] ss:$16 sps:$4 sm:$0xff]  }
 0x410   : > { %5271 = vmatpush1.bf16.msra.mxu1 %v8029_v31  ;;  %v8062_v31 = vld [vmem:[#allocation9 + $0x408] ss:$16 sps:$4 sm:$0xff]  }
 0x411   : > { %5125 = vmatpush1.bf16.msra.mxu0 %v8026_v47  ;;  %5272 = vmatprep.subr.bf16.mxu1 %v8037_v54  ;;  %v3197_v47 = vadd.f32 %v9661_v55, %v3091_v27  ;;  %v3206_v54 = vadd.f32 %v9658_v50, %v3100_v42  ;;  %v3293_v27 = vmax.f32 %v3229_v7, 0.0  ;;  %v8082_v42 = vld [vmem:[#allocation9 + $0x4cc] ss:$16 sps:$4 sm:$0xff]  }
 0x412   : > { %5126 = vmatprep.subr.bf16.mxu0 %v8034_v12  ;;  %v9795_v12 = vpack.c.bf16 %v3262_v20, %v3254_v41  ;;  %v8185_v7 = vld [vmem:[#allocation12 + $0x90] ss:$8 sps:$4 sm:$0xff]  }
 0x414   : > { %5273 = vmatpush1.bf16.msra.mxu1 %v8035_v38  ;;  %v8067_v38 = vld [vmem:[#allocation9 + $0x42c] ss:$16 sps:$4 sm:$0xff]  }
 0x415   : > { %5127 = vmatpush1.bf16.msra.mxu0 %v8032_v51  ;;  %5274 = vmatprep.subr.bf16.mxu1 %v8043_v49  ;;  %v3214_v51 = vadd.f32 %v9658_v50, %v3108_v43  ;;  %v3099_v49 = vld [vmem:[#allocation2 + $0x130] sm:$0xff] }
 0x416   : > { %5128 = vmatprep.subr.bf16.mxu0 %v8040_v62  ;;  %v8065_v62 = vld [vmem:[#allocation9 + $0x428] ss:$16 sps:$4 sm:$0xff]   ;;  %v3205_v52 = vadd.f32 %v9661_v55, %v3099_v49  ;;  %v8085_v43 = vld [vmem:[#allocation9 + $0x4ec] ss:$16 sps:$4 sm:$0xff]  }
 0x417   : > { %v8089_v49 = vld [vmem:[#allocation9 + $0x528] ss:$16 sps:$4 sm:$0xff]  }
 0x418   : > { %5275 = vmatpush1.bf16.msra.mxu1 %v8041_v5  ;;  %v3253_v5 = vmax.f32 %v3189_v33, 0.0  ;;  %v8158_v33 = vld [vmem:[#allocation12] ss:$8 sps:$4 sm:$0xff]  }
 0x419   : > { %5129 = vmatpush1.bf16.msra.mxu0 %v8038_v3  ;;  %5276 = vmatprep.subr.bf16.mxu1 %v8049_v18  ;;  %v3107_v3 = vld [vmem:[#allocation2 + $0x170] sm:$0xff] }
 0x41a   : > { %5130 = vmatprep.subr.bf16.mxu0 %v8046_v6  ;;  %v3261_v6 = vmax.f32 %v3197_v47, 0.0  ;;  %v8070_v18 = vld [vmem:[#allocation9 + $0x44c] ss:$16 sps:$4 sm:$0xff]   ;;  %v8160_v47 = vld [vmem:[#allocation12 + $0x4] ss:$8 sps:$4 sm:$0xff]  }
 0x41c   : > { %5277 = vmatpush1.bf16.msra.mxu1 %v8047_v29  ;;  %v3270_v29 = vmax.f32 %v3206_v54, 0.0  ;;  %v9803_v16 = vpack.c.bf16 %v3261_v6, %v3253_v5  ;;  %v8088_v54 = vld [vmem:[#allocation9 + $0x50c] ss:$16 sps:$4 sm:$0xff]   ;;  %v8169_v5 = vld [vmem:[#allocation12 + $0x34] ss:$8 sps:$4 sm:$0xff]  }
 0x41d   : > { %5131 = vmatpush1.bf16.msra.mxu0 %v8044_v8  ;;  %5278 = vmatprep.subr.bf16.mxu1 %v8055_v15  ;;  %v3116_v8 = vld [vmem:[#allocation2 + $0x1b8] sm:$0xff] }
 0x41e   : > { %5132 = vmatprep.subr.bf16.mxu0 %v8052_v26  ;;  %v3278_v26 = vmax.f32 %v3214_v51, 0.0  ;;  %v3124_v15 = vld [vmem:[#allocation2 + $0x1f8] sm:$0xff]  ;;  %v3222_v10 = vadd.f32 %v9658_v50, %v3116_v8  ;;  %v8097_v8 = vld [vmem:[#allocation9 + $0x56c] ss:$16 sps:$4 sm:$0xff]  }
 0x41f   : > { %v3230_v21 = vadd.f32 %v9658_v50, %v3124_v15  ;;  %v8074_v50 = vld [vmem:[#allocation9 + $0x488] ss:$16 sps:$4 sm:$0xff]  }
 0x420   : > { %5279 = vmatpush1.bf16.msra.mxu1 %v8053_v36  ;;  %v8071_v36 = vld [vmem:[#allocation9 + $0x468] ss:$16 sps:$4 sm:$0xff]  }
 0x421   : > { %5133 = vmatpush1.bf16.msra.mxu0 %v8050_v63  ;;  %5280 = vmatprep.subr.bf16.mxu1 %v8061_v9  ;;  %v9807_v63 = vpack.c.bf16 %v3278_v26, %v3270_v29  ;;  %v8076_v9 = vld [vmem:[#allocation9 + $0x48c] ss:$16 sps:$4 sm:$0xff]   ;;  %v8166_v51 = vld [vmem:[#allocation12 + $0x24] ss:$8 sps:$4 sm:$0xff]   ;;  %v8175_v26 = vld [vmem:[#allocation12 + $0x54] ss:$8 sps:$4 sm:$0xff]  }
 0x422   : > { %5134 = vmatprep.subr.bf16.mxu0 %v8058_v11  ;;  %v8172_v6 = vld [vmem:[#allocation12 + $0x44] ss:$8 sps:$4 sm:$0xff]   ;;  %v8170_v29 = vld [vmem:[#allocation12 + $0x40] ss:$8 sps:$4 sm:$0xff]  }
 0x423   : > { %v8095_v15 = vld [vmem:[#allocation9 + $0x568] ss:$16 sps:$4 sm:$0xff]  }
 0x424   : > { %5281 = vmatpush1.bf16.msra.mxu1 %v8059_v25  ;;  %v3294_v25 = vmax.f32 %v3230_v21, 0.0  ;;  %v8176_v21 = vld [vmem:[#allocation12 + $0x60] ss:$8 sps:$4 sm:$0xff]  }
 0x425   : > { %5135 = vmatpush1.bf16.msra.mxu0 %v8056_v14  ;;  %5323 = vmatprep.subr.bf16.mxu1 %v8064_v35  ;;  %v3286_v14 = vmax.f32 %v3222_v10, 0.0  ;;  %v3221_v35 = vadd.f32 %v9661_v55, %v3115_v23  ;;  %v8103_v10 = vld [vmem:[#allocation9 + $0x5ac] ss:$16 sps:$4 sm:$0xff]   ;;  %v8101_v23 = vld [vmem:[#allocation9 + $0x5a8] ss:$16 sps:$4 sm:$0xff]  }
 0x426   : > { %5913 = vmatprep.subr.bf16.mxu0 %v8160_v47  ;;  %v8191_v47 = vld [vmem:[#allocation12 + $0xb0] ss:$8 sps:$4 sm:$0xff]  }
 0x427   : > { %5283 = vmatmul.mubr.bf16.vlgmr.msra.gmra.mrb[16].mxu1 %v9665_v2  ;;  %v3213_v2 = vadd.f32 %v9661_v55, %v3107_v3  ;;  %v9819_v41 = vpack.c.bf16 %v3294_v25, %v3286_v14  ;;  %v3285_v20 = vmax.f32 %v3221_v35, 0.0  ;;  %v8094_v3 = vld [vmem:[#allocation9 + $0x54c] ss:$16 sps:$4 sm:$0xff]  }
 0x428   : > { %5137 = vmatmul.mubr.bf16.vlgmr.msra.gmra.mrb[0].mxu0 %v9791_v45  ;;  %5324 = vmatpush1.bf16.msra.mxu1 %v8062_v31  ;;  %v8163_v31 = vld [vmem:[#allocation12 + $0x14] ss:$8 sps:$4 sm:$0xff]   ;;  %v8109_v14 = vld [vmem:[#allocation9 + $0x5ec] ss:$16 sps:$4 sm:$0xff]  }
 0x429   : > { %5146 = vmatprep.mubr.bf16.mxu0 %v9795_v12  ;;  %5325 = vmatprep.subr.bf16.mxu1 %v8067_v38  ;;  %v3277_v11 = vmax.f32 %v3213_v2, 0.0  ;;  %v9825_v55 = vpack.c.bf16 %v3293_v27, %v3285_v20  ;;  %v8086_v38 = vld [vmem:[#allocation9 + $0x508] ss:$16 sps:$4 sm:$0xff]   ;;  %v8182_v25 = vld [vmem:[#allocation12 + $0x80] ss:$8 sps:$4 sm:$0xff]  }
 0x42a   : > { %5292 = vmatprep.mubr.bf16.mxu1 %v9680_v53  ;;  %v3269_v53 = vmax.f32 %v3205_v52, 0.0  ;;  %5914 = vmatpush1.bf16.msra.mxu0 %v8158_v33  ;;  %v8178_v52 = vld [vmem:[#allocation12 + $0x64] ss:$8 sps:$4 sm:$0xff]   ;;  %v8112_v35 = vld [vmem:[#allocation9 + $0x60c] ss:$16 sps:$4 sm:$0xff]  }
 0x42b   : > { %5915 = vmatprep.subr.bf16.mxu0 %v8163_v31  ;;  %v8098_v2 = vld [vmem:[#allocation9 + $0x588] ss:$16 sps:$4 sm:$0xff]   ;;  %v8115_v27 = vld [vmem:[#allocation9 + $0x62c] ss:$16 sps:$4 sm:$0xff]  }
 0x42c   : > { %5326 = vmatpush1.bf16.msra.mxu1 %v8065_v62  ;;  %v9815_v30 = vpack.c.bf16 %v3277_v11, %v3269_v53  ;;  %v8091_v62 = vld [vmem:[#allocation9 + $0x52c] ss:$16 sps:$4 sm:$0xff]   ;;  %v8184_v11 = vld [vmem:[#allocation12 + $0x84] ss:$8 sps:$4 sm:$0xff]  }
 0x42d   : > { %5327 = vmatprep.subr.bf16.mxu1 %v8070_v18  ;;  %v8092_v18 = vld [vmem:[#allocation9 + $0x548] ss:$16 sps:$4 sm:$0xff]   ;;  %v8179_v53 = vld [vmem:[#allocation12 + $0x70] ss:$8 sps:$4 sm:$0xff]  }
 0x42e   : > { %v8110_v20 = vld [vmem:[#allocation9 + $0x608] ss:$16 sps:$4 sm:$0xff]   ;;  %v8118_v33 = vld [vmem:[#allocation9 + $0x64c] ss:$16 sps:$4 sm:$0xff]  }
 0x42f   : > { %5293 = vmatmul.mubr.bf16.gmra.mrb[20].mxu1 %v9689_v19  ;;  %v8077_v19 = vld [vmem:[#allocation9 + $0x4a8] ss:$16 sps:$4 sm:$0xff]  }
 0x430   : > { %5147 = vmatmul.mubr.bf16.gmra.mrb[4].mxu0 %v9803_v16  ;;  %5328 = vmatpush1.bf16.msra.mxu1 %v8068_v17  ;;  %v8100_v17 = vld [vmem:[#allocation9 + $0x58c] ss:$16 sps:$4 sm:$0xff]   ;;  %v8116_v31 = vld [vmem:[#allocation9 + $0x648] ss:$16 sps:$4 sm:$0xff]  }
 0x431   : > { %5156 = vmatprep.mubr.bf16.mxu0 %v9807_v63  ;;  %5329 = vmatprep.subr.bf16.mxu1 %v8073_v32  ;;  %v8173_v32 = vld [vmem:[#allocation12 + $0x50] ss:$8 sps:$4 sm:$0xff]  }
 0x432   : > { %5302 = vmatprep.mubr.bf16.mxu1 %v9699_v37  ;;  %v8080_v37 = vld [vmem:[#allocation9 + $0x4c8] ss:$16 sps:$4 sm:$0xff]  }
 0x434   : > { %5330 = vmatpush1.bf16.msra.mxu1 %v8071_v36  ;;  %v8181_v36 = vld [vmem:[#allocation12 + $0x74] ss:$8 sps:$4 sm:$0xff]  }
 0x435   : > { %5331 = vmatprep.subr.bf16.mxu1 %v8076_v9  ;;  %v8104_v9 = vld [vmem:[#allocation9 + $0x5c8] ss:$16 sps:$4 sm:$0xff]  }
 0x437   : > { %5303 = vmatmul.mubr.bf16.gmra.mrb[24].mxu1 %v9707_v60  ;;  %v8083_v60 = vld [vmem:[#allocation9 + $0x4e8] ss:$16 sps:$4 sm:$0xff]  }
 0x438   : > { %5157 = vmatmul.mubr.bf16.gmra.mrb[8].mxu0 %v9815_v30  ;;  %5332 = vmatpush1.bf16.msra.mxu1 %v8074_v50  ;;  %v8187_v50 = vld [vmem:[#allocation12 + $0x94] ss:$8 sps:$4 sm:$0xff]  }
 0x439   : > { %5166 = vmatprep.mubr.bf16.mxu0 %v9819_v41  ;;  %5333 = vmatprep.subr.bf16.mxu1 %v8079_v34  ;;  %v8107_v34 = vld [vmem:[#allocation9 + $0x5e8] ss:$16 sps:$4 sm:$0xff]  }
 0x43a   : > { %5312 = vmatprep.mubr.bf16.mxu1 %v9723_v28  ;;  %v8161_v28 = vld [vmem:[#allocation12 + $0x10] ss:$8 sps:$4 sm:$0xff]  }
 0x43b   : > { %5916 = vmatpush1.bf16.msra.mxu0 %v8161_v28  ;;  %v8194_v28 = vld [vmem:[#allocation12 + $0xc0] ss:$8 sps:$4 sm:$0xff]  }
 0x43c   : > { %5334 = vmatpush1.bf16.msra.mxu1 %v8077_v19  ;;  %5917 = vmatprep.subr.bf16.mxu0 %v8166_v51  ;;  %v8190_v19 = vld [vmem:[#allocation12 + $0xa4] ss:$8 sps:$4 sm:$0xff]  }
 0x43d   : > { %5335 = vmatprep.subr.bf16.mxu1 %v8082_v42  ;;  %v8188_v42 = vld [vmem:[#allocation12 + $0xa0] ss:$8 sps:$4 sm:$0xff]   ;;  %v8119_v51 = vld [vmem:[#allocation9 + $0x668] ss:$16 sps:$4 sm:$0xff]  }
 0x43f   : > { %5313 = vmatmul.mubr.bf16.gmra.mrb[28].mxu1 %v9732_v48  ;;  %v8164_v48 = vld [vmem:[#allocation12 + $0x20] ss:$8 sps:$4 sm:$0xff]  }
 0x440   : > { %5167 = vmatmul.mubr.bf16.gmra.mrb[12].mxu0 %v9825_v55  ;;  %5336 = vmatpush1.bf16.msra.mxu1 %v8080_v37  ;;  %v8193_v37 = vld [vmem:[#allocation12 + $0xb4] ss:$8 sps:$4 sm:$0xff]  }
 0x441   : > { %5355 = vmatprep.mubr.bf16.mxu1 %v9736_v57  ;;  %5337 = vmatprep.subr.bf16.mxu1 %v8085_v43  ;;  %v8167_v57 = vld [vmem:[#allocation12 + $0x30] ss:$8 sps:$4 sm:$0xff]   ;;  %v8113_v43 = vld [vmem:[#allocation9 + $0x628] ss:$16 sps:$4 sm:$0xff]  }
 0x442   : > { %5918 = vmatpush1.bf16.msra.mxu0 %v8164_v48  ;;  %v8127_v48 = vld [vmem:[#allocation9 + $0x6ac] ss:$16 sps:$4 sm:$0xff]  }
 0x443   : > { %5919 = vmatprep.subr.bf16.mxu0 %v8169_v5  ;;  %v8202_v5 = vld [vmem:[#allocation12 + $0xe4] ss:$8 sps:$4 sm:$0xff]  }
 0x444   : > { %5338 = vmatpush1.bf16.msra.mxu1 %v8083_v60  ;;  %v8196_v60 = vld [vmem:[#allocation12 + $0xc4] ss:$8 sps:$4 sm:$0xff]  }
 0x445   : > { %5339 = vmatprep.subr.bf16.mxu1 %v8088_v54  ;;  %v8121_v54 = vld [vmem:[#allocation9 + $0x66c] ss:$16 sps:$4 sm:$0xff]  }
 0x446   : > { %5920 = vmatpush1.bf16.msra.mxu0 %v8167_v57 }
 0x447   : > { %5921 = vmatprep.subr.bf16.mxu0 %v8172_v6  ;;  %v8128_v6 = vld [vmem:[#allocation9 + $0x6c8] ss:$16 sps:$4 sm:$0xff]  }
 0x448   : > { %5340 = vmatpush1.bf16.msra.mxu1 %v8086_v38  ;;  %v8197_v38 = vld [vmem:[#allocation12 + $0xd0] ss:$8 sps:$4 sm:$0xff]  }
 0x449   : > { %5341 = vmatprep.subr.bf16.mxu1 %v8091_v62  ;;  %v8122_v62 = vld [vmem:[#allocation9 + $0x688] ss:$16 sps:$4 sm:$0xff]  }
 0x44a   : > { %5922 = vmatpush1.bf16.msra.mxu0 %v8170_v29  ;;  %v8131_v29 = vld [vmem:[#allocation9 + $0x6e8] ss:$16 sps:$4 sm:$0xff]  }
 0x44b   : > { %5923 = vmatprep.subr.bf16.mxu0 %v8175_v26  ;;  %v8203_v26 = vld [vmem:[#allocation12 + $0xf0] ss:$8 sps:$4 sm:$0xff]  }
 0x44c   : > { %5342 = vmatpush1.bf16.msra.mxu1 %v8089_v49  ;;  %v8130_v49 = vld [vmem:[#allocation9 + $0x6cc] ss:$16 sps:$4 sm:$0xff]  }
 0x44d   : > { %5343 = vmatprep.subr.bf16.mxu1 %v8094_v3 }
 0x44e   : > { %5924 = vmatpush1.bf16.msra.mxu0 %v8173_v32  ;;  %v8139_v32 = vld [vmem:[#allocation9 + $0x72c] ss:$16 sps:$4 sm:$0xff]  }
 0x44f   : > { %5925 = vmatprep.subr.bf16.mxu0 %v8178_v52  ;;  %v8137_v52 = vld [vmem:[#allocation9 + $0x728] ss:$16 sps:$4 sm:$0xff]  }
 0x450   : > { %5344 = vmatpush1.bf16.msra.mxu1 %v8092_v18  ;;  %v8200_v18 = vld [vmem:[#allocation12 + $0xe0] ss:$8 sps:$4 sm:$0xff]  }
 0x451   : > { %5345 = vmatprep.subr.bf16.mxu1 %v8097_v8 }
 0x452   : > { %5926 = vmatpush1.bf16.msra.mxu0 %v8176_v21  ;;  %v8140_v21 = vld [vmem:[#allocation9 + $0x748] ss:$16 sps:$4 sm:$0xff]  }
 0x453   : > { %5927 = vmatprep.subr.bf16.mxu0 %v8181_v36  ;;  %v8145_v36 = vld [vmem:[#allocation9 + $0x76c] ss:$16 sps:$4 sm:$0xff]  }
 0x454   : > { %5346 = vmatpush1.bf16.msra.mxu1 %v8095_v15  ;;  %v8136_v15 = vld [vmem:[#allocation9 + $0x70c] ss:$16 sps:$4 sm:$0xff]  }
 0x455   : > { %5347 = vmatprep.subr.bf16.mxu1 %v8100_v17  ;;  %v8134_v17 = vld [vmem:[#allocation9 + $0x708] ss:$16 sps:$4 sm:$0xff]  }
 0x456   : > { %5928 = vmatpush1.bf16.msra.mxu0 %v8179_v53  ;;  %v8148_v53 = vld [vmem:[#allocation9 + $0x78c] ss:$16 sps:$4 sm:$0xff]  }
 0x457   : > { %5929 = vmatprep.subr.bf16.mxu0 %v8184_v11 }
 0x458   : > { %5348 = vmatpush1.bf16.msra.mxu1 %v8098_v2  ;;  %v8142_v2 = vld [vmem:[#allocation9 + $0x74c] ss:$16 sps:$4 sm:$0xff]  }
 0x459   : > { %5349 = vmatprep.subr.bf16.mxu1 %v8103_v10 }
 0x45a   : > { %5930 = vmatpush1.bf16.msra.mxu0 %v8182_v25 }
 0x45b   : > { %5931 = vmatprep.subr.bf16.mxu0 %v8187_v50  ;;  %v8151_v50 = vld [vmem:[#allocation9 + $0x7ac] ss:$16 sps:$4 sm:$0xff]  }
 0x45c   : > { %5350 = vmatpush1.bf16.msra.mxu1 %v8101_v23 }
 0x45d   : > { %5351 = vmatprep.subr.bf16.mxu1 %v8106_v24  ;;  %v8143_v24 = vld [vmem:[#allocation9 + $0x768] ss:$16 sps:$4 sm:$0xff]  }
 0x45e   : > { %5932 = vmatpush1.bf16.msra.mxu0 %v8185_v7  ;;  %v8154_v7 = vld [vmem:[#allocation9 + $0x7cc] ss:$16 sps:$4 sm:$0xff]  }
 0x45f   : > { %5933 = vmatprep.subr.bf16.mxu0 %v8190_v19 }
 0x460   : > { %5352 = vmatpush1.bf16.msra.mxu1 %v8104_v9 }
 0x461   : > { %5353 = vmatprep.subr.bf16.mxu1 %v8109_v14  ;;  %v8146_v14 = vld [vmem:[#allocation9 + $0x788] ss:$16 sps:$4 sm:$0xff]  }
 0x462   : > { %5934 = vmatpush1.bf16.msra.mxu0 %v8188_v42 }
 0x463   : > { %5935 = vmatprep.subr.bf16.mxu0 %v8193_v37  ;;  %v8157_v37 = vld [vmem:[#allocation9 + $0x7ec] ss:$16 sps:$4 sm:$0xff]  }
 0x464   : > { %5354 = vmatpush1.bf16.msra.mxu1 %v8107_v34 }
 0x465   : > { %5396 = vmatprep.subr.bf16.mxu1 %v8112_v35  ;;  %v8149_v35 = vld [vmem:[#allocation9 + $0x7a8] ss:$16 sps:$4 sm:$0xff]  }
 0x466   : > { %5936 = vmatpush1.bf16.msra.mxu0 %v8191_v47  ;;  %v8155_v47 = vld [vmem:[#allocation9 + $0x7e8] ss:$16 sps:$4 sm:$0xff]  }
 0x467   : > { %5356 = vmatmul.mubr.bf16.vlgmr.msra.gmra.mrb[16].mxu1 %v9741_v44  ;;  %5937 = vmatprep.subr.bf16.mxu0 %v8196_v60  ;;  %v8199_v44 = vld [vmem:[#allocation12 + $0xd4] ss:$8 sps:$4 sm:$0xff]  }
 0x468   : > { %5397 = vmatpush1.bf16.msra.mxu1 %v8110_v20  ;;  %5365 = vmatprep.mubr.bf16.mxu1 %v9749_v56  ;;  %v8124_v56 = vld [vmem:[#allocation9 + $0x68c] ss:$16 sps:$4 sm:$0xff]   ;;  %v9877_v60 = vld [vmem:[#allocation11] sm:$0xf] }
 0x469   : > { %5398 = vmatprep.subr.bf16.mxu1 %v8115_v27  ;;  %v8152_v27 = vld [vmem:[#allocation9 + $0x7c8] ss:$16 sps:$4 sm:$0xff]  }
 0x46a   : > { %5938 = vmatpush1.bf16.msra.mxu0 %v8194_v28 }
 0x46b   : > { %5939 = vmatprep.subr.bf16.mxu0 %v8199_v44 }
 0x46c   : > { %5399 = vmatpush1.bf16.msra.mxu1 %v8113_v43 }
 0x46d   : > { %5400 = vmatprep.subr.bf16.mxu1 %v8118_v33  ;;  %v8208_v33 = vld [vmem:[#allocation12 + $0x104] ss:$8 sps:$4 sm:$0xff]  }
 0x46e   : > { %5940 = vmatpush1.bf16.msra.mxu0 %v8197_v38 }
 0x46f   : > { %5366 = vmatmul.mubr.bf16.gmra.mrb[20].mxu1 %v9754_v61  ;;  %v8125_v61 = vld [vmem:[#allocation9 + $0x6a8] ss:$16 sps:$4 sm:$0xff]   ;;  %5941 = vmatprep.subr.bf16.mxu0 %v8202_v5 }
 0x470   : > { %5401 = vmatpush1.bf16.msra.mxu1 %v8116_v31  ;;  %5375 = vmatprep.mubr.bf16.mxu1 %v9761_v39  ;;  %v9881_v31 = vrot.slane %v9877_v60, %v9631_v40 }
 0x471   : > { %5402 = vmatprep.subr.bf16.mxu1 %v8121_v54 }
 0x472   : > { %5942 = vmatpush1.bf16.msra.mxu0 %v8200_v18  ;;  %v8206_v18 = vld [vmem:[#allocation12 + $0x100] ss:$8 sps:$4 sm:$0xff]  }
 0x474   : > { %5403 = vmatpush1.bf16.msra.mxu1 %v8119_v51 }
 0x475   : > { %5404 = vmatprep.subr.bf16.mxu1 %v8124_v56 }
 0x477   : > { %5376 = vmatmul.mubr.bf16.gmra.mrb[24].mxu1 %v9767_v58  ;;  %v8133_v58 = vld [vmem:[#allocation9 + $0x6ec] ss:$16 sps:$4 sm:$0xff]  }
 0x478   : > { %5405 = vmatpush1.bf16.msra.mxu1 %v8122_v62  ;;  %5385 = vmatprep.mubr.bf16.mxu1 %v9771_v13  ;;  %v8205_v13 = vld [vmem:[#allocation12 + $0xf4] ss:$8 sps:$4 sm:$0xff]  }
 0x479   : > { %5406 = vmatprep.subr.bf16.mxu1 %v8127_v48  ;;  %5943 = vmatprep.subr.bf16.mxu0 %v8205_v13 }
 0x47a   : > { %v9836_v3 = vpop.f32.mrb[0].mxu1  ;;  %5944 = vmatpush1.bf16.msra.mxu0 %v8203_v26 }
 0x47b   : > { %v9838_v39 = vpop.f32.mrb[1].mxu1  ;;  %5986 = vmatprep.subr.bf16.mxu0 %v8208_v33 }
 0x47c   : > { %v9840_v57 = vpop.f32.mrb[2].mxu1  ;;  %5407 = vmatpush1.bf16.msra.mxu1 %v8125_v61 }
 0x47d   : > { %v9842_v8 = vpop.f32.mrb[3].mxu1  ;;  %5408 = vmatprep.subr.bf16.mxu1 %v8130_v49 }
 0x47f   : > { %5386 = vmatmul.mubr.bf16.gmra.mrb[28].mxu1 %v9779_v22 }
 0x480   : > { %5409 = vmatpush1.bf16.msra.mxu1 %v8128_v6  ;;  %5428 = vmatprep.mubr.bf16.mxu1 %v9781_v46 }
 0x481   : > { %5410 = vmatprep.subr.bf16.mxu1 %v8133_v58 }
 0x482   : > { %v9846_v10 = vpop.f32.mrb[4].mxu1 }
 0x483   : > { %v9848_v22 = vpop.f32.mrb[5].mxu1 }
 0x484   : > { %5411 = vmatpush1.bf16.msra.mxu1 %v8131_v29  ;;  %v9850_v46 = vpop.f32.mrb[6].mxu1  ;;  %v8211_v29 = vld [vmem:[#allocation12 + $0x114] ss:$8 sps:$4 sm:$0xff]  }
 0x485   : > { %5412 = vmatprep.subr.bf16.mxu1 %v8136_v15  ;;  %v9852_v23 = vpop.f32.mrb[7].mxu1 }
 0x488   : > { %5413 = vmatpush1.bf16.msra.mxu1 %v8134_v17 }
 0x489   : > { %5414 = vmatprep.subr.bf16.mxu1 %v8139_v32 }
 0x48a   : > { %v9854_v11 = vpop.f32.mrb[8].mxu1 }
 0x48b   : > { %v9856_v9 = vpop.f32.mrb[9].mxu1 }
 0x48c   : > { %5415 = vmatpush1.bf16.msra.mxu1 %v8137_v52  ;;  %v9858_v25 = vpop.f32.mrb[10].mxu1 }
 0x48d   : > { %5416 = vmatprep.subr.bf16.mxu1 %v8142_v2  ;;  %v9860_v34 = vpop.f32.mrb[11].mxu1 }
 0x490   : > { %5417 = vmatpush1.bf16.msra.mxu1 %v8140_v21 }
 0x491   : > { %5418 = vmatprep.subr.bf16.mxu1 %v8145_v36  ;;  %v8214_v36 = vld [vmem:[#allocation12 + $0x124] ss:$8 sps:$4 sm:$0xff]  }
 0x494   : > { %5419 = vmatpush1.bf16.msra.mxu1 %v8143_v24 }
 0x495   : > { %5420 = vmatprep.subr.bf16.mxu1 %v8148_v53  ;;  %v9862_v19 = vpop.f32.mrb[12].mxu1  ;;  %v4940_v53 = vadd.f32 %v9854_v11, %v9881_v31 }
 0x496   : > { %v9864_v20 = vpop.f32.mrb[13].mxu1 }
 0x497   : > { %v9866_v42 = vpop.f32.mrb[14].mxu1 }
 0x498   : > { %5421 = vmatpush1.bf16.msra.mxu1 %v8146_v14  ;;  %v9868_v43 = vpop.f32.mrb[15].mxu1 }
 0x499   : > { %5422 = vmatprep.subr.bf16.mxu1 %v8151_v50 }
 0x49c   : > { %5423 = vmatpush1.bf16.msra.mxu1 %v8149_v35 }
 0x49d   : > { %5424 = vmatprep.subr.bf16.mxu1 %v8154_v7  ;;  %v8212_v7 = vld [vmem:[#allocation12 + $0x120] ss:$8 sps:$4 sm:$0xff]  }
 0x4a0   : > { %5425 = vmatpush1.bf16.msra.mxu1 %v8152_v27  ;;  %v4944_v27 = vadd.f32 %v9858_v25, %v9881_v31  ;;  %v8220_v25 = vld [vmem:[#allocation12 + $0x144] ss:$8 sps:$4 sm:$0xff]  }
 0x4a1   : > { %5426 = vmatprep.subr.bf16.mxu1 %v8157_v37 }
 0x4a4   : > { %5427 = vmatpush1.bf16.msra.mxu1 %v8155_v47  ;;  %v8217_v47 = vld [vmem:[#allocation12 + $0x134] ss:$8 sps:$4 sm:$0xff]  }
 0x4a7   : > { %5429 = vmatmul.mubr.bf16.vlgmr.msra.gmra.mrb[16].mxu1 %v9791_v45  ;;  %v9885_v45 = vrot.slane %v9877_v60, %v9610_v0 }
 0x4a8   : > { %5438 = vmatprep.mubr.bf16.mxu1 %v9795_v12  ;;  %v4920_v12 = vadd.f32 %v9836_v3, %v9881_v31  ;;  %v4930_v3 = vadd.f32 %v9846_v10, %v9881_v31  ;;  %v8209_v10 = vld [vmem:[#allocation12 + $0x110] ss:$8 sps:$4 sm:$0xff]  }
 0x4a9   : > { %v4926_v54 = vadd.f32 %v9842_v8, %v9885_v45  ;;  %v4932_v5 = vadd.f32 %v9848_v22, %v9885_v45  ;;  %v4934_v8 = vadd.f32 %v9850_v46, %v9881_v31  ;;  %v4936_v26 = vadd.f32 %v9852_v23, %v9885_v45 }
 0x4aa   : > { %v4942_v23 = vadd.f32 %v9856_v9, %v9885_v45 }
 0x4af   : > { %5439 = vmatmul.mubr.bf16.gmra.mrb[20].mxu1 %v9803_v16  ;;  %v4922_v16 = vadd.f32 %v9838_v39, %v9885_v45 }
 0x4b0   : > { %5448 = vmatprep.mubr.bf16.mxu1 %v9807_v63 }
 0x4b7   : > { %5449 = vmatmul.mubr.bf16.gmra.mrb[24].mxu1 %v9815_v30  ;;  %v4924_v30 = vadd.f32 %v9840_v57, %v9881_v31 }
 0x4b8   : > { %5458 = vmatprep.mubr.bf16.mxu1 %v9819_v41 }
 0x4bf   : > { %5459 = vmatmul.mubr.bf16.gmra.mrb[28].mxu1 %v9825_v55 }
 0x4fb   : > { %v5138_v63 = vpop.f32.mrb[0].mxu0 }
 0x4fc   : > { %v7422_v41 = vadd.f32 %v5138_v63, %v4920_v12  ;;  %v5140_v55 = vpop.f32.mrb[1].mxu0  ;;  %v4946_v12 = vadd.f32 %v9860_v34, %v9885_v45  ;;  %v4952_v34 = vadd.f32 %v9864_v20, %v9885_v45 }
 0x4fd   : > { %v7424_v28 = vadd.f32 %v5140_v55, %v4922_v16  ;;  %v5142_v44 = vpop.f32.mrb[2].mxu0 }
 0x4fe   : > { %v7426_v51 = vadd.f32 %v5142_v44, %v4924_v30  ;;  %v5144_v56 = vpop.f32.mrb[3].mxu0  ;;  %v5469_v62 = vmax.f32 %v7422_v41, 0.0  ;;  %v8215_v41 = vld [vmem:[#allocation12 + $0x130] ss:$8 sps:$4 sm:$0xff]  }
 0x4ff   : > { %v7428_v38 = vadd.f32 %v5144_v56, %v4926_v54  ;;  %v5470_v61 = vmax.f32 %v7424_v28, 0.0 }
 0x500   : > { %v5473_v48 = vmax.f32 %v7426_v51, 0.0  ;;  %v4950_v51 = vadd.f32 %v9862_v19, %v9881_v31 }
 0x501   : > { %v5474_v49 = vmax.f32 %v7428_v38, 0.0 }
 0x502   : > { %v5501_v39 = vpack.c.bf16 %v5473_v48, %v5469_v62  ;;  %v8218_v48 = vld [vmem:[#allocation12 + $0x140] ss:$8 sps:$4 sm:$0xff]  }
 0x503   : > { %v5502_v57 = vpack.c.bf16 %v5474_v49, %v5470_v61  ;;  %v5148_v6 = vpop.f32.mrb[4].mxu0  ;;  %v4954_v61 = vadd.f32 %v9866_v42, %v9881_v31  ;;  %v8226_v42 = vld [vmem:[#allocation12 + $0x164] ss:$8 sps:$4 sm:$0xff]  }
 0x504   : > { %v7430_v58 = vadd.f32 %v5148_v6, %v4930_v3  ;;  %v5150_v13 = vpop.f32.mrb[5].mxu0 }
 0x505   : > { %v7432_v15 = vadd.f32 %v5150_v13, %v4932_v5  ;;  %v5152_v17 = vpop.f32.mrb[6].mxu0  ;;  %5945 = vmatprep.mubr.bf16.mxu0 %v5502_v57  ;;  %v4956_v5 = vadd.f32 %v9868_v43, %v9885_v45  ;;  %v8229_v43 = vld [vmem:[#allocation12 + $0x174] ss:$8 sps:$4 sm:$0xff]   ;;  %v8227_v45 = vld [vmem:[#allocation12 + $0x170] ss:$8 sps:$4 sm:$0xff]  }
 0x506   : > { %v7434_v32 = vadd.f32 %v5152_v17, %v4934_v8  ;;  %v5154_v52 = vpop.f32.mrb[7].mxu0  ;;  %5946 = vmatmul.mubr.bf16.vlgmr.msra.gmra.mrb[16].mxu0 %v5501_v39  ;;  %v5477_v22 = vmax.f32 %v7430_v58, 0.0  ;;  %v8223_v39 = vld [vmem:[#allocation12 + $0x154] ss:$8 sps:$4 sm:$0xff]   ;;  %v8221_v8 = vld [vmem:[#allocation12 + $0x150] ss:$8 sps:$4 sm:$0xff]  }
 0x507   : > { %v7436_v2 = vadd.f32 %v5154_v52, %v4936_v26  ;;  %5987 = vmatpush1.bf16.msra.mxu0 %v8206_v18  ;;  %v5478_v46 = vmax.f32 %v7432_v15, 0.0  ;;  %v8224_v17 = vld [vmem:[#allocation12 + $0x160] ss:$8 sps:$4 sm:$0xff]  }
 0x508   : > { %v5481_v21 = vmax.f32 %v7434_v32, 0.0  ;;  %5988 = vmatprep.subr.bf16.mxu0 %v8211_v29  ;;  %v8232_v32 = vld [vmem:[#allocation12 + $0x184] ss:$8 sps:$4 sm:$0xff]   ;;  %v8230_v52 = vld [vmem:[#allocation12 + $0x180] ss:$8 sps:$4 sm:$0xff]  }
 0x509   : > { %v5482_v24 = vmax.f32 %v7436_v2, 0.0  ;;  %v8235_v2 = vld [vmem:[#allocation12 + $0x194] ss:$8 sps:$4 sm:$0xff]  }
 0x50a   : > { %v5505_v14 = vpack.c.bf16 %v5481_v21, %v5477_v22  ;;  %v8238_v22 = vld [vmem:[#allocation12 + $0x1a4] ss:$8 sps:$4 sm:$0xff]   ;;  %v8236_v21 = vld [vmem:[#allocation12 + $0x1a0] ss:$8 sps:$4 sm:$0xff]  }
 0x50b   : > { %v5506_v50 = vpack.c.bf16 %v5482_v24, %v5478_v46  ;;  %v5158_v35 = vpop.f32.mrb[8].mxu0  ;;  %5989 = vmatpush1.bf16.msra.mxu0 %v8209_v10  ;;  %v8233_v10 = vld [vmem:[#allocation12 + $0x190] ss:$8 sps:$4 sm:$0xff]   ;;  %v8244_v24 = vld [vmem:[#allocation12 + $0x1c4] ss:$8 sps:$4 sm:$0xff]  }
 0x50c   : > { %v7438_v37 = vadd.f32 %v5158_v35, %v4940_v53  ;;  %v5160_v33 = vpop.f32.mrb[9].mxu0  ;;  %5990 = vmatprep.subr.bf16.mxu0 %v8214_v36  ;;  %v8241_v36 = vld [vmem:[#allocation12 + $0x1b4] ss:$8 sps:$4 sm:$0xff]   ;;  %v8239_v46 = vld [vmem:[#allocation12 + $0x1b0] ss:$8 sps:$4 sm:$0xff]  }
 0x50d   : > { %v7440_v16 = vadd.f32 %v5160_v33, %v4942_v23  ;;  %v5162_v11 = vpop.f32.mrb[10].mxu0  ;;  %5955 = vmatprep.mubr.bf16.mxu0 %v5506_v50  ;;  %v8242_v53 = vld [vmem:[#allocation12 + $0x1c0] ss:$8 sps:$4 sm:$0xff]   ;;  %v8245_v23 = vld [vmem:[#allocation12 + $0x1d0] ss:$8 sps:$4 sm:$0xff]   ;;  %v9922_v33 = vrot.slane %v9877_v60, %v3137_v4 }
 0x50e   : > { %v7442_v63 = vadd.f32 %v5162_v11, %v4944_v27  ;;  %v5164_v30 = vpop.f32.mrb[11].mxu0  ;;  %5956 = vmatmul.mubr.bf16.gmra.mrb[20].mxu0 %v5505_v14  ;;  %v5485_v55 = vmax.f32 %v7438_v37, 0.0  ;;  %v8247_v14 = vld [vmem:[#allocation12 + $0x1d4] ss:$8 sps:$4 sm:$0xff]   ;;  %v8250_v50 = vld [vmem:[#allocation12 + $0x1e4] ss:$8 sps:$4 sm:$0xff]  }
 0x50f   : > { %v7444_v9 = vadd.f32 %v5164_v30, %v4946_v12  ;;  %5991 = vmatpush1.bf16.msra.mxu0 %v8212_v7  ;;  %v5486_v28 = vmax.f32 %v7440_v16, 0.0  ;;  %v8248_v35 = vld [vmem:[#allocation12 + $0x1e0] ss:$8 sps:$4 sm:$0xff]   ;;  %v8253_v7 = vld [vmem:[#allocation12 + $0x1f4] ss:$8 sps:$4 sm:$0xff]  }
 0x510   : > { %v5489_v54 = vmax.f32 %v7442_v63, 0.0  ;;  %5992 = vmatprep.subr.bf16.mxu0 %v8217_v47  ;;  %v8251_v27 = vld [vmem:[#allocation12 + $0x1f0] ss:$8 sps:$4 sm:$0xff]   ;;  %v8254_v37 = vld [vmem:[#allocation15 + $0x40] sm:$0xff]   ;;  %v9927_v47 = vrot.slane %v9877_v60, %v3141_v1 }
 0x511   : > { %v5490_v44 = vmax.f32 %v7444_v9, 0.0  ;;  %v8255_v60 = vld [vmem:[#allocation15] sm:$0xff]  }
 0x512   : > { %v5509_v56 = vpack.c.bf16 %v5489_v54, %v5485_v55 }
 0x513   : > { %v5510_v38 = vpack.c.bf16 %v5490_v44, %v5486_v28  ;;  %v5168_v62 = vpop.f32.mrb[12].mxu0  ;;  %5993 = vmatpush1.bf16.msra.mxu0 %v8215_v41 }
 0x514   : > { %v7446_v49 = vadd.f32 %v5168_v62, %v4950_v51  ;;  %v5170_v3 = vpop.f32.mrb[13].mxu0  ;;  %5994 = vmatprep.subr.bf16.mxu0 %v8220_v25 }
 0x515   : > { %v7448_v57 = vadd.f32 %v5170_v3, %v4952_v34  ;;  %v5172_v19 = vpop.f32.mrb[14].mxu0  ;;  %5965 = vmatprep.mubr.bf16.mxu0 %v5510_v38  ;;  %v8256_v34 = vld [vmem:[#allocation15 + $0x48] sm:$0xff]  }
 0x516   : > { %v7450_v6 = vadd.f32 %v5172_v19, %v4954_v61  ;;  %v5174_v18 = vpop.f32.mrb[15].mxu0  ;;  %5966 = vmatmul.mubr.bf16.gmra.mrb[24].mxu0 %v5509_v56  ;;  %v5493_v58 = vmax.f32 %v7446_v49, 0.0  ;;  %v8257_v3 = vld [vmem:[#allocation15 + $0x8] sm:$0xff]  }
 0x517   : > { %v7452_v20 = vadd.f32 %v5174_v18, %v4956_v5  ;;  %5995 = vmatpush1.bf16.msra.mxu0 %v8218_v48  ;;  %v5494_v31 = vmax.f32 %v7448_v57, 0.0  ;;  %v8258_v57 = vld [vmem:[#allocation15 + $0x50] sm:$0xff]  }
 0x518   : > { %v5497_v13 = vmax.f32 %v7450_v6, 0.0  ;;  %5996 = vmatprep.subr.bf16.mxu0 %v8223_v39 }
 0x519   : > { %v5498_v29 = vmax.f32 %v7452_v20, 0.0 }
 0x51a   : > { %v5513_v26 = vpack.c.bf16 %v5497_v13, %v5493_v58  ;;  %v8259_v58 = vld [vmem:[#allocation15 + $0x10] sm:$0xff]  }
 0x51b   : > { %v5514_v15 = vpack.c.bf16 %v5498_v29, %v5494_v31  ;;  %5997 = vmatpush1.bf16.msra.mxu0 %v8221_v8  ;;  %v8260_v31 = vld [vmem:[#allocation15 + $0x58] sm:$0xff]  }
 0x51c   : > { %5998 = vmatprep.subr.bf16.mxu0 %v8226_v42 }
 0x51d   : > { %5975 = vmatprep.mubr.bf16.mxu0 %v5514_v15 }
 0x51e   : > { %5976 = vmatmul.mubr.bf16.gmra.mrb[28].mxu0 %v5513_v26 }
 0x51f   : > { %5999 = vmatpush1.bf16.msra.mxu0 %v8224_v17 }
 0x520   : > { %6000 = vmatprep.subr.bf16.mxu0 %v8229_v43 }
 0x523   : > { %6001 = vmatpush1.bf16.msra.mxu0 %v8227_v45  ;;  %v8261_v45 = vld [vmem:[#allocation15 + $0x18] sm:$0xff]  }
 0x524   : > { %6002 = vmatprep.subr.bf16.mxu0 %v8232_v32 }
 0x527   : > { %6003 = vmatpush1.bf16.msra.mxu0 %v8230_v52 }
 0x528   : > { %6004 = vmatprep.subr.bf16.mxu0 %v8235_v2  ;;  %v8262_v2 = vld [vmem:[#allocation15 + $0x60] sm:$0xff]  }
 0x52b   : > { %6005 = vmatpush1.bf16.msra.mxu0 %v8233_v10 }
 0x52c   : > { %6006 = vmatprep.subr.bf16.mxu0 %v8238_v22 }
 0x52f   : > { %6007 = vmatpush1.bf16.msra.mxu0 %v8236_v21 }
 0x530   : > { %6008 = vmatprep.subr.bf16.mxu0 %v8241_v36 }
 0x533   : > { %6009 = vmatpush1.bf16.msra.mxu0 %v8239_v46 }
 0x534   : > { %6010 = vmatprep.subr.bf16.mxu0 %v8244_v24  ;;  %v8263_v24 = vld [vmem:[#allocation15 + $0x20] sm:$0xff]  }
 0x537   : > { %6011 = vmatpush1.bf16.msra.mxu0 %v8242_v53 }
 0x538   : > { %6012 = vmatprep.subr.bf16.mxu0 %v8247_v14 }
 0x53b   : > { %6013 = vmatpush1.bf16.msra.mxu0 %v8245_v23  ;;  %v8264_v23 = vld [vmem:[#allocation15 + $0x68] sm:$0xff]  }
 0x53c   : > { %6014 = vmatprep.subr.bf16.mxu0 %v8250_v50 }
 0x53f   : > { %6015 = vmatpush1.bf16.msra.mxu0 %v8248_v35 }
 0x540   : > { %6016 = vmatprep.subr.bf16.mxu0 %v8253_v7 }
 0x543   : > { %6017 = vmatpush1.bf16.msra.mxu0 %v8251_v27 }
 0x544   : > { %7281 = vmatprep.subr.bf16.mxu0 %v8254_v37 }
 0x57a   : > { %v5430_v12 = vpop.f32.mrb[16].mxu1 }
 0x57b   : > { %v7453_v16 = vadd.f32 %v5430_v12, %v9922_v33  ;;  %v5432_v11 = vpop.f32.mrb[17].mxu1  ;;  %v8265_v12 = vld [vmem:[#allocation15 + $0x28] sm:$0xff]  }
 0x57c   : > { %v7454_v63 = vadd.f32 %v5432_v11, %v9927_v47  ;;  %v5434_v30 = vpop.f32.mrb[18].mxu1 }
 0x57d   : > { %v7455_v9 = vadd.f32 %v5434_v30, %v9922_v33  ;;  %v5436_v41 = vpop.f32.mrb[19].mxu1  ;;  %v5471_v54 = vmax.f32 %v7453_v16, 0.0 }
 0x57e   : > { %v7456_v55 = vadd.f32 %v5436_v41, %v9927_v47  ;;  %v5472_v25 = vmax.f32 %v7454_v63, 0.0 }
 0x57f   : > { %v5475_v4 = vmax.f32 %v7455_v9, 0.0 }
 0x580   : > { %v5476_v28 = vmax.f32 %v7456_v55, 0.0  ;;  %v8266_v55 = vld [vmem:[#allocation15 + $0x70] sm:$0xff]  }
 0x581   : > { %v5503_v59 = vpack.c.bf16 %v5475_v4, %v5471_v54  ;;  %v8267_v54 = vld [vmem:[#allocation15 + $0x30] sm:$0xff]   ;;  %v8269_v4 = vld [vmem:[#allocation15 + $0x38] sm:$0xff]  }
 0x582   : > { %v5504_v44 = vpack.c.bf16 %v5476_v28, %v5472_v25  ;;  %v5440_v1 = vpop.f32.mrb[20].mxu1  ;;  %v8271_v25 = vld [vmem:[#allocation18 + $0x8] sm:$0xff]   ;;  %v8272_v28 = vld [vmem:[#allocation18 + $0x10] sm:$0xff]  }
 0x583   : > { %v7457_v51 = vadd.f32 %v5440_v1, %v9922_v33  ;;  %v5442_v56 = vpop.f32.mrb[21].mxu1 }
 0x584   : > { %v7458_v38 = vadd.f32 %v5442_v56, %v9927_v47  ;;  %v5444_v62 = vpop.f32.mrb[22].mxu1  ;;  %6018 = vmatprep.mubr.bf16.mxu0 %v5504_v44 }
 0x585   : > { %v7459_v48 = vadd.f32 %v5444_v62, %v9922_v33  ;;  %v5446_v61 = vpop.f32.mrb[23].mxu1  ;;  %6019 = vmatmul.mubr.bf16.vlgmr.msra.gmra.mrb[16].mxu0 %v5503_v59  ;;  %v5479_v39 = vmax.f32 %v7457_v51, 0.0  ;;  %v5581_v59 = vld [vmem:[#allocation14] sm:$0x3] }
 0x586   : > { %v7460_v49 = vadd.f32 %v5446_v61, %v9927_v47  ;;  %7282 = vmatpush3.bf16.msra.mxu0 %v8255_v60  ;;  %v5480_v19 = vmax.f32 %v7458_v38, 0.0  ;;  %v5586_v44 = vrot.slane %v5581_v59, %v9631_v40  ;;  %v5590_v1 = vrot.slane %v5581_v59, %v9610_v0 }
 0x587   : > { %v5483_v5 = vmax.f32 %v7459_v48, 0.0  ;;  %7283 = vmatprep.subr.bf16.mxu0 %v8256_v34 }
 0x588   : > { %v5484_v6 = vmax.f32 %v7460_v49, 0.0 }
 0x589   : > { %v5507_v18 = vpack.c.bf16 %v5483_v5, %v5479_v39 }
 0x58a   : > { %v5508_v20 = vpack.c.bf16 %v5484_v6, %v5480_v19  ;;  %v5450_v8 = vpop.f32.mrb[24].mxu1  ;;  %7284 = vmatpush3.bf16.msra.mxu0 %v8257_v3 }
 0x58b   : > { %v7461_v13 = vadd.f32 %v5450_v8, %v9922_v33  ;;  %v5452_v42 = vpop.f32.mrb[25].mxu1  ;;  %7285 = vmatprep.subr.bf16.mxu0 %v8258_v57 }
 0x58c   : > { %v7462_v29 = vadd.f32 %v5452_v42, %v9927_v47  ;;  %v5454_v26 = vpop.f32.mrb[26].mxu1  ;;  %6028 = vmatprep.mubr.bf16.mxu0 %v5508_v20 }
 0x58d   : > { %v7463_v15 = vadd.f32 %v5454_v26, %v9922_v33  ;;  %v5456_v17 = vpop.f32.mrb[27].mxu1  ;;  %6029 = vmatmul.mubr.bf16.gmra.mrb[20].mxu0 %v5507_v18  ;;  %v5487_v32 = vmax.f32 %v7461_v13, 0.0 }
 0x58e   : > { %v7464_v43 = vadd.f32 %v5456_v17, %v9927_v47  ;;  %7286 = vmatpush3.bf16.msra.mxu0 %v8259_v58  ;;  %v5488_v10 = vmax.f32 %v7462_v29, 0.0 }
 0x58f   : > { %v5491_v52 = vmax.f32 %v7463_v15, 0.0  ;;  %7287 = vmatprep.subr.bf16.mxu0 %v8260_v31 }
 0x590   : > { %v5492_v22 = vmax.f32 %v7464_v43, 0.0 }
 0x591   : > { %v5511_v21 = vpack.c.bf16 %v5491_v52, %v5487_v32 }
 0x592   : > { %v5512_v36 = vpack.c.bf16 %v5492_v22, %v5488_v10  ;;  %v5460_v46 = vpop.f32.mrb[28].mxu1  ;;  %7288 = vmatpush3.bf16.msra.mxu0 %v8261_v45 }
 0x593   : > { %v7465_v53 = vadd.f32 %v5460_v46, %v9922_v33  ;;  %v5462_v14 = vpop.f32.mrb[29].mxu1  ;;  %7289 = vmatprep.subr.bf16.mxu0 %v8262_v2 }
 0x594   : > { %v7466_v50 = vadd.f32 %v5462_v14, %v9927_v47  ;;  %v5464_v35 = vpop.f32.mrb[30].mxu1  ;;  %6038 = vmatprep.mubr.bf16.mxu0 %v5512_v36 }
 0x595   : > { %v7467_v7 = vadd.f32 %v5464_v35, %v9922_v33  ;;  %v5466_v27 = vpop.f32.mrb[31].mxu1  ;;  %6039 = vmatmul.mubr.bf16.gmra.mrb[24].mxu0 %v5511_v21  ;;  %v5495_v16 = vmax.f32 %v7465_v53, 0.0  ;;  %v8268_v33 = vld [vmem:[#allocation15 + $0x78] sm:$0xff]  }
 0x596   : > { %v7468_v37 = vadd.f32 %v5466_v27, %v9927_v47  ;;  %7290 = vmatpush3.bf16.msra.mxu0 %v8263_v24  ;;  %v5496_v63 = vmax.f32 %v7466_v50, 0.0  ;;  %v8270_v47 = vld [vmem:[#allocation18] sm:$0xff]  }
 0x597   : > { %v5499_v11 = vmax.f32 %v7467_v7, 0.0  ;;  %7291 = vmatprep.subr.bf16.mxu0 %v8264_v23  ;;  %7333 = vmatprep.subr.bf16.mxu1 %v8270_v47 }
 0x598   : > { %v5500_v30 = vmax.f32 %v7468_v37, 0.0  ;;  %7334 = vmatpush3.bf16.msra.mxu1 %v8270_v47  ;;  %v8275_v47 = vld [vmem:[#allocation18 + $0x28] sm:$0xff]  }
 0x599   : > { %v5515_v9 = vpack.c.bf16 %v5499_v11, %v5495_v16  ;;  %7335 = vmatprep.subr.bf16.mxu1 %v8271_v25 }
 0x59a   : > { %v5516_v41 = vpack.c.bf16 %v5500_v30, %v5496_v63  ;;  %7292 = vmatpush3.bf16.msra.mxu0 %v8265_v12 }
 0x59b   : > { %7293 = vmatprep.subr.bf16.mxu0 %v8266_v55 }
 0x59c   : > { %6048 = vmatprep.mubr.bf16.mxu0 %v5516_v41  ;;  %7336 = vmatpush3.bf16.msra.mxu1 %v8271_v25  ;;  %v8276_v25 = vld [vmem:[#allocation18 + $0x30] sm:$0xff]  }
 0x59d   : > { %6049 = vmatmul.mubr.bf16.gmra.mrb[28].mxu0 %v5515_v9  ;;  %7337 = vmatprep.subr.bf16.mxu1 %v8272_v28 }
 0x59e   : > { %7294 = vmatpush3.bf16.msra.mxu0 %v8267_v54 }
 0x59f   : > { %7295 = vmatprep.subr.bf16.mxu0 %v8268_v33  ;;  %v8273_v33 = vld [vmem:[#allocation18 + $0x18] sm:$0xff]  }
 0x5a0   : > { %7338 = vmatpush3.bf16.msra.mxu1 %v8272_v28  ;;  %v8277_v28 = vld [vmem:[#allocation18 + $0x38] sm:$0xff]  }
 0x5a1   : > { %7339 = vmatprep.subr.bf16.mxu1 %v8273_v33 }
 0x5a2   : > { %7296 = vmatpush3.bf16.msra.mxu0 %v8269_v4  ;;  %v8274_v4 = vld [vmem:[#allocation18 + $0x20] sm:$0xff]  }
 0x5a4   : > { %7340 = vmatpush3.bf16.msra.mxu1 %v8273_v33 }
 0x5a5   : > { %7341 = vmatprep.subr.bf16.mxu1 %v8274_v4 }
 0x5a8   : > { %7342 = vmatpush3.bf16.msra.mxu1 %v8274_v4 }
 0x5a9   : > { %7343 = vmatprep.subr.bf16.mxu1 %v8275_v47 }
 0x5ac   : > { %7344 = vmatpush3.bf16.msra.mxu1 %v8275_v47 }
 0x5ad   : > { %7345 = vmatprep.subr.bf16.mxu1 %v8276_v25 }
 0x5b0   : > { %7346 = vmatpush3.bf16.msra.mxu1 %v8276_v25 }
 0x5b1   : > { %7347 = vmatprep.subr.bf16.mxu1 %v8277_v28 }
 0x5b4   : > { %7348 = vmatpush3.bf16.msra.mxu1 %v8277_v28 }
 0x658   : > { %v6020_v60 = vpop.f32.mrb[16].mxu0 }
 0x659   : > { %v7469_v51 = vadd.f32 %v6020_v60, %v5586_v44  ;;  %v6022_v56 = vpop.f32.mrb[17].mxu0 }
 0x65a   : > { %v7470_v34 = vadd.f32 %v6022_v56, %v5590_v1  ;;  %v6024_v38 = vpop.f32.mrb[18].mxu0 }
 0x65b   : > { %v7471_v62 = vadd.f32 %v6024_v38, %v5586_v44  ;;  %v6026_v48 = vpop.f32.mrb[19].mxu0  ;;  %v6059_v49 = vmax.f32 %v7469_v51, 0.0 }
 0x65c   : > { %v7472_v61 = vadd.f32 %v6026_v48, %v5590_v1  ;;  %v6060_v39 = vmax.f32 %v7470_v34, 0.0 }
 0x65d   : > { %v6061_v3 = vmax.f32 %v7471_v62, 0.0 }
 0x65e   : > { %v6062_v5 = vmax.f32 %v7472_v61, 0.0 }
 0x65f   : > { %v6075_v57 = vpack.c.bf16 %v6061_v3, %v6059_v49 }
 0x660   : > { %v6076_v19 = vpack.c.bf16 %v6062_v5, %v6060_v39  ;;  %v6030_v6 = vpop.f32.mrb[20].mxu0 }
 0x661   : > { %v7473_v18 = vadd.f32 %v6030_v6, %v5586_v44  ;;  %v6032_v20 = vpop.f32.mrb[21].mxu0 }
 0x662   : > { %v7474_v40 = vadd.f32 %v6032_v20, %v5590_v1  ;;  %v6034_v8 = vpop.f32.mrb[22].mxu0  ;;  %6250 = vmatprep.mubr.bf16.mxu0 %v6076_v19 }
 0x663   : > { %v7475_v0 = vadd.f32 %v6034_v8, %v5586_v44  ;;  %v6036_v58 = vpop.f32.mrb[23].mxu0  ;;  %6251 = vmatmul.mubr.bf16.vlgmr.msra.gmra.mrb[32].mxu0 %v6075_v57  ;;  %v6063_v42 = vmax.f32 %v7473_v18, 0.0 }
 0x664   : > { %v7476_v13 = vadd.f32 %v6036_v58, %v5590_v1  ;;  %v6064_v29 = vmax.f32 %v7474_v40, 0.0 }
 0x665   : > { %v6065_v31 = vmax.f32 %v7475_v0, 0.0 }
 0x666   : > { %v6066_v26 = vmax.f32 %v7476_v13, 0.0 }
 0x667   : > { %v6077_v15 = vpack.c.bf16 %v6065_v31, %v6063_v42 }
 0x668   : > { %v6078_v17 = vpack.c.bf16 %v6066_v26, %v6064_v29  ;;  %v6040_v43 = vpop.f32.mrb[24].mxu0 }
 0x669   : > { %v7477_v45 = vadd.f32 %v6040_v43, %v5586_v44  ;;  %v6042_v32 = vpop.f32.mrb[25].mxu0 }
 0x66a   : > { %v7478_v52 = vadd.f32 %v6042_v32, %v5590_v1  ;;  %v6044_v2 = vpop.f32.mrb[26].mxu0  ;;  %6258 = vmatprep.mubr.bf16.mxu0 %v6078_v17 }
 0x66b   : > { %v7479_v10 = vadd.f32 %v6044_v2, %v5586_v44  ;;  %v6046_v22 = vpop.f32.mrb[27].mxu0  ;;  %6259 = vmatmul.mubr.bf16.gmra.mrb[36].mxu0 %v6077_v15  ;;  %v6067_v36 = vmax.f32 %v7477_v45, 0.0 }
 0x66c   : > { %v7480_v21 = vadd.f32 %v6046_v22, %v5590_v1  ;;  %v6068_v24 = vmax.f32 %v7478_v52, 0.0 }
 0x66d   : > { %v6069_v46 = vmax.f32 %v7479_v10, 0.0 }
 0x66e   : > { %v6070_v53 = vmax.f32 %v7480_v21, 0.0 }
 0x66f   : > { %v6079_v14 = vpack.c.bf16 %v6069_v46, %v6067_v36 }
 0x670   : > { %v6080_v23 = vpack.c.bf16 %v6070_v53, %v6068_v24  ;;  %v6050_v50 = vpop.f32.mrb[28].mxu0 }
 0x671   : > { %v7481_v35 = vadd.f32 %v6050_v50, %v5586_v44  ;;  %v6052_v7 = vpop.f32.mrb[29].mxu0  ;;  %v7265_v50 = vld [vmem:[#allocation20] ss:$0 sm:$0xff] }
 0x672   : > { %v7482_v27 = vadd.f32 %v6052_v7, %v5590_v1  ;;  %v6054_v37 = vpop.f32.mrb[30].mxu0  ;;  %6266 = vmatprep.mubr.bf16.mxu0 %v6080_v23 }
 0x673   : > { %v7483_v12 = vadd.f32 %v6054_v37, %v5586_v44  ;;  %v6056_v16 = vpop.f32.mrb[31].mxu0  ;;  %6267 = vmatmul.mubr.bf16.gmra.mrb[40].mxu0 %v6079_v14  ;;  %v6071_v63 = vmax.f32 %v7481_v35, 0.0  ;;  %v7248_v44 = vld [vmem:[#allocation17] ss:$0 sm:$0xff] }
 0x674   : > { %v7484_v11 = vadd.f32 %v6056_v16, %v5590_v1  ;;  %v6072_v9 = vmax.f32 %v7482_v27, 0.0 }
 0x675   : > { %v6073_v30 = vmax.f32 %v7483_v12, 0.0 }
 0x676   : > { %v6074_v41 = vmax.f32 %v7484_v11, 0.0 }
 0x677   : > { %v6081_v55 = vpack.c.bf16 %v6073_v30, %v6071_v63 }
 0x678   : > { %v6082_v54 = vpack.c.bf16 %v6074_v41, %v6072_v9 }
 0x67a   : > { %6274 = vmatprep.mubr.bf16.mxu0 %v6082_v54 }
 0x67b   : > { %6275 = vmatmul.mubr.bf16.gmra.mrb[44].mxu0 %v6081_v55 }
 0x736   : > { %v7297_v59 = vpop.f32.mrb[32].mxu0 }
 0x737   : > { %v7298_v1 = vpop.f32.mrb[33].mxu0 }
 0x738   : > { %v7299_v60 = vadd.f32 %v7298_v1, %v7297_v59  ;;  %v7300_v51 = vpop.f32.mrb[34].mxu0 }
 0x739   : > { %v7301_v56 = vpop.f32.mrb[35].mxu0 }
 0x73a   : > { %v6253_v34 = vadd.f32 %v7299_v60, %v7248_v44  ;;  %v7302_v38 = vadd.f32 %v7301_v56, %v7300_v51 }
 0x73c   : > { %v6256_v62 = vadd.f32 %v7302_v38, %v7248_v44  ;;  %v6283_v48 = vmax.f32 %v6253_v34, 0.0 }
 0x73e   : > { %v6284_v61 = vmax.f32 %v6256_v62, 0.0  ;;  %v7303_v49 = vpop.f32.mrb[36].mxu0 }
 0x73f   : > { %v7304_v3 = vpop.f32.mrb[37].mxu0 }
 0x740   : > { %v7305_v39 = vadd.f32 %v7304_v3, %v7303_v49  ;;  %v7306_v5 = vpop.f32.mrb[38].mxu0  ;;  %v6291_v57 = vpack.c.bf16 %v6284_v61, %v6283_v48 }
 0x741   : > { %v7307_v19 = vpop.f32.mrb[39].mxu0 }
 0x742   : > { %v6261_v6 = vadd.f32 %v7305_v39, %v7248_v44  ;;  %v7308_v18 = vadd.f32 %v7307_v19, %v7306_v5  ;;  %7349 = vmatprep.mubr.bf16.mxu1 %v6291_v57 }
 0x744   : > { %v6264_v20 = vadd.f32 %v7308_v18, %v7248_v44  ;;  %v6285_v40 = vmax.f32 %v6261_v6, 0.0 }
 0x746   : > { %v6286_v8 = vmax.f32 %v6264_v20, 0.0  ;;  %v7309_v0 = vpop.f32.mrb[40].mxu0 }
 0x747   : > { %v7310_v58 = vpop.f32.mrb[41].mxu0 }
 0x748   : > { %v6292_v13 = vpack.c.bf16 %v6286_v8, %v6285_v40  ;;  %v7311_v42 = vadd.f32 %v7310_v58, %v7309_v0  ;;  %v7312_v31 = vpop.f32.mrb[42].mxu0 }
 0x749   : > { %v7313_v29 = vpop.f32.mrb[43].mxu0 }
 0x74a   : > { %v6269_v26 = vadd.f32 %v7311_v42, %v7248_v44  ;;  %v7314_v15 = vadd.f32 %v7313_v29, %v7312_v31  ;;  %7350 = vmatmul.mubr.bf16.vlgmr.msra.gmra.mrb[32].mxu1 %v6292_v13 }
 0x74c   : > { %v6272_v17 = vadd.f32 %v7314_v15, %v7248_v44  ;;  %v6287_v43 = vmax.f32 %v6269_v26, 0.0 }
 0x74e   : > { %v6288_v45 = vmax.f32 %v6272_v17, 0.0  ;;  %v7315_v32 = vpop.f32.mrb[44].mxu0 }
 0x74f   : > { %v7316_v52 = vpop.f32.mrb[45].mxu0 }
 0x750   : > { %v7317_v2 = vadd.f32 %v7316_v52, %v7315_v32  ;;  %v7318_v10 = vpop.f32.mrb[46].mxu0  ;;  %v6293_v22 = vpack.c.bf16 %v6288_v45, %v6287_v43 }
 0x751   : > { %v7319_v21 = vpop.f32.mrb[47].mxu0 }
 0x752   : > { %v6277_v36 = vadd.f32 %v7317_v2, %v7248_v44  ;;  %v7320_v46 = vadd.f32 %v7319_v21, %v7318_v10  ;;  %7353 = vmatprep.mubr.bf16.mxu1 %v6293_v22 }
 0x754   : > { %v6280_v24 = vadd.f32 %v7320_v46, %v7248_v44  ;;  %v6289_v53 = vmax.f32 %v6277_v36, 0.0 }
 0x756   : > { %v6290_v14 = vmax.f32 %v6280_v24, 0.0 }
 0x758   : > { %v6294_v23 = vpack.c.bf16 %v6290_v14, %v6289_v53 }
 0x75a   : > { %7354 = vmatmul.mubr.bf16.gmra.mrb[36].mxu1 %v6294_v23 }
 0x81d   : > { %v7351_v35 = vpop.f32.mrb[32].mxu1 }
 0x81e   : > { %v6409_v7 = vadd.f32 %v7351_v35, %v7265_v50  ;;  %v6400_v27 = vpop.f32.mrb[33].mxu1 }
 0x81f   : > { %v6401_v37 = vadd.f32 %v7265_v50, %v6400_v27  ;;  %v7352_v12 = vpop.f32.mrb[34].mxu1 }
 0x820   : > { %6433 = vst [vmem:[#allocation21 + $0x10] sm:$0xff] %v6409_v7  ;;  %v6412_v16 = vadd.f32 %v7352_v12, %v7265_v50  ;;  %v6403_v11 = vpop.f32.mrb[35].mxu1 }
 0x821   : > { %6431 = vst [vmem:[#allocation21] sm:$0xff] %v6401_v37  ;;  %v6404_v63 = vadd.f32 %v7265_v50, %v6403_v11 }
 0x822   : > { %6434 = vst [vmem:[#allocation21 + $0x18] sm:$0xff] %v6412_v16 }
 0x823   : > { %6432 = vst [vmem:[#allocation21 + $0x8] sm:$0xff] %v6404_v63 }
 0x82d   : > { %v7355_v30 = vpop.f32.mrb[36].mxu1 }
 0x82e   : > { %v6425_v9 = vadd.f32 %v7355_v30, %v7265_v50  ;;  %v6416_v41 = vpop.f32.mrb[37].mxu1 }
 0x82f   : > { %v6417_v55 = vadd.f32 %v7265_v50, %v6416_v41  ;;  %v7356_v54 = vpop.f32.mrb[38].mxu1 }
 0x830   : > { %6437 = vst [vmem:[#allocation21 + $0x30] sm:$0xff] %v6425_v9  ;;  %v6428_v33 = vadd.f32 %v7356_v54, %v7265_v50  ;;  %v6419_v4 = vpop.f32.mrb[39].mxu1 }
 0x831   : > { %6435 = vst [vmem:[#allocation21 + $0x20] sm:$0xff] %v6417_v55  ;;  %v6420_v47 = vadd.f32 %v7265_v50, %v6419_v4 }
 0x832   : > { %6438 = vst [vmem:[#allocation21 + $0x38] sm:$0xff] %v6428_v33 }
 0x833   : > { %6436 = vst [vmem:[#allocation21 + $0x28] sm:$0xff] %v6420_v47 }
 0x834 PF: > { %p7679_p11 = scmp.eq.s32.totalorder %s8810_s23, 1  ;;  %s8716_s20 = smov [#allocation21]  }
 0x835   : > { %s6448_s15 = sshll.u32 %s8716_s20, 4  ;;  %s6449_s15 = int_to_ptr.vmem [resolvable:$true] %s6448_s15 }
 0x836   : > { %s8590_s11 = scalar_lea.vmem %s6449_s15, 1024  ;;  %p8597_p13 = scmp.lt.s32.totalorder %s6449_s15, %s6449_s15 }
 0x837   : > { %p8591_p0 = scmp.ne.s32.totalorder %s6449_s15, %s8590_s11  ;;  %p8598_p2 = scmp.lt.s32.totalorder %s8590_s11, %s8590_s11 }
 0x839   : > { %p8592_p12 = pnand %p8591_p0, %p7679_p11  ;;  %p8599_p7 = por %p8598_p2, %p8597_p13 }
 0x83b   : > { %p8593_p1 = pneg %p8592_p12 }
 0x83d   : > { %p8600_p6 = pnand %p8599_p7, %p8593_p1 }
 0x83f   : > { %8603 = shalt.err (!%p8600_p6)
}
 0x840   : > { %s10045_s26 = sld [smem:[#allocation38_spill]] }
 0x846   : > { %s8604_s14 = scalar_lea.hbm %s10045_s26, 1024 }
 0x847   : > { %p8605_p5 = scmp.ne.s32.totalorder %s10045_s26, %s8604_s14  ;;  %p8610_p9 = scmp.lt.u32.totalorder %s8604_s14, %s10045_s26 }
 0x849   : > { %p8606_p8 = pnand %p8605_p5, %p7679_p11 }
 0x84b   : > { %p8607_p4 = pneg %p8606_p8 }
 0x84d   : > { %p8612_p3 = pnand %p8610_p9, %p8607_p4 }
 0x84f   : > { %8615 = shalt.err (!%p8612_p3)
}
 0x850   : > { %s8717_s24 = smov 128   ;;  %s8718_s17 = smov 8  }
 0x851   : > { %7622 = dma.vmem_to_hbm [thread:$0]  (%p7679_p11), %s6449_s15, 1024, %s10045_s26, [#allocation5], %s8717_s24, %s8717_s24, %s8718_s17  }
 0x852   : > { %8669 = dma.done.wait (%p7679_p11), [#allocation5], 1024  }
 0x853   : > { %8671 = vsyncadd (%p7679_p11), [#allocation5], 4294966272 }
 0x854 PF: > { %s32_s22 = sadd.s32 1, %s8694_s22   ;;  %s10046_s17 = smov %s8678_s18 }
 0x855   : > { %p29_p10 = scmp.ge.s32.totalorder %s32_s22, 4   ;;  %s10047_s18 = smov %s8682_s19 }
 0x856   : > { %s10048_s19 = smov %s9050_s13  ;;  %s10049_s20 = smov %s8690_s21 }
 0x857   : > { %s10050_s21 = smov %s10052_s27  ;;  %31 = sbr.rel (!%p29_p10) target bundleno = 19 (0x13), region = 159 }
 0x85e   :  { %6464 = vsyncpa [#allocation4], 1 }
 0x85f   :  { %6466 = vsyncpa [#allocation4 + $0x1], 1 }
 0x860   :  { %6467 = vsyncpa [#allocation7], 1 }
 0x861   :  { %6469 = vsyncpa [#allocation7 + $0x1], 1 }
 0x862   :  { %6470 = vsyncpa [#allocation10], 1 }
 0x863   :  { %6471 = vsyncpa [#allocation13], 1 }
 0x864   :  { %6472 = vsyncpa [#allocation16], 1 }
 0x865   :  { %6473 = vsyncpa [#allocation19], 1 }
 0x866   :  { %6474 = vsyncpa [#allocation5], 1 }
 0x867   :  { %6476 = vsyncpa [#allocation5 + $0x1], 1 }

</bundles_post_ra>
